<compile_context>
chip_gen: v7x
topology: tpu7x:2x2x1
jax: 0.10.0
libtpu: 0.0.40
codegen_flags: <defaults>
</compile_context>

<pallas_src>
import jax
import jax.numpy as jnp
from jax import lax
from jax.experimental import pallas as pl
from jax.experimental.pallas import tpu as pltpu  # noqa: F401  (kept for parity / future CompilerParams)

# ----------------------------- model hyper-params -----------------------------
B = 2               # batch
S = 8               # sequence length
H = 32              # hidden size
NH = 4              # attention heads
DH = H // NH        # head dim
INTER = 64          # FFN intermediate size
N_ENC_LAYERS = 2
N_LSTM_LAYERS = 2
HC = H // 2         # LSTM hidden per direction
L = 5               # num_labels
VOCAB = 100
MAXPOS = 64
SCALE = 1.0 / float(DH) ** 0.5
BS = B * S
EMPAD = 128         # lane-dense width for the emissions output / FFN weight padding


# ----------------------------- shared math helpers -----------------------------
def _dot(a, b):
    return jnp.dot(a, b, preferred_element_type=jnp.float32)


def _dot_nt(a, b):
    # a @ b.T without materializing a transpose
    return lax.dot_general(a, b, (((1,), (1,)), ((), ())),
                           preferred_element_type=jnp.float32)


def layer_norm(x, g, b, eps=1e-12):
    mu = jnp.mean(x, axis=-1, keepdims=True)
    var = jnp.mean((x - mu) ** 2, axis=-1, keepdims=True)
    return (x - mu) * lax.rsqrt(var + eps) * g + b


def gelu_tanh(x):
    c = 0.7978845608028654  # sqrt(2/pi)
    return 0.5 * x * (1.0 + jnp.tanh(c * (x + 0.044715 * x * x * x)))


# ----------------------------- fused forward kernel -----------------------------
def fused_kernel(*refs):
    emb_ref, bias_ref, mask_ref, eln_g_ref, eln_b_ref = refs[0:5]
    pos = 5
    enc_layers = [refs[pos + 16 * i: pos + 16 * (i + 1)] for i in range(N_ENC_LAYERS)]
    pos += 16 * N_ENC_LAYERS
    lstm_layers = [refs[pos + 3 * i: pos + 3 * (i + 1)] for i in range(N_LSTM_LAYERS)]
    pos += 3 * N_LSTM_LAYERS
    ffn_w_ref, ffn_b_ref, start_ref, trans_ref, end_ref = refs[pos:pos + 5]
    pos += 5
    tags_ref, em_ref = refs[pos:pos + 2]

    mi = mask_ref[...]                                   # (B, S) int32
    attn_bias = bias_ref[...]                            # (NH*B*S, NH*B*S), hoisted bias

    # --- embedding LayerNorm (token gather + sum done in XLA glue) ---
    # rows are TIME-major: row index = t*B + b
    x = layer_norm(emb_ref[...], eln_g_ref[...], eln_b_ref[...])     # (B*S, H)

    # --- transformer encoder layers: all batches & heads in single matmuls ---
    for lw in enc_layers:
        (wq, bq, wk, bk, wv, bv, wo, bo,
         g1, b1, wi, bi, wo2, bo2, g2, b2) = [r[...] for r in lw]
        q = _dot(x, wq) + bq                                          # (B*S, H)
        k = _dot(x, wk) + bk
        v = _dot(x, wv) + bv
        # stack heads along sublanes -> (NH*B*S, DH)
        qs = jnp.concatenate([q[:, h0:h0 + DH] for h0 in range(0, H, DH)], axis=0)
        ks = jnp.concatenate([k[:, h0:h0 + DH] for h0 in range(0, H, DH)], axis=0)
        vs = jnp.concatenate([v[:, h0:h0 + DH] for h0 in range(0, H, DH)], axis=0)
        scores = _dot_nt(qs, ks) * SCALE + attn_bias                  # (64, 64)
        probs = jax.nn.softmax(scores, axis=-1)                       # cross blocks -> exactly 0
        ctx = _dot(probs, vs)                                         # (64, DH)
        ctx_cat = jnp.concatenate(
            [ctx[h * BS:(h + 1) * BS, :] for h in range(NH)], axis=1)  # (B*S, H)
        attn = _dot(ctx_cat, wo) + bo                                 # (B*S, H)
        x1 = layer_norm(x + attn, g1, b1)
        mid = gelu_tanh(_dot(x1, wi) + bi)
        x = layer_norm(x1 + _dot(mid, wo2) + bo2, g2, b2)

    # nn.Dropout(hidden_dropout_prob): identity in eval mode.

    # --- 2-layer bidirectional LSTM, both directions fused, register-resident ---
    lane = lax.broadcasted_iota(jnp.int32, (1, 8 * HC), 1)
    # packed gate columns: [i_f,i_b | f_f,f_b | o_f,o_b | g_f,g_b] (each HC wide);
    # fwd-direction columns have (lane & HC) == 0.
    fwd_lanes = jnp.bitwise_and(lane, HC) == 0

    for li in range(N_LSTM_LAYERS):
        wih_ref, whh_ref, bl_ref = lstm_layers[li]
        whh = whh_ref[...]                                            # (2*HC, 8*HC) block-diag
        # input projection hoisted out of the recurrence (lane-dense N=128 matmul),
        # time-major rows (t*B + b)
        gates = _dot(x, wih_ref[...]) + bl_ref[...]                   # (B*S, 8*HC)
        # bwd direction reads time-reversed input: reverse in blocks of B rows, then
        # one bulk lane-select (hoisted out of the sequential loop).
        gates_rev = jnp.concatenate(
            [gates[(S - 1 - t) * B:(S - t) * B, :] for t in range(S)], axis=0)
        merged = jnp.where(fwd_lanes, gates, gates_rev)               # (B*S, 8*HC)

        hs = jnp.zeros((B, 2 * HC), jnp.float32)                      # [h_fwd | h_bwd]
        cs = jnp.zeros((B, 2 * HC), jnp.float32)
        hs_list = []
        for t in range(S):                                            # statically unrolled
            g = merged[t * B:(t + 1) * B, :] + _dot(hs, whh)          # (B, 8*HC)
            sg = jax.nn.sigmoid(g[:, 0:6 * HC])                       # i | f | o (contiguous)
            tg = jnp.tanh(g[:, 6 * HC:8 * HC])                        # g gate
            i_g = sg[:, 0:2 * HC]
            f_g = sg[:, 2 * HC:4 * HC]
            o_g = sg[:, 4 * HC:6 * HC]
            cs = f_g * cs + i_g * tg
            hs = o_g * jnp.tanh(cs)
            hs_list.append(hs)
        # assemble layer output in registers (no VMEM scratch / masked stores):
        # output row t*B+b = [h_fwd(t) | h_bwd(t)], with h_bwd(t) produced at step S-1-t
        x_fwd = jnp.concatenate([hs_list[t][:, 0:HC] for t in range(S)], axis=0)
        x_bwd = jnp.concatenate([hs_list[S - 1 - t][:, HC:2 * HC] for t in range(S)], axis=0)
        x = jnp.concatenate([x_fwd, x_bwd], axis=1)                   # (B*S, 2*HC)
        # inter-layer LSTM dropout: identity in eval mode.

    # --- position-wise FFN -> emissions (lane-dense padded output) ---
    em_pad = _dot(x, ffn_w_ref[...]) + ffn_b_ref[...]                 # (B*S, EMPAD)
    em_ref[...] = em_pad                                              # single unmasked store
    em = em_pad[:, 0:L]                                               # (B*S, L) in registers

    # --- CRF viterbi decode (torchcrf semantics; padded positions -> tag 0) ---
    start = start_ref[...]                                            # (1, L)
    trans = trans_ref[...]                                            # (L, L): [i, j] = score(i -> j)
    end = end_ref[...]                                                # (1, L)
    iota_l = lax.broadcasted_iota(jnp.int32, (B, L), 1)
    trans_rows = [trans[i:i + 1, :] for i in range(L)]                # hoisted
    em_t = [em[t * B:(t + 1) * B, :] for t in range(S)]               # hoisted, contiguous slices

    score = start + em_t[0]                                           # (B, L)
    hist = [None] * S
    for t in range(1, S):                                             # statically unrolled
        # cand_i[b, j] = score[b, i] + trans[i, j]; pure elementwise max / where chains
        cands = [score[:, i:i + 1] + trans_rows[i] for i in range(L)]
        best = cands[0]
        for i in range(1, L):
            best = jnp.maximum(best, cands[i])
        # first (smallest-index) argmax over previous tag
        idx = jnp.full((B, L), L - 1, jnp.int32)
        for i in range(L - 2, -1, -1):
            idx = jnp.where(cands[i] >= best, jnp.full((B, L), i, jnp.int32), idx)
        hist[t] = idx
        m_t = mi[:, t:t + 1] > 0
        score = jnp.where(m_t, best + em_t[t], score)

    score = score + end
    mx = jnp.max(score, axis=1, keepdims=True)
    final_idx = jnp.min(jnp.where(score >= mx, iota_l, L), axis=1, keepdims=True)  # (B, 1)

    # backtrace, accumulating the tag matrix in registers; single store at the end
    iota_s = lax.broadcasted_iota(jnp.int32, (B, S), 1)
    tags = jnp.zeros((B, S), jnp.int32)
    cur = final_idx
    for t in range(S - 1, -1, -1):                                    # statically unrolled
        m_t = mi[:, t:t + 1] > 0
        if t == S - 1:
            new_cur = final_idx
        else:
            is_last = m_t & (mi[:, t + 1:t + 2] == 0)
            prev = jnp.sum(jnp.where(iota_l == cur, hist[t + 1], 0),
                           axis=1, keepdims=True)                     # hist[t+1][b, cur_b]
            new_cur = jnp.where(is_last, final_idx, prev)
        cur = jnp.where(m_t, new_cur, cur)
        tags = jnp.where(jnp.logical_and(iota_s == t, m_t), cur, tags)
    tags_ref[...] = tags


# ----------------------------- parameter packing / init -----------------------------
def pack_bilstm_layer(wih_f, whh_f, b_f, wih_b, whh_b, b_b):
    """Pack per-direction LSTM weights (gate order [i, f, g, o], shapes (in, 4*HC),
    (HC, 4*HC), (1, 4*HC)) into the fused kernel layout with gate columns
    [i_f, i_b | f_f, f_b | o_f, o_b | g_f, g_b] and a block-diagonal recurrent weight."""
    hc = whh_f.shape[0]
    zero = jnp.zeros((hc, hc), jnp.float32)

    def gcols(w, gi):
        return w[:, gi * hc:(gi + 1) * hc]

    wih_cols, whh_cols, b_cols = [], [], []
    for gi in (0, 1, 3, 2):                  # i, f, o, g
        wih_cols += [gcols(wih_f, gi), gcols(wih_b, gi)]
        whh_cols += [jnp.concatenate([gcols(whh_f, gi), zero], axis=0),
                     jnp.concatenate([zero, gcols(whh_b, gi)], axis=0)]
        b_cols += [gcols(b_f, gi), gcols(b_b, gi)]
    return (jnp.concatenate(wih_cols, axis=1),      # (in, 8*HC)
            jnp.concatenate(whh_cols, axis=1),      # (2*HC, 8*HC)
            jnp.concatenate(b_cols, axis=1))        # (1, 8*HC)


def init_params(key):
    keys = iter(jax.random.split(key, 64))

    def nrm(shape):
        return jax.random.normal(next(keys), shape, jnp.float32) * 0.02

    p = {}
    p["word_emb"] = nrm((VOCAB, H))
    p["pos_emb"] = nrm((MAXPOS, H))
    p["type_emb"] = nrm((2, H))
    p["emb_ln_g"] = jnp.ones((1, H), jnp.float32)
    p["emb_ln_b"] = jnp.zeros((1, H), jnp.float32)

    layers = []
    for _ in range(N_ENC_LAYERS):
        layers.append([
            nrm((H, H)), jnp.zeros((1, H), jnp.float32),          # wq, bq
            nrm((H, H)), jnp.zeros((1, H), jnp.float32),          # wk, bk
            nrm((H, H)), jnp.zeros((1, H), jnp.float32),          # wv, bv
            nrm((H, H)), jnp.zeros((1, H), jnp.float32),          # wo, bo
            jnp.ones((1, H), jnp.float32), jnp.zeros((1, H), jnp.float32),   # ln1
            nrm((H, INTER)), jnp.zeros((1, INTER), jnp.float32),  # wi, bi
            nrm((INTER, H)), jnp.zeros((1, H), jnp.float32),      # wo2, bo2
            jnp.ones((1, H), jnp.float32), jnp.zeros((1, H), jnp.float32),   # ln2
        ])
    p["enc_layers"] = layers

    lstm = []
    hin = H
    for _ in range(N_LSTM_LAYERS):
        wih_f, whh_f = nrm((hin, 4 * HC)), nrm((HC, 4 * HC))
        wih_b, whh_b = nrm((hin, 4 * HC)), nrm((HC, 4 * HC))
        b_f = jnp.zeros((1, 4 * HC), jnp.float32)
        b_b = jnp.zeros((1, 4 * HC), jnp.float32)
        wih_c, whh_c, b_c = pack_bilstm_layer(wih_f, whh_f, b_f, wih_b, whh_b, b_b)
        lstm.append({"wih": wih_c, "whh": whh_c, "b": b_c})
        hin = 2 * HC
    p["lstm"] = lstm

    p["ffn_w"] = nrm((H, L))
    p["ffn_b"] = jnp.zeros((1, L), jnp.float32)

    p["crf_start"] = jax.random.uniform(next(keys), (1, L), jnp.float32, -0.1, 0.1)
    p["crf_trans"] = jax.random.uniform(next(keys), (L, L), jnp.float32, -0.1, 0.1)
    p["crf_end"] = jax.random.uniform(next(keys), (1, L), jnp.float32, -0.1, 0.1)
    return p


# ----------------------------- full forward (tags=None branch) -----------------------------
@jax.jit
def bert_bilstm_crf_forward(params, input_ids, attention_mask, token_type_ids):
    b, s = input_ids.shape

    # embeddings (gather = XLA glue), flattened TIME-major (row = t*b + bb)
    emb = (params["word_emb"][input_ids.T]
           + params["pos_emb"][:s][:, None, :]
           + params["type_emb"][token_type_ids.T])                # (S, B, H)
    emb_flat = emb.reshape(s * b, H)

    # stacked-head attention bias, built ONCE in the wrapper (hoisted out of the
    # kernel's encoder-layer loop): 0 where head & batch match AND the key is valid,
    # -1e9 elsewhere (cross-head / cross-batch / padded key).
    nhbs = NH * b * s
    idx = jnp.arange(nhbs)
    hh = idx // (b * s)
    bb = idx % b
    ss = (idx % (b * s)) // b
    same = (hh[:, None] == hh[None, :]) & (bb[:, None] == bb[None, :])
    key_valid = attention_mask[bb, ss] > 0
    attn_bias = jnp.where(same & key_valid[None, :], 0.0, -1e9).astype(jnp.float32)

    # lane-dense padded emission projection (kernel stores (B*S, 128) unmasked)
    ffn_w_pad = jnp.zeros((H, EMPAD), jnp.float32).at[:, :L].set(params["ffn_w"])
    ffn_b_pad = jnp.zeros((1, EMPAD), jnp.float32).at[:, :L].set(params["ffn_b"])

    flat = [emb_flat, attn_bias, attention_mask.astype(jnp.int32),
            params["emb_ln_g"], params["emb_ln_b"]]
    for lw in params["enc_layers"]:
        flat += list(lw)
    for ll in params["lstm"]:
        flat += [ll["wih"], ll["whh"], ll["b"]]
    flat += [ffn_w_pad, ffn_b_pad,
             params["crf_start"], params["crf_trans"], params["crf_end"]]

    tags, em_pad = pl.pallas_call(
        fused_kernel,
        out_shape=(jax.ShapeDtypeStruct((b, s), jnp.int32),
                   jax.ShapeDtypeStruct((b * s, EMPAD), jnp.float32)),
    )(*flat)
    emissions = em_pad[:, :L].reshape(s, b, L).transpose(1, 0, 2)   # (B, S, L)
    return tags, emissions


if __name__ == "__main__":
    key = jax.random.PRNGKey(0)
    pkey, dkey = jax.random.split(key)
    params = init_params(pkey)

    input_ids = jax.random.randint(dkey, (B, S), 1, VOCAB, dtype=jnp.int32)
    # batch 0: full length; batch 1: length 5 (padded)
    attention_mask = jnp.array([[1, 1, 1, 1, 1, 1, 1, 1],
                                [1, 1, 1, 1, 1, 0, 0, 0]], dtype=jnp.int32)
    token_type_ids = jnp.zeros((B, S), dtype=jnp.int32)

    tags, emissions = bert_bilstm_crf_forward(params, input_ids, attention_mask,
                                              token_type_ids)
    tags = jax.block_until_ready(tags)
    emissions = jax.block_until_ready(emissions)

    assert tags.shape == (B, S) and tags.dtype == jnp.int32
    assert emissions.shape == (B, S, L)
    assert bool(jnp.all(jnp.isfinite(emissions)))
    assert bool(jnp.all((tags >= 0) & (tags < L)))
    assert bool(jnp.all(tags[1, 5:] == 0))   # padded positions decode to 0
    print("KERNEL_OK")
</pallas_src>

<mosaic_0001>
module attributes {stable_mosaic.version = 11 : i64} {
  func.func @fused_kernel(%arg0: memref<16x32xf32, #tpu.memory_space<vmem>>, %arg1: memref<64x64xf32, #tpu.memory_space<vmem>>, %arg2: memref<2x8xi32, #tpu.memory_space<vmem>>, %arg3: memref<1x32xf32, #tpu.memory_space<vmem>>, %arg4: memref<1x32xf32, #tpu.memory_space<vmem>>, %arg5: memref<32x32xf32, #tpu.memory_space<vmem>>, %arg6: memref<1x32xf32, #tpu.memory_space<vmem>>, %arg7: memref<32x32xf32, #tpu.memory_space<vmem>>, %arg8: memref<1x32xf32, #tpu.memory_space<vmem>>, %arg9: memref<32x32xf32, #tpu.memory_space<vmem>>, %arg10: memref<1x32xf32, #tpu.memory_space<vmem>>, %arg11: memref<32x32xf32, #tpu.memory_space<vmem>>, %arg12: memref<1x32xf32, #tpu.memory_space<vmem>>, %arg13: memref<1x32xf32, #tpu.memory_space<vmem>>, %arg14: memref<1x32xf32, #tpu.memory_space<vmem>>, %arg15: memref<32x64xf32, #tpu.memory_space<vmem>>, %arg16: memref<1x64xf32, #tpu.memory_space<vmem>>, %arg17: memref<64x32xf32, #tpu.memory_space<vmem>>, %arg18: memref<1x32xf32, #tpu.memory_space<vmem>>, %arg19: memref<1x32xf32, #tpu.memory_space<vmem>>, %arg20: memref<1x32xf32, #tpu.memory_space<vmem>>, %arg21: memref<32x32xf32, #tpu.memory_space<vmem>>, %arg22: memref<1x32xf32, #tpu.memory_space<vmem>>, %arg23: memref<32x32xf32, #tpu.memory_space<vmem>>, %arg24: memref<1x32xf32, #tpu.memory_space<vmem>>, %arg25: memref<32x32xf32, #tpu.memory_space<vmem>>, %arg26: memref<1x32xf32, #tpu.memory_space<vmem>>, %arg27: memref<32x32xf32, #tpu.memory_space<vmem>>, %arg28: memref<1x32xf32, #tpu.memory_space<vmem>>, %arg29: memref<1x32xf32, #tpu.memory_space<vmem>>, %arg30: memref<1x32xf32, #tpu.memory_space<vmem>>, %arg31: memref<32x64xf32, #tpu.memory_space<vmem>>, %arg32: memref<1x64xf32, #tpu.memory_space<vmem>>, %arg33: memref<64x32xf32, #tpu.memory_space<vmem>>, %arg34: memref<1x32xf32, #tpu.memory_space<vmem>>, %arg35: memref<1x32xf32, #tpu.memory_space<vmem>>, %arg36: memref<1x32xf32, #tpu.memory_space<vmem>>, %arg37: memref<32x128xf32, #tpu.memory_space<vmem>>, %arg38: memref<32x128xf32, #tpu.memory_space<vmem>>, %arg39: memref<1x128xf32, #tpu.memory_space<vmem>>, %arg40: memref<32x128xf32, #tpu.memory_space<vmem>>, %arg41: memref<32x128xf32, #tpu.memory_space<vmem>>, %arg42: memref<1x128xf32, #tpu.memory_space<vmem>>, %arg43: memref<32x128xf32, #tpu.memory_space<vmem>>, %arg44: memref<1x128xf32, #tpu.memory_space<vmem>>, %arg45: memref<1x5xf32, #tpu.memory_space<vmem>>, %arg46: memref<5x5xf32, #tpu.memory_space<vmem>>, %arg47: memref<1x5xf32, #tpu.memory_space<vmem>>, %arg48: memref<2x8xi32, #tpu.memory_space<vmem>>, %arg49: memref<16x128xf32, #tpu.memory_space<vmem>>) attributes {dimension_semantics = [], scalar_prefetch = 0 : i64, scratch_operands = 0 : i64, tpu.core_type = #tpu.core_type<tc>} {
    %c0 = arith.constant 0 : index
    %c0_0 = arith.constant 0 : index
    %0 = vector.load %arg2[%c0, %c0_0] : memref<2x8xi32, #tpu.memory_space<vmem>>, vector<2x8xi32>
    %c0_1 = arith.constant 0 : index
    %c0_2 = arith.constant 0 : index
    %1 = vector.load %arg1[%c0_1, %c0_2] : memref<64x64xf32, #tpu.memory_space<vmem>>, vector<64x64xf32>
    %c0_3 = arith.constant 0 : index
    %c0_4 = arith.constant 0 : index
    %2 = vector.load %arg0[%c0_3, %c0_4] : memref<16x32xf32, #tpu.memory_space<vmem>>, vector<16x32xf32>
    %c0_5 = arith.constant 0 : index
    %c0_6 = arith.constant 0 : index
    %3 = vector.load %arg3[%c0_5, %c0_6] : memref<1x32xf32, #tpu.memory_space<vmem>>, vector<1x32xf32>
    %c0_7 = arith.constant 0 : index
    %c0_8 = arith.constant 0 : index
    %4 = vector.load %arg4[%c0_7, %c0_8] : memref<1x32xf32, #tpu.memory_space<vmem>>, vector<1x32xf32>
    %cst = arith.constant dense<0.000000e+00> : vector<16xf32>
    %5 = vector.multi_reduction <add>, %2, %cst [1] : vector<16x32xf32> to vector<16xf32>
    %6 = vector.shape_cast %5 : vector<16xf32> to vector<16x1xf32>
    %cst_9 = arith.constant 3.200000e+01 : f32
    %7 = vector.broadcast %cst_9 : f32 to vector<16x1xf32>
    %8 = arith.divf %6, %7 : vector<16x1xf32>
    %9 = vector.broadcast %8 : vector<16x1xf32> to vector<16x32xf32>
    %10 = arith.subf %2, %9 : vector<16x32xf32>
    %11 = arith.mulf %10, %10 : vector<16x32xf32>
    %cst_10 = arith.constant dense<0.000000e+00> : vector<16xf32>
    %12 = vector.multi_reduction <add>, %11, %cst_10 [1] : vector<16x32xf32> to vector<16xf32>
    %13 = vector.shape_cast %12 : vector<16xf32> to vector<16x1xf32>
    %cst_11 = arith.constant 3.200000e+01 : f32
    %14 = vector.broadcast %cst_11 : f32 to vector<16x1xf32>
    %15 = arith.divf %13, %14 : vector<16x1xf32>
    %16 = vector.broadcast %8 : vector<16x1xf32> to vector<16x32xf32>
    %17 = arith.subf %2, %16 : vector<16x32xf32>
    %cst_12 = arith.constant 9.99999996E-13 : f32
    %18 = vector.broadcast %cst_12 : f32 to vector<16x1xf32>
    %19 = arith.addf %15, %18 : vector<16x1xf32>
    %20 = math.rsqrt %19 : vector<16x1xf32>
    %21 = vector.broadcast %20 : vector<16x1xf32> to vector<16x32xf32>
    %22 = arith.mulf %17, %21 : vector<16x32xf32>
    %23 = vector.broadcast %3 : vector<1x32xf32> to vector<16x32xf32>
    %24 = arith.mulf %22, %23 : vector<16x32xf32>
    %25 = vector.broadcast %4 : vector<1x32xf32> to vector<16x32xf32>
    %26 = arith.addf %24, %25 : vector<16x32xf32>
    %c0_13 = arith.constant 0 : index
    %c0_14 = arith.constant 0 : index
    %27 = vector.load %arg5[%c0_13, %c0_14] : memref<32x32xf32, #tpu.memory_space<vmem>>, vector<32x32xf32>
    %c0_15 = arith.constant 0 : index
    %c0_16 = arith.constant 0 : index
    %28 = vector.load %arg6[%c0_15, %c0_16] : memref<1x32xf32, #tpu.memory_space<vmem>>, vector<1x32xf32>
    %c0_17 = arith.constant 0 : index
    %c0_18 = arith.constant 0 : index
    %29 = vector.load %arg7[%c0_17, %c0_18] : memref<32x32xf32, #tpu.memory_space<vmem>>, vector<32x32xf32>
    %c0_19 = arith.constant 0 : index
    %c0_20 = arith.constant 0 : index
    %30 = vector.load %arg8[%c0_19, %c0_20] : memref<1x32xf32, #tpu.memory_space<vmem>>, vector<1x32xf32>
    %c0_21 = arith.constant 0 : index
    %c0_22 = arith.constant 0 : index
    %31 = vector.load %arg9[%c0_21, %c0_22] : memref<32x32xf32, #tpu.memory_space<vmem>>, vector<32x32xf32>
    %c0_23 = arith.constant 0 : index
    %c0_24 = arith.constant 0 : index
    %32 = vector.load %arg10[%c0_23, %c0_24] : memref<1x32xf32, #tpu.memory_space<vmem>>, vector<1x32xf32>
    %c0_25 = arith.constant 0 : index
    %c0_26 = arith.constant 0 : index
    %33 = vector.load %arg11[%c0_25, %c0_26] : memref<32x32xf32, #tpu.memory_space<vmem>>, vector<32x32xf32>
    %c0_27 = arith.constant 0 : index
    %c0_28 = arith.constant 0 : index
    %34 = vector.load %arg12[%c0_27, %c0_28] : memref<1x32xf32, #tpu.memory_space<vmem>>, vector<1x32xf32>
    %c0_29 = arith.constant 0 : index
    %c0_30 = arith.constant 0 : index
    %35 = vector.load %arg13[%c0_29, %c0_30] : memref<1x32xf32, #tpu.memory_space<vmem>>, vector<1x32xf32>
    %c0_31 = arith.constant 0 : index
    %c0_32 = arith.constant 0 : index
    %36 = vector.load %arg14[%c0_31, %c0_32] : memref<1x32xf32, #tpu.memory_space<vmem>>, vector<1x32xf32>
    %c0_33 = arith.constant 0 : index
    %c0_34 = arith.constant 0 : index
    %37 = vector.load %arg15[%c0_33, %c0_34] : memref<32x64xf32, #tpu.memory_space<vmem>>, vector<32x64xf32>
    %c0_35 = arith.constant 0 : index
    %c0_36 = arith.constant 0 : index
    %38 = vector.load %arg16[%c0_35, %c0_36] : memref<1x64xf32, #tpu.memory_space<vmem>>, vector<1x64xf32>
    %c0_37 = arith.constant 0 : index
    %c0_38 = arith.constant 0 : index
    %39 = vector.load %arg17[%c0_37, %c0_38] : memref<64x32xf32, #tpu.memory_space<vmem>>, vector<64x32xf32>
    %c0_39 = arith.constant 0 : index
    %c0_40 = arith.constant 0 : index
    %40 = vector.load %arg18[%c0_39, %c0_40] : memref<1x32xf32, #tpu.memory_space<vmem>>, vector<1x32xf32>
    %c0_41 = arith.constant 0 : index
    %c0_42 = arith.constant 0 : index
    %41 = vector.load %arg19[%c0_41, %c0_42] : memref<1x32xf32, #tpu.memory_space<vmem>>, vector<1x32xf32>
    %c0_43 = arith.constant 0 : index
    %c0_44 = arith.constant 0 : index
    %42 = vector.load %arg20[%c0_43, %c0_44] : memref<1x32xf32, #tpu.memory_space<vmem>>, vector<1x32xf32>
    %cst_45 = arith.constant dense<0.000000e+00> : vector<16x32xf32>
    %43 = tpu.matmul %26, %27, %cst_45 {dimension_numbers = #tpu.dot_dimension_numbers<[1], [0], [0], [1], [0, 0, 1, 1], [], []>} : vector<16x32xf32>, vector<32x32xf32>, vector<16x32xf32> -> vector<16x32xf32>
    %44 = vector.broadcast %28 : vector<1x32xf32> to vector<16x32xf32>
    %45 = arith.addf %43, %44 : vector<16x32xf32>
    %cst_46 = arith.constant dense<0.000000e+00> : vector<16x32xf32>
    %46 = tpu.matmul %26, %29, %cst_46 {dimension_numbers = #tpu.dot_dimension_numbers<[1], [0], [0], [1], [0, 0, 1, 1], [], []>} : vector<16x32xf32>, vector<32x32xf32>, vector<16x32xf32> -> vector<16x32xf32>
    %47 = vector.broadcast %30 : vector<1x32xf32> to vector<16x32xf32>
    %48 = arith.addf %46, %47 : vector<16x32xf32>
    %cst_47 = arith.constant dense<0.000000e+00> : vector<16x32xf32>
    %49 = tpu.matmul %26, %31, %cst_47 {dimension_numbers = #tpu.dot_dimension_numbers<[1], [0], [0], [1], [0, 0, 1, 1], [], []>} : vector<16x32xf32>, vector<32x32xf32>, vector<16x32xf32> -> vector<16x32xf32>
    %50 = vector.broadcast %32 : vector<1x32xf32> to vector<16x32xf32>
    %51 = arith.addf %49, %50 : vector<16x32xf32>
    %52 = vector.extract_strided_slice %45 {offsets = [0, 0], sizes = [16, 8], strides = [1, 1]} : vector<16x32xf32> to vector<16x8xf32>
    %53 = vector.extract_strided_slice %45 {offsets = [0, 8], sizes = [16, 8], strides = [1, 1]} : vector<16x32xf32> to vector<16x8xf32>
    %54 = vector.extract_strided_slice %45 {offsets = [0, 16], sizes = [16, 8], strides = [1, 1]} : vector<16x32xf32> to vector<16x8xf32>
    %55 = vector.extract_strided_slice %45 {offsets = [0, 24], sizes = [16, 8], strides = [1, 1]} : vector<16x32xf32> to vector<16x8xf32>
    %56 = tpu.concatenate %52, %53, %54, %55 in 0 : vector<16x8xf32>, vector<16x8xf32>, vector<16x8xf32>, vector<16x8xf32> -> vector<64x8xf32>
    %57 = vector.extract_strided_slice %48 {offsets = [0, 0], sizes = [16, 8], strides = [1, 1]} : vector<16x32xf32> to vector<16x8xf32>
    %58 = vector.extract_strided_slice %48 {offsets = [0, 8], sizes = [16, 8], strides = [1, 1]} : vector<16x32xf32> to vector<16x8xf32>
    %59 = vector.extract_strided_slice %48 {offsets = [0, 16], sizes = [16, 8], strides = [1, 1]} : vector<16x32xf32> to vector<16x8xf32>
    %60 = vector.extract_strided_slice %48 {offsets = [0, 24], sizes = [16, 8], strides = [1, 1]} : vector<16x32xf32> to vector<16x8xf32>
    %61 = tpu.concatenate %57, %58, %59, %60 in 0 : vector<16x8xf32>, vector<16x8xf32>, vector<16x8xf32>, vector<16x8xf32> -> vector<64x8xf32>
    %62 = vector.extract_strided_slice %51 {offsets = [0, 0], sizes = [16, 8], strides = [1, 1]} : vector<16x32xf32> to vector<16x8xf32>
    %63 = vector.extract_strided_slice %51 {offsets = [0, 8], sizes = [16, 8], strides = [1, 1]} : vector<16x32xf32> to vector<16x8xf32>
    %64 = vector.extract_strided_slice %51 {offsets = [0, 16], sizes = [16, 8], strides = [1, 1]} : vector<16x32xf32> to vector<16x8xf32>
    %65 = vector.extract_strided_slice %51 {offsets = [0, 24], sizes = [16, 8], strides = [1, 1]} : vector<16x32xf32> to vector<16x8xf32>
    %66 = tpu.concatenate %62, %63, %64, %65 in 0 : vector<16x8xf32>, vector<16x8xf32>, vector<16x8xf32>, vector<16x8xf32> -> vector<64x8xf32>
    %cst_48 = arith.constant dense<0.000000e+00> : vector<64x64xf32>
    %67 = tpu.matmul %56, %61, %cst_48 {dimension_numbers = #tpu.dot_dimension_numbers<[1], [1], [0], [0], [0, 0, 1, 0], [], []>} : vector<64x8xf32>, vector<64x8xf32>, vector<64x64xf32> -> vector<64x64xf32>
    %cst_49 = arith.constant 0.353553385 : f32
    %68 = vector.broadcast %cst_49 : f32 to vector<64x64xf32>
    %69 = arith.mulf %67, %68 : vector<64x64xf32>
    %70 = arith.addf %69, %1 : vector<64x64xf32>
    %cst_50 = arith.constant dense<0xFF800000> : vector<64xf32>
    %71 = vector.multi_reduction <maximumf>, %70, %cst_50 [1] : vector<64x64xf32> to vector<64xf32>
    %cst_51 = arith.constant 0xFF800000 : f32
    %72 = vector.broadcast %cst_51 : f32 to vector<64xf32>
    %73 = arith.maximumf %72, %71 : vector<64xf32>
    %74 = vector.shape_cast %73 : vector<64xf32> to vector<64x1xf32>
    %75 = vector.broadcast %74 : vector<64x1xf32> to vector<64x64xf32>
    %76 = arith.subf %70, %75 : vector<64x64xf32>
    %77 = math.exp %76 : vector<64x64xf32>
    %cst_52 = arith.constant dense<0.000000e+00> : vector<64xf32>
    %78 = vector.multi_reduction <add>, %77, %cst_52 [1] : vector<64x64xf32> to vector<64xf32>
    %79 = vector.shape_cast %78 : vector<64xf32> to vector<64x1xf32>
    %80 = vector.broadcast %79 : vector<64x1xf32> to vector<64x64xf32>
    %81 = arith.divf %77, %80 : vector<64x64xf32>
    %cst_53 = arith.constant dense<0.000000e+00> : vector<64x8xf32>
    %82 = tpu.matmul %81, %66, %cst_53 {dimension_numbers = #tpu.dot_dimension_numbers<[1], [0], [0], [1], [0, 0, 1, 1], [], []>} : vector<64x64xf32>, vector<64x8xf32>, vector<64x8xf32> -> vector<64x8xf32>
    %83 = vector.extract_strided_slice %82 {offsets = [0, 0], sizes = [16, 8], strides = [1, 1]} : vector<64x8xf32> to vector<16x8xf32>
    %84 = vector.extract_strided_slice %82 {offsets = [16, 0], sizes = [16, 8], strides = [1, 1]} : vector<64x8xf32> to vector<16x8xf32>
    %85 = vector.extract_strided_slice %82 {offsets = [32, 0], sizes = [16, 8], strides = [1, 1]} : vector<64x8xf32> to vector<16x8xf32>
    %86 = vector.extract_strided_slice %82 {offsets = [48, 0], sizes = [16, 8], strides = [1, 1]} : vector<64x8xf32> to vector<16x8xf32>
    %87 = tpu.concatenate %83, %84, %85, %86 in 1 : vector<16x8xf32>, vector<16x8xf32>, vector<16x8xf32>, vector<16x8xf32> -> vector<16x32xf32>
    %cst_54 = arith.constant dense<0.000000e+00> : vector<16x32xf32>
    %88 = tpu.matmul %87, %33, %cst_54 {dimension_numbers = #tpu.dot_dimension_numbers<[1], [0], [0], [1], [0, 0, 1, 1], [], []>} : vector<16x32xf32>, vector<32x32xf32>, vector<16x32xf32> -> vector<16x32xf32>
    %89 = vector.broadcast %34 : vector<1x32xf32> to vector<16x32xf32>
    %90 = arith.addf %88, %89 : vector<16x32xf32>
    %91 = arith.addf %26, %90 : vector<16x32xf32>
    %cst_55 = arith.constant dense<0.000000e+00> : vector<16xf32>
    %92 = vector.multi_reduction <add>, %91, %cst_55 [1] : vector<16x32xf32> to vector<16xf32>
    %93 = vector.shape_cast %92 : vector<16xf32> to vector<16x1xf32>
    %cst_56 = arith.constant 3.200000e+01 : f32
    %94 = vector.broadcast %cst_56 : f32 to vector<16x1xf32>
    %95 = arith.divf %93, %94 : vector<16x1xf32>
    %96 = vector.broadcast %95 : vector<16x1xf32> to vector<16x32xf32>
    %97 = arith.subf %91, %96 : vector<16x32xf32>
    %98 = arith.mulf %97, %97 : vector<16x32xf32>
    %cst_57 = arith.constant dense<0.000000e+00> : vector<16xf32>
    %99 = vector.multi_reduction <add>, %98, %cst_57 [1] : vector<16x32xf32> to vector<16xf32>
    %100 = vector.shape_cast %99 : vector<16xf32> to vector<16x1xf32>
    %cst_58 = arith.constant 3.200000e+01 : f32
    %101 = vector.broadcast %cst_58 : f32 to vector<16x1xf32>
    %102 = arith.divf %100, %101 : vector<16x1xf32>
    %103 = vector.broadcast %95 : vector<16x1xf32> to vector<16x32xf32>
    %104 = arith.subf %91, %103 : vector<16x32xf32>
    %cst_59 = arith.constant 9.99999996E-13 : f32
    %105 = vector.broadcast %cst_59 : f32 to vector<16x1xf32>
    %106 = arith.addf %102, %105 : vector<16x1xf32>
    %107 = math.rsqrt %106 : vector<16x1xf32>
    %108 = vector.broadcast %107 : vector<16x1xf32> to vector<16x32xf32>
    %109 = arith.mulf %104, %108 : vector<16x32xf32>
    %110 = vector.broadcast %35 : vector<1x32xf32> to vector<16x32xf32>
    %111 = arith.mulf %109, %110 : vector<16x32xf32>
    %112 = vector.broadcast %36 : vector<1x32xf32> to vector<16x32xf32>
    %113 = arith.addf %111, %112 : vector<16x32xf32>
    %cst_60 = arith.constant dense<0.000000e+00> : vector<16x64xf32>
    %114 = tpu.matmul %113, %37, %cst_60 {dimension_numbers = #tpu.dot_dimension_numbers<[1], [0], [0], [1], [0, 0, 1, 1], [], []>} : vector<16x32xf32>, vector<32x64xf32>, vector<16x64xf32> -> vector<16x64xf32>
    %115 = vector.broadcast %38 : vector<1x64xf32> to vector<16x64xf32>
    %116 = arith.addf %114, %115 : vector<16x64xf32>
    %cst_61 = arith.constant 5.000000e-01 : f32
    %117 = vector.broadcast %cst_61 : f32 to vector<16x64xf32>
    %118 = arith.mulf %117, %116 : vector<16x64xf32>
    %cst_62 = arith.constant 4.471500e-02 : f32
    %119 = vector.broadcast %cst_62 : f32 to vector<16x64xf32>
    %120 = arith.mulf %119, %116 : vector<16x64xf32>
    %121 = arith.mulf %120, %116 : vector<16x64xf32>
    %122 = arith.mulf %121, %116 : vector<16x64xf32>
    %123 = arith.addf %116, %122 : vector<16x64xf32>
    %cst_63 = arith.constant 0.797884583 : f32
    %124 = vector.broadcast %cst_63 : f32 to vector<16x64xf32>
    %125 = arith.mulf %124, %123 : vector<16x64xf32>
    %126 = math.tanh %125 : vector<16x64xf32>
    %cst_64 = arith.constant 1.000000e+00 : f32
    %127 = vector.broadcast %cst_64 : f32 to vector<16x64xf32>
    %128 = arith.addf %127, %126 : vector<16x64xf32>
    %129 = arith.mulf %118, %128 : vector<16x64xf32>
    %cst_65 = arith.constant dense<0.000000e+00> : vector<16x32xf32>
    %130 = tpu.matmul %129, %39, %cst_65 {dimension_numbers = #tpu.dot_dimension_numbers<[1], [0], [0], [1], [0, 0, 1, 1], [], []>} : vector<16x64xf32>, vector<64x32xf32>, vector<16x32xf32> -> vector<16x32xf32>
    %131 = arith.addf %113, %130 : vector<16x32xf32>
    %132 = vector.broadcast %40 : vector<1x32xf32> to vector<16x32xf32>
    %133 = arith.addf %131, %132 : vector<16x32xf32>
    %cst_66 = arith.constant dense<0.000000e+00> : vector<16xf32>
    %134 = vector.multi_reduction <add>, %133, %cst_66 [1] : vector<16x32xf32> to vector<16xf32>
    %135 = vector.shape_cast %134 : vector<16xf32> to vector<16x1xf32>
    %cst_67 = arith.constant 3.200000e+01 : f32
    %136 = vector.broadcast %cst_67 : f32 to vector<16x1xf32>
    %137 = arith.divf %135, %136 : vector<16x1xf32>
    %138 = vector.broadcast %137 : vector<16x1xf32> to vector<16x32xf32>
    %139 = arith.subf %133, %138 : vector<16x32xf32>
    %140 = arith.mulf %139, %139 : vector<16x32xf32>
    %cst_68 = arith.constant dense<0.000000e+00> : vector<16xf32>
    %141 = vector.multi_reduction <add>, %140, %cst_68 [1] : vector<16x32xf32> to vector<16xf32>
    %142 = vector.shape_cast %141 : vector<16xf32> to vector<16x1xf32>
    %cst_69 = arith.constant 3.200000e+01 : f32
    %143 = vector.broadcast %cst_69 : f32 to vector<16x1xf32>
    %144 = arith.divf %142, %143 : vector<16x1xf32>
    %145 = vector.broadcast %137 : vector<16x1xf32> to vector<16x32xf32>
    %146 = arith.subf %133, %145 : vector<16x32xf32>
    %cst_70 = arith.constant 9.99999996E-13 : f32
    %147 = vector.broadcast %cst_70 : f32 to vector<16x1xf32>
    %148 = arith.addf %144, %147 : vector<16x1xf32>
    %149 = math.rsqrt %148 : vector<16x1xf32>
    %150 = vector.broadcast %149 : vector<16x1xf32> to vector<16x32xf32>
    %151 = arith.mulf %146, %150 : vector<16x32xf32>
    %152 = vector.broadcast %41 : vector<1x32xf32> to vector<16x32xf32>
    %153 = arith.mulf %151, %152 : vector<16x32xf32>
    %154 = vector.broadcast %42 : vector<1x32xf32> to vector<16x32xf32>
    %155 = arith.addf %153, %154 : vector<16x32xf32>
    %c0_71 = arith.constant 0 : index
    %c0_72 = arith.constant 0 : index
    %156 = vector.load %arg21[%c0_71, %c0_72] : memref<32x32xf32, #tpu.memory_space<vmem>>, vector<32x32xf32>
    %c0_73 = arith.constant 0 : index
    %c0_74 = arith.constant 0 : index
    %157 = vector.load %arg22[%c0_73, %c0_74] : memref<1x32xf32, #tpu.memory_space<vmem>>, vector<1x32xf32>
    %c0_75 = arith.constant 0 : index
    %c0_76 = arith.constant 0 : index
    %158 = vector.load %arg23[%c0_75, %c0_76] : memref<32x32xf32, #tpu.memory_space<vmem>>, vector<32x32xf32>
    %c0_77 = arith.constant 0 : index
    %c0_78 = arith.constant 0 : index
    %159 = vector.load %arg24[%c0_77, %c0_78] : memref<1x32xf32, #tpu.memory_space<vmem>>, vector<1x32xf32>
    %c0_79 = arith.constant 0 : index
    %c0_80 = arith.constant 0 : index
    %160 = vector.load %arg25[%c0_79, %c0_80] : memref<32x32xf32, #tpu.memory_space<vmem>>, vector<32x32xf32>
    %c0_81 = arith.constant 0 : index
    %c0_82 = arith.constant 0 : index
    %161 = vector.load %arg26[%c0_81, %c0_82] : memref<1x32xf32, #tpu.memory_space<vmem>>, vector<1x32xf32>
    %c0_83 = arith.constant 0 : index
    %c0_84 = arith.constant 0 : index
    %162 = vector.load %arg27[%c0_83, %c0_84] : memref<32x32xf32, #tpu.memory_space<vmem>>, vector<32x32xf32>
    %c0_85 = arith.constant 0 : index
    %c0_86 = arith.constant 0 : index
    %163 = vector.load %arg28[%c0_85, %c0_86] : memref<1x32xf32, #tpu.memory_space<vmem>>, vector<1x32xf32>
    %c0_87 = arith.constant 0 : index
    %c0_88 = arith.constant 0 : index
    %164 = vector.load %arg29[%c0_87, %c0_88] : memref<1x32xf32, #tpu.memory_space<vmem>>, vector<1x32xf32>
    %c0_89 = arith.constant 0 : index
    %c0_90 = arith.constant 0 : index
    %165 = vector.load %arg30[%c0_89, %c0_90] : memref<1x32xf32, #tpu.memory_space<vmem>>, vector<1x32xf32>
    %c0_91 = arith.constant 0 : index
    %c0_92 = arith.constant 0 : index
    %166 = vector.load %arg31[%c0_91, %c0_92] : memref<32x64xf32, #tpu.memory_space<vmem>>, vector<32x64xf32>
    %c0_93 = arith.constant 0 : index
    %c0_94 = arith.constant 0 : index
    %167 = vector.load %arg32[%c0_93, %c0_94] : memref<1x64xf32, #tpu.memory_space<vmem>>, vector<1x64xf32>
    %c0_95 = arith.constant 0 : index
    %c0_96 = arith.constant 0 : index
    %168 = vector.load %arg33[%c0_95, %c0_96] : memref<64x32xf32, #tpu.memory_space<vmem>>, vector<64x32xf32>
    %c0_97 = arith.constant 0 : index
    %c0_98 = arith.constant 0 : index
    %169 = vector.load %arg34[%c0_97, %c0_98] : memref<1x32xf32, #tpu.memory_space<vmem>>, vector<1x32xf32>
    %c0_99 = arith.constant 0 : index
    %c0_100 = arith.constant 0 : index
    %170 = vector.load %arg35[%c0_99, %c0_100] : memref<1x32xf32, #tpu.memory_space<vmem>>, vector<1x32xf32>
    %c0_101 = arith.constant 0 : index
    %c0_102 = arith.constant 0 : index
    %171 = vector.load %arg36[%c0_101, %c0_102] : memref<1x32xf32, #tpu.memory_space<vmem>>, vector<1x32xf32>
    %cst_103 = arith.constant dense<0.000000e+00> : vector<16x32xf32>
    %172 = tpu.matmul %155, %156, %cst_103 {dimension_numbers = #tpu.dot_dimension_numbers<[1], [0], [0], [1], [0, 0, 1, 1], [], []>} : vector<16x32xf32>, vector<32x32xf32>, vector<16x32xf32> -> vector<16x32xf32>
    %173 = vector.broadcast %157 : vector<1x32xf32> to vector<16x32xf32>
    %174 = arith.addf %172, %173 : vector<16x32xf32>
    %cst_104 = arith.constant dense<0.000000e+00> : vector<16x32xf32>
    %175 = tpu.matmul %155, %158, %cst_104 {dimension_numbers = #tpu.dot_dimension_numbers<[1], [0], [0], [1], [0, 0, 1, 1], [], []>} : vector<16x32xf32>, vector<32x32xf32>, vector<16x32xf32> -> vector<16x32xf32>
    %176 = vector.broadcast %159 : vector<1x32xf32> to vector<16x32xf32>
    %177 = arith.addf %175, %176 : vector<16x32xf32>
    %cst_105 = arith.constant dense<0.000000e+00> : vector<16x32xf32>
    %178 = tpu.matmul %155, %160, %cst_105 {dimension_numbers = #tpu.dot_dimension_numbers<[1], [0], [0], [1], [0, 0, 1, 1], [], []>} : vector<16x32xf32>, vector<32x32xf32>, vector<16x32xf32> -> vector<16x32xf32>
    %179 = vector.broadcast %161 : vector<1x32xf32> to vector<16x32xf32>
    %180 = arith.addf %178, %179 : vector<16x32xf32>
    %181 = vector.extract_strided_slice %174 {offsets = [0, 0], sizes = [16, 8], strides = [1, 1]} : vector<16x32xf32> to vector<16x8xf32>
    %182 = vector.extract_strided_slice %174 {offsets = [0, 8], sizes = [16, 8], strides = [1, 1]} : vector<16x32xf32> to vector<16x8xf32>
    %183 = vector.extract_strided_slice %174 {offsets = [0, 16], sizes = [16, 8], strides = [1, 1]} : vector<16x32xf32> to vector<16x8xf32>
    %184 = vector.extract_strided_slice %174 {offsets = [0, 24], sizes = [16, 8], strides = [1, 1]} : vector<16x32xf32> to vector<16x8xf32>
    %185 = tpu.concatenate %181, %182, %183, %184 in 0 : vector<16x8xf32>, vector<16x8xf32>, vector<16x8xf32>, vector<16x8xf32> -> vector<64x8xf32>
    %186 = vector.extract_strided_slice %177 {offsets = [0, 0], sizes = [16, 8], strides = [1, 1]} : vector<16x32xf32> to vector<16x8xf32>
    %187 = vector.extract_strided_slice %177 {offsets = [0, 8], sizes = [16, 8], strides = [1, 1]} : vector<16x32xf32> to vector<16x8xf32>
    %188 = vector.extract_strided_slice %177 {offsets = [0, 16], sizes = [16, 8], strides = [1, 1]} : vector<16x32xf32> to vector<16x8xf32>
    %189 = vector.extract_strided_slice %177 {offsets = [0, 24], sizes = [16, 8], strides = [1, 1]} : vector<16x32xf32> to vector<16x8xf32>
    %190 = tpu.concatenate %186, %187, %188, %189 in 0 : vector<16x8xf32>, vector<16x8xf32>, vector<16x8xf32>, vector<16x8xf32> -> vector<64x8xf32>
    %191 = vector.extract_strided_slice %180 {offsets = [0, 0], sizes = [16, 8], strides = [1, 1]} : vector<16x32xf32> to vector<16x8xf32>
    %192 = vector.extract_strided_slice %180 {offsets = [0, 8], sizes = [16, 8], strides = [1, 1]} : vector<16x32xf32> to vector<16x8xf32>
    %193 = vector.extract_strided_slice %180 {offsets = [0, 16], sizes = [16, 8], strides = [1, 1]} : vector<16x32xf32> to vector<16x8xf32>
    %194 = vector.extract_strided_slice %180 {offsets = [0, 24], sizes = [16, 8], strides = [1, 1]} : vector<16x32xf32> to vector<16x8xf32>
    %195 = tpu.concatenate %191, %192, %193, %194 in 0 : vector<16x8xf32>, vector<16x8xf32>, vector<16x8xf32>, vector<16x8xf32> -> vector<64x8xf32>
    %cst_106 = arith.constant dense<0.000000e+00> : vector<64x64xf32>
    %196 = tpu.matmul %185, %190, %cst_106 {dimension_numbers = #tpu.dot_dimension_numbers<[1], [1], [0], [0], [0, 0, 1, 0], [], []>} : vector<64x8xf32>, vector<64x8xf32>, vector<64x64xf32> -> vector<64x64xf32>
    %cst_107 = arith.constant 0.353553385 : f32
    %197 = vector.broadcast %cst_107 : f32 to vector<64x64xf32>
    %198 = arith.mulf %196, %197 : vector<64x64xf32>
    %199 = arith.addf %198, %1 : vector<64x64xf32>
    %cst_108 = arith.constant dense<0xFF800000> : vector<64xf32>
    %200 = vector.multi_reduction <maximumf>, %199, %cst_108 [1] : vector<64x64xf32> to vector<64xf32>
    %cst_109 = arith.constant 0xFF800000 : f32
    %201 = vector.broadcast %cst_109 : f32 to vector<64xf32>
    %202 = arith.maximumf %201, %200 : vector<64xf32>
    %203 = vector.shape_cast %202 : vector<64xf32> to vector<64x1xf32>
    %204 = vector.broadcast %203 : vector<64x1xf32> to vector<64x64xf32>
    %205 = arith.subf %199, %204 : vector<64x64xf32>
    %206 = math.exp %205 : vector<64x64xf32>
    %cst_110 = arith.constant dense<0.000000e+00> : vector<64xf32>
    %207 = vector.multi_reduction <add>, %206, %cst_110 [1] : vector<64x64xf32> to vector<64xf32>
    %208 = vector.shape_cast %207 : vector<64xf32> to vector<64x1xf32>
    %209 = vector.broadcast %208 : vector<64x1xf32> to vector<64x64xf32>
    %210 = arith.divf %206, %209 : vector<64x64xf32>
    %cst_111 = arith.constant dense<0.000000e+00> : vector<64x8xf32>
    %211 = tpu.matmul %210, %195, %cst_111 {dimension_numbers = #tpu.dot_dimension_numbers<[1], [0], [0], [1], [0, 0, 1, 1], [], []>} : vector<64x64xf32>, vector<64x8xf32>, vector<64x8xf32> -> vector<64x8xf32>
    %212 = vector.extract_strided_slice %211 {offsets = [0, 0], sizes = [16, 8], strides = [1, 1]} : vector<64x8xf32> to vector<16x8xf32>
    %213 = vector.extract_strided_slice %211 {offsets = [16, 0], sizes = [16, 8], strides = [1, 1]} : vector<64x8xf32> to vector<16x8xf32>
    %214 = vector.extract_strided_slice %211 {offsets = [32, 0], sizes = [16, 8], strides = [1, 1]} : vector<64x8xf32> to vector<16x8xf32>
    %215 = vector.extract_strided_slice %211 {offsets = [48, 0], sizes = [16, 8], strides = [1, 1]} : vector<64x8xf32> to vector<16x8xf32>
    %216 = tpu.concatenate %212, %213, %214, %215 in 1 : vector<16x8xf32>, vector<16x8xf32>, vector<16x8xf32>, vector<16x8xf32> -> vector<16x32xf32>
    %cst_112 = arith.constant dense<0.000000e+00> : vector<16x32xf32>
    %217 = tpu.matmul %216, %162, %cst_112 {dimension_numbers = #tpu.dot_dimension_numbers<[1], [0], [0], [1], [0, 0, 1, 1], [], []>} : vector<16x32xf32>, vector<32x32xf32>, vector<16x32xf32> -> vector<16x32xf32>
    %218 = vector.broadcast %163 : vector<1x32xf32> to vector<16x32xf32>
    %219 = arith.addf %217, %218 : vector<16x32xf32>
    %220 = arith.addf %155, %219 : vector<16x32xf32>
    %cst_113 = arith.constant dense<0.000000e+00> : vector<16xf32>
    %221 = vector.multi_reduction <add>, %220, %cst_113 [1] : vector<16x32xf32> to vector<16xf32>
    %222 = vector.shape_cast %221 : vector<16xf32> to vector<16x1xf32>
    %cst_114 = arith.constant 3.200000e+01 : f32
    %223 = vector.broadcast %cst_114 : f32 to vector<16x1xf32>
    %224 = arith.divf %222, %223 : vector<16x1xf32>
    %225 = vector.broadcast %224 : vector<16x1xf32> to vector<16x32xf32>
    %226 = arith.subf %220, %225 : vector<16x32xf32>
    %227 = arith.mulf %226, %226 : vector<16x32xf32>
    %cst_115 = arith.constant dense<0.000000e+00> : vector<16xf32>
    %228 = vector.multi_reduction <add>, %227, %cst_115 [1] : vector<16x32xf32> to vector<16xf32>
    %229 = vector.shape_cast %228 : vector<16xf32> to vector<16x1xf32>
    %cst_116 = arith.constant 3.200000e+01 : f32
    %230 = vector.broadcast %cst_116 : f32 to vector<16x1xf32>
    %231 = arith.divf %229, %230 : vector<16x1xf32>
    %232 = vector.broadcast %224 : vector<16x1xf32> to vector<16x32xf32>
    %233 = arith.subf %220, %232 : vector<16x32xf32>
    %cst_117 = arith.constant 9.99999996E-13 : f32
    %234 = vector.broadcast %cst_117 : f32 to vector<16x1xf32>
    %235 = arith.addf %231, %234 : vector<16x1xf32>
    %236 = math.rsqrt %235 : vector<16x1xf32>
    %237 = vector.broadcast %236 : vector<16x1xf32> to vector<16x32xf32>
    %238 = arith.mulf %233, %237 : vector<16x32xf32>
    %239 = vector.broadcast %164 : vector<1x32xf32> to vector<16x32xf32>
    %240 = arith.mulf %238, %239 : vector<16x32xf32>
    %241 = vector.broadcast %165 : vector<1x32xf32> to vector<16x32xf32>
    %242 = arith.addf %240, %241 : vector<16x32xf32>
    %cst_118 = arith.constant dense<0.000000e+00> : vector<16x64xf32>
    %243 = tpu.matmul %242, %166, %cst_118 {dimension_numbers = #tpu.dot_dimension_numbers<[1], [0], [0], [1], [0, 0, 1, 1], [], []>} : vector<16x32xf32>, vector<32x64xf32>, vector<16x64xf32> -> vector<16x64xf32>
    %244 = vector.broadcast %167 : vector<1x64xf32> to vector<16x64xf32>
    %245 = arith.addf %243, %244 : vector<16x64xf32>
    %cst_119 = arith.constant 5.000000e-01 : f32
    %246 = vector.broadcast %cst_119 : f32 to vector<16x64xf32>
    %247 = arith.mulf %246, %245 : vector<16x64xf32>
    %cst_120 = arith.constant 4.471500e-02 : f32
    %248 = vector.broadcast %cst_120 : f32 to vector<16x64xf32>
    %249 = arith.mulf %248, %245 : vector<16x64xf32>
    %250 = arith.mulf %249, %245 : vector<16x64xf32>
    %251 = arith.mulf %250, %245 : vector<16x64xf32>
    %252 = arith.addf %245, %251 : vector<16x64xf32>
    %cst_121 = arith.constant 0.797884583 : f32
    %253 = vector.broadcast %cst_121 : f32 to vector<16x64xf32>
    %254 = arith.mulf %253, %252 : vector<16x64xf32>
    %255 = math.tanh %254 : vector<16x64xf32>
    %cst_122 = arith.constant 1.000000e+00 : f32
    %256 = vector.broadcast %cst_122 : f32 to vector<16x64xf32>
    %257 = arith.addf %256, %255 : vector<16x64xf32>
    %258 = arith.mulf %247, %257 : vector<16x64xf32>
    %cst_123 = arith.constant dense<0.000000e+00> : vector<16x32xf32>
    %259 = tpu.matmul %258, %168, %cst_123 {dimension_numbers = #tpu.dot_dimension_numbers<[1], [0], [0], [1], [0, 0, 1, 1], [], []>} : vector<16x64xf32>, vector<64x32xf32>, vector<16x32xf32> -> vector<16x32xf32>
    %260 = arith.addf %242, %259 : vector<16x32xf32>
    %261 = vector.broadcast %169 : vector<1x32xf32> to vector<16x32xf32>
    %262 = arith.addf %260, %261 : vector<16x32xf32>
    %cst_124 = arith.constant dense<0.000000e+00> : vector<16xf32>
    %263 = vector.multi_reduction <add>, %262, %cst_124 [1] : vector<16x32xf32> to vector<16xf32>
    %264 = vector.shape_cast %263 : vector<16xf32> to vector<16x1xf32>
    %cst_125 = arith.constant 3.200000e+01 : f32
    %265 = vector.broadcast %cst_125 : f32 to vector<16x1xf32>
    %266 = arith.divf %264, %265 : vector<16x1xf32>
    %267 = vector.broadcast %266 : vector<16x1xf32> to vector<16x32xf32>
    %268 = arith.subf %262, %267 : vector<16x32xf32>
    %269 = arith.mulf %268, %268 : vector<16x32xf32>
    %cst_126 = arith.constant dense<0.000000e+00> : vector<16xf32>
    %270 = vector.multi_reduction <add>, %269, %cst_126 [1] : vector<16x32xf32> to vector<16xf32>
    %271 = vector.shape_cast %270 : vector<16xf32> to vector<16x1xf32>
    %cst_127 = arith.constant 3.200000e+01 : f32
    %272 = vector.broadcast %cst_127 : f32 to vector<16x1xf32>
    %273 = arith.divf %271, %272 : vector<16x1xf32>
    %274 = vector.broadcast %266 : vector<16x1xf32> to vector<16x32xf32>
    %275 = arith.subf %262, %274 : vector<16x32xf32>
    %cst_128 = arith.constant 9.99999996E-13 : f32
    %276 = vector.broadcast %cst_128 : f32 to vector<16x1xf32>
    %277 = arith.addf %273, %276 : vector<16x1xf32>
    %278 = math.rsqrt %277 : vector<16x1xf32>
    %279 = vector.broadcast %278 : vector<16x1xf32> to vector<16x32xf32>
    %280 = arith.mulf %275, %279 : vector<16x32xf32>
    %281 = vector.broadcast %170 : vector<1x32xf32> to vector<16x32xf32>
    %282 = arith.mulf %280, %281 : vector<16x32xf32>
    %283 = vector.broadcast %171 : vector<1x32xf32> to vector<16x32xf32>
    %284 = arith.addf %282, %283 : vector<16x32xf32>
    %285 = tpu.iota {dimensions = array<i32: 1>} : vector<1x128xi32>
    %c16_i32 = arith.constant 16 : i32
    %286 = vector.broadcast %c16_i32 : i32 to vector<1x128xi32>
    %287 = arith.andi %285, %286 : vector<1x128xi32>
    %c0_i32 = arith.constant 0 : i32
    %288 = vector.broadcast %c0_i32 : i32 to vector<1x128xi32>
    %289 = arith.cmpi eq, %287, %288 : vector<1x128xi32>
    %c0_129 = arith.constant 0 : index
    %c0_130 = arith.constant 0 : index
    %290 = vector.load %arg38[%c0_129, %c0_130] : memref<32x128xf32, #tpu.memory_space<vmem>>, vector<32x128xf32>
    %c0_131 = arith.constant 0 : index
    %c0_132 = arith.constant 0 : index
    %291 = vector.load %arg37[%c0_131, %c0_132] : memref<32x128xf32, #tpu.memory_space<vmem>>, vector<32x128xf32>
    %cst_133 = arith.constant dense<0.000000e+00> : vector<16x128xf32>
    %292 = tpu.matmul %284, %291, %cst_133 {dimension_numbers = #tpu.dot_dimension_numbers<[1], [0], [0], [1], [0, 0, 1, 1], [], []>} : vector<16x32xf32>, vector<32x128xf32>, vector<16x128xf32> -> vector<16x128xf32>
    %c0_134 = arith.constant 0 : index
    %c0_135 = arith.constant 0 : index
    %293 = vector.load %arg39[%c0_134, %c0_135] : memref<1x128xf32, #tpu.memory_space<vmem>>, vector<1x128xf32>
    %294 = vector.broadcast %293 : vector<1x128xf32> to vector<16x128xf32>
    %295 = arith.addf %292, %294 : vector<16x128xf32>
    %296 = vector.extract_strided_slice %295 {offsets = [14, 0], sizes = [2, 128], strides = [1, 1]} : vector<16x128xf32> to vector<2x128xf32>
    %297 = vector.extract_strided_slice %295 {offsets = [12, 0], sizes = [2, 128], strides = [1, 1]} : vector<16x128xf32> to vector<2x128xf32>
    %298 = vector.extract_strided_slice %295 {offsets = [10, 0], sizes = [2, 128], strides = [1, 1]} : vector<16x128xf32> to vector<2x128xf32>
    %299 = vector.extract_strided_slice %295 {offsets = [8, 0], sizes = [2, 128], strides = [1, 1]} : vector<16x128xf32> to vector<2x128xf32>
    %300 = vector.extract_strided_slice %295 {offsets = [6, 0], sizes = [2, 128], strides = [1, 1]} : vector<16x128xf32> to vector<2x128xf32>
    %301 = vector.extract_strided_slice %295 {offsets = [4, 0], sizes = [2, 128], strides = [1, 1]} : vector<16x128xf32> to vector<2x128xf32>
    %302 = vector.extract_strided_slice %295 {offsets = [2, 0], sizes = [2, 128], strides = [1, 1]} : vector<16x128xf32> to vector<2x128xf32>
    %303 = vector.extract_strided_slice %295 {offsets = [0, 0], sizes = [2, 128], strides = [1, 1]} : vector<16x128xf32> to vector<2x128xf32>
    %304 = tpu.concatenate %296, %297, %298, %299, %300, %301, %302, %303 in 0 : vector<2x128xf32>, vector<2x128xf32>, vector<2x128xf32>, vector<2x128xf32>, vector<2x128xf32>, vector<2x128xf32>, vector<2x128xf32>, vector<2x128xf32> -> vector<16x128xf32>
    %305 = vector.shape_cast %289 : vector<1x128xi1> to vector<1x128xi1>
    %306 = vector.broadcast %305 : vector<1x128xi1> to vector<16x128xi1>
    %307 = arith.select %306, %295, %304 : vector<16x128xi1>, vector<16x128xf32>
    %cst_136 = arith.constant 0.000000e+00 : f32
    %308 = vector.broadcast %cst_136 : f32 to vector<2x32xf32>
    %cst_137 = arith.constant 0.000000e+00 : f32
    %309 = vector.broadcast %cst_137 : f32 to vector<2x32xf32>
    %310 = vector.extract_strided_slice %307 {offsets = [0, 0], sizes = [2, 128], strides = [1, 1]} : vector<16x128xf32> to vector<2x128xf32>
    %cst_138 = arith.constant dense<0.000000e+00> : vector<2x128xf32>
    %311 = tpu.matmul %308, %290, %cst_138 {dimension_numbers = #tpu.dot_dimension_numbers<[1], [0], [0], [1], [0, 0, 1, 1], [], []>} : vector<2x32xf32>, vector<32x128xf32>, vector<2x128xf32> -> vector<2x128xf32>
    %312 = arith.addf %310, %311 : vector<2x128xf32>
    %313 = vector.extract_strided_slice %312 {offsets = [0, 0], sizes = [2, 96], strides = [1, 1]} : vector<2x128xf32> to vector<2x96xf32>
    %314 = arith.negf %313 : vector<2x96xf32>
    %315 = math.exp %314 : vector<2x96xf32>
    %cst_139 = arith.constant 1.000000e+00 : f32
    %316 = vector.broadcast %cst_139 : f32 to vector<2x96xf32>
    %317 = arith.addf %316, %315 : vector<2x96xf32>
    %318 = arith.divf %316, %317 : vector<2x96xf32>
    %319 = vector.extract_strided_slice %312 {offsets = [0, 96], sizes = [2, 32], strides = [1, 1]} : vector<2x128xf32> to vector<2x32xf32>
    %320 = math.tanh %319 : vector<2x32xf32>
    %321 = vector.extract_strided_slice %318 {offsets = [0, 0], sizes = [2, 32], strides = [1, 1]} : vector<2x96xf32> to vector<2x32xf32>
    %322 = vector.extract_strided_slice %318 {offsets = [0, 32], sizes = [2, 32], strides = [1, 1]} : vector<2x96xf32> to vector<2x32xf32>
    %323 = vector.extract_strided_slice %318 {offsets = [0, 64], sizes = [2, 32], strides = [1, 1]} : vector<2x96xf32> to vector<2x32xf32>
    %324 = arith.mulf %322, %309 : vector<2x32xf32>
    %325 = arith.mulf %321, %320 : vector<2x32xf32>
    %326 = arith.addf %324, %325 : vector<2x32xf32>
    %327 = math.tanh %326 : vector<2x32xf32>
    %328 = arith.mulf %323, %327 : vector<2x32xf32>
    %329 = vector.extract_strided_slice %307 {offsets = [2, 0], sizes = [2, 128], strides = [1, 1]} : vector<16x128xf32> to vector<2x128xf32>
    %cst_140 = arith.constant dense<0.000000e+00> : vector<2x128xf32>
    %330 = tpu.matmul %328, %290, %cst_140 {dimension_numbers = #tpu.dot_dimension_numbers<[1], [0], [0], [1], [0, 0, 1, 1], [], []>} : vector<2x32xf32>, vector<32x128xf32>, vector<2x128xf32> -> vector<2x128xf32>
    %331 = arith.addf %329, %330 : vector<2x128xf32>
    %332 = vector.extract_strided_slice %331 {offsets = [0, 0], sizes = [2, 96], strides = [1, 1]} : vector<2x128xf32> to vector<2x96xf32>
    %333 = arith.negf %332 : vector<2x96xf32>
    %334 = math.exp %333 : vector<2x96xf32>
    %cst_141 = arith.constant 1.000000e+00 : f32
    %335 = vector.broadcast %cst_141 : f32 to vector<2x96xf32>
    %336 = arith.addf %335, %334 : vector<2x96xf32>
    %337 = arith.divf %335, %336 : vector<2x96xf32>
    %338 = vector.extract_strided_slice %331 {offsets = [0, 96], sizes = [2, 32], strides = [1, 1]} : vector<2x128xf32> to vector<2x32xf32>
    %339 = math.tanh %338 : vector<2x32xf32>
    %340 = vector.extract_strided_slice %337 {offsets = [0, 0], sizes = [2, 32], strides = [1, 1]} : vector<2x96xf32> to vector<2x32xf32>
    %341 = vector.extract_strided_slice %337 {offsets = [0, 32], sizes = [2, 32], strides = [1, 1]} : vector<2x96xf32> to vector<2x32xf32>
    %342 = vector.extract_strided_slice %337 {offsets = [0, 64], sizes = [2, 32], strides = [1, 1]} : vector<2x96xf32> to vector<2x32xf32>
    %343 = arith.mulf %341, %326 : vector<2x32xf32>
    %344 = arith.mulf %340, %339 : vector<2x32xf32>
    %345 = arith.addf %343, %344 : vector<2x32xf32>
    %346 = math.tanh %345 : vector<2x32xf32>
    %347 = arith.mulf %342, %346 : vector<2x32xf32>
    %348 = vector.extract_strided_slice %307 {offsets = [4, 0], sizes = [2, 128], strides = [1, 1]} : vector<16x128xf32> to vector<2x128xf32>
    %cst_142 = arith.constant dense<0.000000e+00> : vector<2x128xf32>
    %349 = tpu.matmul %347, %290, %cst_142 {dimension_numbers = #tpu.dot_dimension_numbers<[1], [0], [0], [1], [0, 0, 1, 1], [], []>} : vector<2x32xf32>, vector<32x128xf32>, vector<2x128xf32> -> vector<2x128xf32>
    %350 = arith.addf %348, %349 : vector<2x128xf32>
    %351 = vector.extract_strided_slice %350 {offsets = [0, 0], sizes = [2, 96], strides = [1, 1]} : vector<2x128xf32> to vector<2x96xf32>
    %352 = arith.negf %351 : vector<2x96xf32>
    %353 = math.exp %352 : vector<2x96xf32>
    %cst_143 = arith.constant 1.000000e+00 : f32
    %354 = vector.broadcast %cst_143 : f32 to vector<2x96xf32>
    %355 = arith.addf %354, %353 : vector<2x96xf32>
    %356 = arith.divf %354, %355 : vector<2x96xf32>
    %357 = vector.extract_strided_slice %350 {offsets = [0, 96], sizes = [2, 32], strides = [1, 1]} : vector<2x128xf32> to vector<2x32xf32>
    %358 = math.tanh %357 : vector<2x32xf32>
    %359 = vector.extract_strided_slice %356 {offsets = [0, 0], sizes = [2, 32], strides = [1, 1]} : vector<2x96xf32> to vector<2x32xf32>
    %360 = vector.extract_strided_slice %356 {offsets = [0, 32], sizes = [2, 32], strides = [1, 1]} : vector<2x96xf32> to vector<2x32xf32>
    %361 = vector.extract_strided_slice %356 {offsets = [0, 64], sizes = [2, 32], strides = [1, 1]} : vector<2x96xf32> to vector<2x32xf32>
    %362 = arith.mulf %360, %345 : vector<2x32xf32>
    %363 = arith.mulf %359, %358 : vector<2x32xf32>
    %364 = arith.addf %362, %363 : vector<2x32xf32>
    %365 = math.tanh %364 : vector<2x32xf32>
    %366 = arith.mulf %361, %365 : vector<2x32xf32>
    %367 = vector.extract_strided_slice %307 {offsets = [6, 0], sizes = [2, 128], strides = [1, 1]} : vector<16x128xf32> to vector<2x128xf32>
    %cst_144 = arith.constant dense<0.000000e+00> : vector<2x128xf32>
    %368 = tpu.matmul %366, %290, %cst_144 {dimension_numbers = #tpu.dot_dimension_numbers<[1], [0], [0], [1], [0, 0, 1, 1], [], []>} : vector<2x32xf32>, vector<32x128xf32>, vector<2x128xf32> -> vector<2x128xf32>
    %369 = arith.addf %367, %368 : vector<2x128xf32>
    %370 = vector.extract_strided_slice %369 {offsets = [0, 0], sizes = [2, 96], strides = [1, 1]} : vector<2x128xf32> to vector<2x96xf32>
    %371 = arith.negf %370 : vector<2x96xf32>
    %372 = math.exp %371 : vector<2x96xf32>
    %cst_145 = arith.constant 1.000000e+00 : f32
    %373 = vector.broadcast %cst_145 : f32 to vector<2x96xf32>
    %374 = arith.addf %373, %372 : vector<2x96xf32>
    %375 = arith.divf %373, %374 : vector<2x96xf32>
    %376 = vector.extract_strided_slice %369 {offsets = [0, 96], sizes = [2, 32], strides = [1, 1]} : vector<2x128xf32> to vector<2x32xf32>
    %377 = math.tanh %376 : vector<2x32xf32>
    %378 = vector.extract_strided_slice %375 {offsets = [0, 0], sizes = [2, 32], strides = [1, 1]} : vector<2x96xf32> to vector<2x32xf32>
    %379 = vector.extract_strided_slice %375 {offsets = [0, 32], sizes = [2, 32], strides = [1, 1]} : vector<2x96xf32> to vector<2x32xf32>
    %380 = vector.extract_strided_slice %375 {offsets = [0, 64], sizes = [2, 32], strides = [1, 1]} : vector<2x96xf32> to vector<2x32xf32>
    %381 = arith.mulf %379, %364 : vector<2x32xf32>
    %382 = arith.mulf %378, %377 : vector<2x32xf32>
    %383 = arith.addf %381, %382 : vector<2x32xf32>
    %384 = math.tanh %383 : vector<2x32xf32>
    %385 = arith.mulf %380, %384 : vector<2x32xf32>
    %386 = vector.extract_strided_slice %307 {offsets = [8, 0], sizes = [2, 128], strides = [1, 1]} : vector<16x128xf32> to vector<2x128xf32>
    %cst_146 = arith.constant dense<0.000000e+00> : vector<2x128xf32>
    %387 = tpu.matmul %385, %290, %cst_146 {dimension_numbers = #tpu.dot_dimension_numbers<[1], [0], [0], [1], [0, 0, 1, 1], [], []>} : vector<2x32xf32>, vector<32x128xf32>, vector<2x128xf32> -> vector<2x128xf32>
    %388 = arith.addf %386, %387 : vector<2x128xf32>
    %389 = vector.extract_strided_slice %388 {offsets = [0, 0], sizes = [2, 96], strides = [1, 1]} : vector<2x128xf32> to vector<2x96xf32>
    %390 = arith.negf %389 : vector<2x96xf32>
    %391 = math.exp %390 : vector<2x96xf32>
    %cst_147 = arith.constant 1.000000e+00 : f32
    %392 = vector.broadcast %cst_147 : f32 to vector<2x96xf32>
    %393 = arith.addf %392, %391 : vector<2x96xf32>
    %394 = arith.divf %392, %393 : vector<2x96xf32>
    %395 = vector.extract_strided_slice %388 {offsets = [0, 96], sizes = [2, 32], strides = [1, 1]} : vector<2x128xf32> to vector<2x32xf32>
    %396 = math.tanh %395 : vector<2x32xf32>
    %397 = vector.extract_strided_slice %394 {offsets = [0, 0], sizes = [2, 32], strides = [1, 1]} : vector<2x96xf32> to vector<2x32xf32>
    %398 = vector.extract_strided_slice %394 {offsets = [0, 32], sizes = [2, 32], strides = [1, 1]} : vector<2x96xf32> to vector<2x32xf32>
    %399 = vector.extract_strided_slice %394 {offsets = [0, 64], sizes = [2, 32], strides = [1, 1]} : vector<2x96xf32> to vector<2x32xf32>
    %400 = arith.mulf %398, %383 : vector<2x32xf32>
    %401 = arith.mulf %397, %396 : vector<2x32xf32>
    %402 = arith.addf %400, %401 : vector<2x32xf32>
    %403 = math.tanh %402 : vector<2x32xf32>
    %404 = arith.mulf %399, %403 : vector<2x32xf32>
    %405 = vector.extract_strided_slice %307 {offsets = [10, 0], sizes = [2, 128], strides = [1, 1]} : vector<16x128xf32> to vector<2x128xf32>
    %cst_148 = arith.constant dense<0.000000e+00> : vector<2x128xf32>
    %406 = tpu.matmul %404, %290, %cst_148 {dimension_numbers = #tpu.dot_dimension_numbers<[1], [0], [0], [1], [0, 0, 1, 1], [], []>} : vector<2x32xf32>, vector<32x128xf32>, vector<2x128xf32> -> vector<2x128xf32>
    %407 = arith.addf %405, %406 : vector<2x128xf32>
    %408 = vector.extract_strided_slice %407 {offsets = [0, 0], sizes = [2, 96], strides = [1, 1]} : vector<2x128xf32> to vector<2x96xf32>
    %409 = arith.negf %408 : vector<2x96xf32>
    %410 = math.exp %409 : vector<2x96xf32>
    %cst_149 = arith.constant 1.000000e+00 : f32
    %411 = vector.broadcast %cst_149 : f32 to vector<2x96xf32>
    %412 = arith.addf %411, %410 : vector<2x96xf32>
    %413 = arith.divf %411, %412 : vector<2x96xf32>
    %414 = vector.extract_strided_slice %407 {offsets = [0, 96], sizes = [2, 32], strides = [1, 1]} : vector<2x128xf32> to vector<2x32xf32>
    %415 = math.tanh %414 : vector<2x32xf32>
    %416 = vector.extract_strided_slice %413 {offsets = [0, 0], sizes = [2, 32], strides = [1, 1]} : vector<2x96xf32> to vector<2x32xf32>
    %417 = vector.extract_strided_slice %413 {offsets = [0, 32], sizes = [2, 32], strides = [1, 1]} : vector<2x96xf32> to vector<2x32xf32>
    %418 = vector.extract_strided_slice %413 {offsets = [0, 64], sizes = [2, 32], strides = [1, 1]} : vector<2x96xf32> to vector<2x32xf32>
    %419 = arith.mulf %417, %402 : vector<2x32xf32>
    %420 = arith.mulf %416, %415 : vector<2x32xf32>
    %421 = arith.addf %419, %420 : vector<2x32xf32>
    %422 = math.tanh %421 : vector<2x32xf32>
    %423 = arith.mulf %418, %422 : vector<2x32xf32>
    %424 = vector.extract_strided_slice %307 {offsets = [12, 0], sizes = [2, 128], strides = [1, 1]} : vector<16x128xf32> to vector<2x128xf32>
    %cst_150 = arith.constant dense<0.000000e+00> : vector<2x128xf32>
    %425 = tpu.matmul %423, %290, %cst_150 {dimension_numbers = #tpu.dot_dimension_numbers<[1], [0], [0], [1], [0, 0, 1, 1], [], []>} : vector<2x32xf32>, vector<32x128xf32>, vector<2x128xf32> -> vector<2x128xf32>
    %426 = arith.addf %424, %425 : vector<2x128xf32>
    %427 = vector.extract_strided_slice %426 {offsets = [0, 0], sizes = [2, 96], strides = [1, 1]} : vector<2x128xf32> to vector<2x96xf32>
    %428 = arith.negf %427 : vector<2x96xf32>
    %429 = math.exp %428 : vector<2x96xf32>
    %cst_151 = arith.constant 1.000000e+00 : f32
    %430 = vector.broadcast %cst_151 : f32 to vector<2x96xf32>
    %431 = arith.addf %430, %429 : vector<2x96xf32>
    %432 = arith.divf %430, %431 : vector<2x96xf32>
    %433 = vector.extract_strided_slice %426 {offsets = [0, 96], sizes = [2, 32], strides = [1, 1]} : vector<2x128xf32> to vector<2x32xf32>
    %434 = math.tanh %433 : vector<2x32xf32>
    %435 = vector.extract_strided_slice %432 {offsets = [0, 0], sizes = [2, 32], strides = [1, 1]} : vector<2x96xf32> to vector<2x32xf32>
    %436 = vector.extract_strided_slice %432 {offsets = [0, 32], sizes = [2, 32], strides = [1, 1]} : vector<2x96xf32> to vector<2x32xf32>
    %437 = vector.extract_strided_slice %432 {offsets = [0, 64], sizes = [2, 32], strides = [1, 1]} : vector<2x96xf32> to vector<2x32xf32>
    %438 = arith.mulf %436, %421 : vector<2x32xf32>
    %439 = arith.mulf %435, %434 : vector<2x32xf32>
    %440 = arith.addf %438, %439 : vector<2x32xf32>
    %441 = math.tanh %440 : vector<2x32xf32>
    %442 = arith.mulf %437, %441 : vector<2x32xf32>
    %443 = vector.extract_strided_slice %307 {offsets = [14, 0], sizes = [2, 128], strides = [1, 1]} : vector<16x128xf32> to vector<2x128xf32>
    %cst_152 = arith.constant dense<0.000000e+00> : vector<2x128xf32>
    %444 = tpu.matmul %442, %290, %cst_152 {dimension_numbers = #tpu.dot_dimension_numbers<[1], [0], [0], [1], [0, 0, 1, 1], [], []>} : vector<2x32xf32>, vector<32x128xf32>, vector<2x128xf32> -> vector<2x128xf32>
    %445 = arith.addf %443, %444 : vector<2x128xf32>
    %446 = vector.extract_strided_slice %445 {offsets = [0, 0], sizes = [2, 96], strides = [1, 1]} : vector<2x128xf32> to vector<2x96xf32>
    %447 = arith.negf %446 : vector<2x96xf32>
    %448 = math.exp %447 : vector<2x96xf32>
    %cst_153 = arith.constant 1.000000e+00 : f32
    %449 = vector.broadcast %cst_153 : f32 to vector<2x96xf32>
    %450 = arith.addf %449, %448 : vector<2x96xf32>
    %451 = arith.divf %449, %450 : vector<2x96xf32>
    %452 = vector.extract_strided_slice %445 {offsets = [0, 96], sizes = [2, 32], strides = [1, 1]} : vector<2x128xf32> to vector<2x32xf32>
    %453 = math.tanh %452 : vector<2x32xf32>
    %454 = vector.extract_strided_slice %451 {offsets = [0, 0], sizes = [2, 32], strides = [1, 1]} : vector<2x96xf32> to vector<2x32xf32>
    %455 = vector.extract_strided_slice %451 {offsets = [0, 32], sizes = [2, 32], strides = [1, 1]} : vector<2x96xf32> to vector<2x32xf32>
    %456 = vector.extract_strided_slice %451 {offsets = [0, 64], sizes = [2, 32], strides = [1, 1]} : vector<2x96xf32> to vector<2x32xf32>
    %457 = arith.mulf %455, %440 : vector<2x32xf32>
    %458 = arith.mulf %454, %453 : vector<2x32xf32>
    %459 = arith.addf %457, %458 : vector<2x32xf32>
    %460 = math.tanh %459 : vector<2x32xf32>
    %461 = arith.mulf %456, %460 : vector<2x32xf32>
    %462 = vector.extract_strided_slice %328 {offsets = [0, 0], sizes = [2, 16], strides = [1, 1]} : vector<2x32xf32> to vector<2x16xf32>
    %463 = vector.extract_strided_slice %347 {offsets = [0, 0], sizes = [2, 16], strides = [1, 1]} : vector<2x32xf32> to vector<2x16xf32>
    %464 = vector.extract_strided_slice %366 {offsets = [0, 0], sizes = [2, 16], strides = [1, 1]} : vector<2x32xf32> to vector<2x16xf32>
    %465 = vector.extract_strided_slice %385 {offsets = [0, 0], sizes = [2, 16], strides = [1, 1]} : vector<2x32xf32> to vector<2x16xf32>
    %466 = vector.extract_strided_slice %404 {offsets = [0, 0], sizes = [2, 16], strides = [1, 1]} : vector<2x32xf32> to vector<2x16xf32>
    %467 = vector.extract_strided_slice %423 {offsets = [0, 0], sizes = [2, 16], strides = [1, 1]} : vector<2x32xf32> to vector<2x16xf32>
    %468 = vector.extract_strided_slice %442 {offsets = [0, 0], sizes = [2, 16], strides = [1, 1]} : vector<2x32xf32> to vector<2x16xf32>
    %469 = vector.extract_strided_slice %461 {offsets = [0, 0], sizes = [2, 16], strides = [1, 1]} : vector<2x32xf32> to vector<2x16xf32>
    %470 = tpu.concatenate %462, %463, %464, %465, %466, %467, %468, %469 in 0 : vector<2x16xf32>, vector<2x16xf32>, vector<2x16xf32>, vector<2x16xf32>, vector<2x16xf32>, vector<2x16xf32>, vector<2x16xf32>, vector<2x16xf32> -> vector<16x16xf32>
    %471 = vector.extract_strided_slice %461 {offsets = [0, 16], sizes = [2, 16], strides = [1, 1]} : vector<2x32xf32> to vector<2x16xf32>
    %472 = vector.extract_strided_slice %442 {offsets = [0, 16], sizes = [2, 16], strides = [1, 1]} : vector<2x32xf32> to vector<2x16xf32>
    %473 = vector.extract_strided_slice %423 {offsets = [0, 16], sizes = [2, 16], strides = [1, 1]} : vector<2x32xf32> to vector<2x16xf32>
    %474 = vector.extract_strided_slice %404 {offsets = [0, 16], sizes = [2, 16], strides = [1, 1]} : vector<2x32xf32> to vector<2x16xf32>
    %475 = vector.extract_strided_slice %385 {offsets = [0, 16], sizes = [2, 16], strides = [1, 1]} : vector<2x32xf32> to vector<2x16xf32>
    %476 = vector.extract_strided_slice %366 {offsets = [0, 16], sizes = [2, 16], strides = [1, 1]} : vector<2x32xf32> to vector<2x16xf32>
    %477 = vector.extract_strided_slice %347 {offsets = [0, 16], sizes = [2, 16], strides = [1, 1]} : vector<2x32xf32> to vector<2x16xf32>
    %478 = vector.extract_strided_slice %328 {offsets = [0, 16], sizes = [2, 16], strides = [1, 1]} : vector<2x32xf32> to vector<2x16xf32>
    %479 = tpu.concatenate %471, %472, %473, %474, %475, %476, %477, %478 in 0 : vector<2x16xf32>, vector<2x16xf32>, vector<2x16xf32>, vector<2x16xf32>, vector<2x16xf32>, vector<2x16xf32>, vector<2x16xf32>, vector<2x16xf32> -> vector<16x16xf32>
    %480 = tpu.concatenate %470, %479 in 1 : vector<16x16xf32>, vector<16x16xf32> -> vector<16x32xf32>
    %c0_154 = arith.constant 0 : index
    %c0_155 = arith.constant 0 : index
    %481 = vector.load %arg41[%c0_154, %c0_155] : memref<32x128xf32, #tpu.memory_space<vmem>>, vector<32x128xf32>
    %c0_156 = arith.constant 0 : index
    %c0_157 = arith.constant 0 : index
    %482 = vector.load %arg40[%c0_156, %c0_157] : memref<32x128xf32, #tpu.memory_space<vmem>>, vector<32x128xf32>
    %cst_158 = arith.constant dense<0.000000e+00> : vector<16x128xf32>
    %483 = tpu.matmul %480, %482, %cst_158 {dimension_numbers = #tpu.dot_dimension_numbers<[1], [0], [0], [1], [0, 0, 1, 1], [], []>} : vector<16x32xf32>, vector<32x128xf32>, vector<16x128xf32> -> vector<16x128xf32>
    %c0_159 = arith.constant 0 : index
    %c0_160 = arith.constant 0 : index
    %484 = vector.load %arg42[%c0_159, %c0_160] : memref<1x128xf32, #tpu.memory_space<vmem>>, vector<1x128xf32>
    %485 = vector.broadcast %484 : vector<1x128xf32> to vector<16x128xf32>
    %486 = arith.addf %483, %485 : vector<16x128xf32>
    %487 = vector.extract_strided_slice %486 {offsets = [14, 0], sizes = [2, 128], strides = [1, 1]} : vector<16x128xf32> to vector<2x128xf32>
    %488 = vector.extract_strided_slice %486 {offsets = [12, 0], sizes = [2, 128], strides = [1, 1]} : vector<16x128xf32> to vector<2x128xf32>
    %489 = vector.extract_strided_slice %486 {offsets = [10, 0], sizes = [2, 128], strides = [1, 1]} : vector<16x128xf32> to vector<2x128xf32>
    %490 = vector.extract_strided_slice %486 {offsets = [8, 0], sizes = [2, 128], strides = [1, 1]} : vector<16x128xf32> to vector<2x128xf32>
    %491 = vector.extract_strided_slice %486 {offsets = [6, 0], sizes = [2, 128], strides = [1, 1]} : vector<16x128xf32> to vector<2x128xf32>
    %492 = vector.extract_strided_slice %486 {offsets = [4, 0], sizes = [2, 128], strides = [1, 1]} : vector<16x128xf32> to vector<2x128xf32>
    %493 = vector.extract_strided_slice %486 {offsets = [2, 0], sizes = [2, 128], strides = [1, 1]} : vector<16x128xf32> to vector<2x128xf32>
    %494 = vector.extract_strided_slice %486 {offsets = [0, 0], sizes = [2, 128], strides = [1, 1]} : vector<16x128xf32> to vector<2x128xf32>
    %495 = tpu.concatenate %487, %488, %489, %490, %491, %492, %493, %494 in 0 : vector<2x128xf32>, vector<2x128xf32>, vector<2x128xf32>, vector<2x128xf32>, vector<2x128xf32>, vector<2x128xf32>, vector<2x128xf32>, vector<2x128xf32> -> vector<16x128xf32>
    %496 = vector.shape_cast %289 : vector<1x128xi1> to vector<1x128xi1>
    %497 = vector.broadcast %496 : vector<1x128xi1> to vector<16x128xi1>
    %498 = arith.select %497, %486, %495 : vector<16x128xi1>, vector<16x128xf32>
    %cst_161 = arith.constant 0.000000e+00 : f32
    %499 = vector.broadcast %cst_161 : f32 to vector<2x32xf32>
    %cst_162 = arith.constant 0.000000e+00 : f32
    %500 = vector.broadcast %cst_162 : f32 to vector<2x32xf32>
    %501 = vector.extract_strided_slice %498 {offsets = [0, 0], sizes = [2, 128], strides = [1, 1]} : vector<16x128xf32> to vector<2x128xf32>
    %cst_163 = arith.constant dense<0.000000e+00> : vector<2x128xf32>
    %502 = tpu.matmul %499, %481, %cst_163 {dimension_numbers = #tpu.dot_dimension_numbers<[1], [0], [0], [1], [0, 0, 1, 1], [], []>} : vector<2x32xf32>, vector<32x128xf32>, vector<2x128xf32> -> vector<2x128xf32>
    %503 = arith.addf %501, %502 : vector<2x128xf32>
    %504 = vector.extract_strided_slice %503 {offsets = [0, 0], sizes = [2, 96], strides = [1, 1]} : vector<2x128xf32> to vector<2x96xf32>
    %505 = arith.negf %504 : vector<2x96xf32>
    %506 = math.exp %505 : vector<2x96xf32>
    %cst_164 = arith.constant 1.000000e+00 : f32
    %507 = vector.broadcast %cst_164 : f32 to vector<2x96xf32>
    %508 = arith.addf %507, %506 : vector<2x96xf32>
    %509 = arith.divf %507, %508 : vector<2x96xf32>
    %510 = vector.extract_strided_slice %503 {offsets = [0, 96], sizes = [2, 32], strides = [1, 1]} : vector<2x128xf32> to vector<2x32xf32>
    %511 = math.tanh %510 : vector<2x32xf32>
    %512 = vector.extract_strided_slice %509 {offsets = [0, 0], sizes = [2, 32], strides = [1, 1]} : vector<2x96xf32> to vector<2x32xf32>
    %513 = vector.extract_strided_slice %509 {offsets = [0, 32], sizes = [2, 32], strides = [1, 1]} : vector<2x96xf32> to vector<2x32xf32>
    %514 = vector.extract_strided_slice %509 {offsets = [0, 64], sizes = [2, 32], strides = [1, 1]} : vector<2x96xf32> to vector<2x32xf32>
    %515 = arith.mulf %513, %500 : vector<2x32xf32>
    %516 = arith.mulf %512, %511 : vector<2x32xf32>
    %517 = arith.addf %515, %516 : vector<2x32xf32>
    %518 = math.tanh %517 : vector<2x32xf32>
    %519 = arith.mulf %514, %518 : vector<2x32xf32>
    %520 = vector.extract_strided_slice %498 {offsets = [2, 0], sizes = [2, 128], strides = [1, 1]} : vector<16x128xf32> to vector<2x128xf32>
    %cst_165 = arith.constant dense<0.000000e+00> : vector<2x128xf32>
    %521 = tpu.matmul %519, %481, %cst_165 {dimension_numbers = #tpu.dot_dimension_numbers<[1], [0], [0], [1], [0, 0, 1, 1], [], []>} : vector<2x32xf32>, vector<32x128xf32>, vector<2x128xf32> -> vector<2x128xf32>
    %522 = arith.addf %520, %521 : vector<2x128xf32>
    %523 = vector.extract_strided_slice %522 {offsets = [0, 0], sizes = [2, 96], strides = [1, 1]} : vector<2x128xf32> to vector<2x96xf32>
    %524 = arith.negf %523 : vector<2x96xf32>
    %525 = math.exp %524 : vector<2x96xf32>
    %cst_166 = arith.constant 1.000000e+00 : f32
    %526 = vector.broadcast %cst_166 : f32 to vector<2x96xf32>
    %527 = arith.addf %526, %525 : vector<2x96xf32>
    %528 = arith.divf %526, %527 : vector<2x96xf32>
    %529 = vector.extract_strided_slice %522 {offsets = [0, 96], sizes = [2, 32], strides = [1, 1]} : vector<2x128xf32> to vector<2x32xf32>
    %530 = math.tanh %529 : vector<2x32xf32>
    %531 = vector.extract_strided_slice %528 {offsets = [0, 0], sizes = [2, 32], strides = [1, 1]} : vector<2x96xf32> to vector<2x32xf32>
    %532 = vector.extract_strided_slice %528 {offsets = [0, 32], sizes = [2, 32], strides = [1, 1]} : vector<2x96xf32> to vector<2x32xf32>
    %533 = vector.extract_strided_slice %528 {offsets = [0, 64], sizes = [2, 32], strides = [1, 1]} : vector<2x96xf32> to vector<2x32xf32>
    %534 = arith.mulf %532, %517 : vector<2x32xf32>
    %535 = arith.mulf %531, %530 : vector<2x32xf32>
    %536 = arith.addf %534, %535 : vector<2x32xf32>
    %537 = math.tanh %536 : vector<2x32xf32>
    %538 = arith.mulf %533, %537 : vector<2x32xf32>
    %539 = vector.extract_strided_slice %498 {offsets = [4, 0], sizes = [2, 128], strides = [1, 1]} : vector<16x128xf32> to vector<2x128xf32>
    %cst_167 = arith.constant dense<0.000000e+00> : vector<2x128xf32>
    %540 = tpu.matmul %538, %481, %cst_167 {dimension_numbers = #tpu.dot_dimension_numbers<[1], [0], [0], [1], [0, 0, 1, 1], [], []>} : vector<2x32xf32>, vector<32x128xf32>, vector<2x128xf32> -> vector<2x128xf32>
    %541 = arith.addf %539, %540 : vector<2x128xf32>
    %542 = vector.extract_strided_slice %541 {offsets = [0, 0], sizes = [2, 96], strides = [1, 1]} : vector<2x128xf32> to vector<2x96xf32>
    %543 = arith.negf %542 : vector<2x96xf32>
    %544 = math.exp %543 : vector<2x96xf32>
    %cst_168 = arith.constant 1.000000e+00 : f32
    %545 = vector.broadcast %cst_168 : f32 to vector<2x96xf32>
    %546 = arith.addf %545, %544 : vector<2x96xf32>
    %547 = arith.divf %545, %546 : vector<2x96xf32>
    %548 = vector.extract_strided_slice %541 {offsets = [0, 96], sizes = [2, 32], strides = [1, 1]} : vector<2x128xf32> to vector<2x32xf32>
    %549 = math.tanh %548 : vector<2x32xf32>
    %550 = vector.extract_strided_slice %547 {offsets = [0, 0], sizes = [2, 32], strides = [1, 1]} : vector<2x96xf32> to vector<2x32xf32>
    %551 = vector.extract_strided_slice %547 {offsets = [0, 32], sizes = [2, 32], strides = [1, 1]} : vector<2x96xf32> to vector<2x32xf32>
    %552 = vector.extract_strided_slice %547 {offsets = [0, 64], sizes = [2, 32], strides = [1, 1]} : vector<2x96xf32> to vector<2x32xf32>
    %553 = arith.mulf %551, %536 : vector<2x32xf32>
    %554 = arith.mulf %550, %549 : vector<2x32xf32>
    %555 = arith.addf %553, %554 : vector<2x32xf32>
    %556 = math.tanh %555 : vector<2x32xf32>
    %557 = arith.mulf %552, %556 : vector<2x32xf32>
    %558 = vector.extract_strided_slice %498 {offsets = [6, 0], sizes = [2, 128], strides = [1, 1]} : vector<16x128xf32> to vector<2x128xf32>
    %cst_169 = arith.constant dense<0.000000e+00> : vector<2x128xf32>
    %559 = tpu.matmul %557, %481, %cst_169 {dimension_numbers = #tpu.dot_dimension_numbers<[1], [0], [0], [1], [0, 0, 1, 1], [], []>} : vector<2x32xf32>, vector<32x128xf32>, vector<2x128xf32> -> vector<2x128xf32>
    %560 = arith.addf %558, %559 : vector<2x128xf32>
    %561 = vector.extract_strided_slice %560 {offsets = [0, 0], sizes = [2, 96], strides = [1, 1]} : vector<2x128xf32> to vector<2x96xf32>
    %562 = arith.negf %561 : vector<2x96xf32>
    %563 = math.exp %562 : vector<2x96xf32>
    %cst_170 = arith.constant 1.000000e+00 : f32
    %564 = vector.broadcast %cst_170 : f32 to vector<2x96xf32>
    %565 = arith.addf %564, %563 : vector<2x96xf32>
    %566 = arith.divf %564, %565 : vector<2x96xf32>
    %567 = vector.extract_strided_slice %560 {offsets = [0, 96], sizes = [2, 32], strides = [1, 1]} : vector<2x128xf32> to vector<2x32xf32>
    %568 = math.tanh %567 : vector<2x32xf32>
    %569 = vector.extract_strided_slice %566 {offsets = [0, 0], sizes = [2, 32], strides = [1, 1]} : vector<2x96xf32> to vector<2x32xf32>
    %570 = vector.extract_strided_slice %566 {offsets = [0, 32], sizes = [2, 32], strides = [1, 1]} : vector<2x96xf32> to vector<2x32xf32>
    %571 = vector.extract_strided_slice %566 {offsets = [0, 64], sizes = [2, 32], strides = [1, 1]} : vector<2x96xf32> to vector<2x32xf32>
    %572 = arith.mulf %570, %555 : vector<2x32xf32>
    %573 = arith.mulf %569, %568 : vector<2x32xf32>
    %574 = arith.addf %572, %573 : vector<2x32xf32>
    %575 = math.tanh %574 : vector<2x32xf32>
    %576 = arith.mulf %571, %575 : vector<2x32xf32>
    %577 = vector.extract_strided_slice %498 {offsets = [8, 0], sizes = [2, 128], strides = [1, 1]} : vector<16x128xf32> to vector<2x128xf32>
    %cst_171 = arith.constant dense<0.000000e+00> : vector<2x128xf32>
    %578 = tpu.matmul %576, %481, %cst_171 {dimension_numbers = #tpu.dot_dimension_numbers<[1], [0], [0], [1], [0, 0, 1, 1], [], []>} : vector<2x32xf32>, vector<32x128xf32>, vector<2x128xf32> -> vector<2x128xf32>
    %579 = arith.addf %577, %578 : vector<2x128xf32>
    %580 = vector.extract_strided_slice %579 {offsets = [0, 0], sizes = [2, 96], strides = [1, 1]} : vector<2x128xf32> to vector<2x96xf32>
    %581 = arith.negf %580 : vector<2x96xf32>
    %582 = math.exp %581 : vector<2x96xf32>
    %cst_172 = arith.constant 1.000000e+00 : f32
    %583 = vector.broadcast %cst_172 : f32 to vector<2x96xf32>
    %584 = arith.addf %583, %582 : vector<2x96xf32>
    %585 = arith.divf %583, %584 : vector<2x96xf32>
    %586 = vector.extract_strided_slice %579 {offsets = [0, 96], sizes = [2, 32], strides = [1, 1]} : vector<2x128xf32> to vector<2x32xf32>
    %587 = math.tanh %586 : vector<2x32xf32>
    %588 = vector.extract_strided_slice %585 {offsets = [0, 0], sizes = [2, 32], strides = [1, 1]} : vector<2x96xf32> to vector<2x32xf32>
    %589 = vector.extract_strided_slice %585 {offsets = [0, 32], sizes = [2, 32], strides = [1, 1]} : vector<2x96xf32> to vector<2x32xf32>
    %590 = vector.extract_strided_slice %585 {offsets = [0, 64], sizes = [2, 32], strides = [1, 1]} : vector<2x96xf32> to vector<2x32xf32>
    %591 = arith.mulf %589, %574 : vector<2x32xf32>
    %592 = arith.mulf %588, %587 : vector<2x32xf32>
    %593 = arith.addf %591, %592 : vector<2x32xf32>
    %594 = math.tanh %593 : vector<2x32xf32>
    %595 = arith.mulf %590, %594 : vector<2x32xf32>
    %596 = vector.extract_strided_slice %498 {offsets = [10, 0], sizes = [2, 128], strides = [1, 1]} : vector<16x128xf32> to vector<2x128xf32>
    %cst_173 = arith.constant dense<0.000000e+00> : vector<2x128xf32>
    %597 = tpu.matmul %595, %481, %cst_173 {dimension_numbers = #tpu.dot_dimension_numbers<[1], [0], [0], [1], [0, 0, 1, 1], [], []>} : vector<2x32xf32>, vector<32x128xf32>, vector<2x128xf32> -> vector<2x128xf32>
    %598 = arith.addf %596, %597 : vector<2x128xf32>
    %599 = vector.extract_strided_slice %598 {offsets = [0, 0], sizes = [2, 96], strides = [1, 1]} : vector<2x128xf32> to vector<2x96xf32>
    %600 = arith.negf %599 : vector<2x96xf32>
    %601 = math.exp %600 : vector<2x96xf32>
    %cst_174 = arith.constant 1.000000e+00 : f32
    %602 = vector.broadcast %cst_174 : f32 to vector<2x96xf32>
    %603 = arith.addf %602, %601 : vector<2x96xf32>
    %604 = arith.divf %602, %603 : vector<2x96xf32>
    %605 = vector.extract_strided_slice %598 {offsets = [0, 96], sizes = [2, 32], strides = [1, 1]} : vector<2x128xf32> to vector<2x32xf32>
    %606 = math.tanh %605 : vector<2x32xf32>
    %607 = vector.extract_strided_slice %604 {offsets = [0, 0], sizes = [2, 32], strides = [1, 1]} : vector<2x96xf32> to vector<2x32xf32>
    %608 = vector.extract_strided_slice %604 {offsets = [0, 32], sizes = [2, 32], strides = [1, 1]} : vector<2x96xf32> to vector<2x32xf32>
    %609 = vector.extract_strided_slice %604 {offsets = [0, 64], sizes = [2, 32], strides = [1, 1]} : vector<2x96xf32> to vector<2x32xf32>
    %610 = arith.mulf %608, %593 : vector<2x32xf32>
    %611 = arith.mulf %607, %606 : vector<2x32xf32>
    %612 = arith.addf %610, %611 : vector<2x32xf32>
    %613 = math.tanh %612 : vector<2x32xf32>
    %614 = arith.mulf %609, %613 : vector<2x32xf32>
    %615 = vector.extract_strided_slice %498 {offsets = [12, 0], sizes = [2, 128], strides = [1, 1]} : vector<16x128xf32> to vector<2x128xf32>
    %cst_175 = arith.constant dense<0.000000e+00> : vector<2x128xf32>
    %616 = tpu.matmul %614, %481, %cst_175 {dimension_numbers = #tpu.dot_dimension_numbers<[1], [0], [0], [1], [0, 0, 1, 1], [], []>} : vector<2x32xf32>, vector<32x128xf32>, vector<2x128xf32> -> vector<2x128xf32>
    %617 = arith.addf %615, %616 : vector<2x128xf32>
    %618 = vector.extract_strided_slice %617 {offsets = [0, 0], sizes = [2, 96], strides = [1, 1]} : vector<2x128xf32> to vector<2x96xf32>
    %619 = arith.negf %618 : vector<2x96xf32>
    %620 = math.exp %619 : vector<2x96xf32>
    %cst_176 = arith.constant 1.000000e+00 : f32
    %621 = vector.broadcast %cst_176 : f32 to vector<2x96xf32>
    %622 = arith.addf %621, %620 : vector<2x96xf32>
    %623 = arith.divf %621, %622 : vector<2x96xf32>
    %624 = vector.extract_strided_slice %617 {offsets = [0, 96], sizes = [2, 32], strides = [1, 1]} : vector<2x128xf32> to vector<2x32xf32>
    %625 = math.tanh %624 : vector<2x32xf32>
    %626 = vector.extract_strided_slice %623 {offsets = [0, 0], sizes = [2, 32], strides = [1, 1]} : vector<2x96xf32> to vector<2x32xf32>
    %627 = vector.extract_strided_slice %623 {offsets = [0, 32], sizes = [2, 32], strides = [1, 1]} : vector<2x96xf32> to vector<2x32xf32>
    %628 = vector.extract_strided_slice %623 {offsets = [0, 64], sizes = [2, 32], strides = [1, 1]} : vector<2x96xf32> to vector<2x32xf32>
    %629 = arith.mulf %627, %612 : vector<2x32xf32>
    %630 = arith.mulf %626, %625 : vector<2x32xf32>
    %631 = arith.addf %629, %630 : vector<2x32xf32>
    %632 = math.tanh %631 : vector<2x32xf32>
    %633 = arith.mulf %628, %632 : vector<2x32xf32>
    %634 = vector.extract_strided_slice %498 {offsets = [14, 0], sizes = [2, 128], strides = [1, 1]} : vector<16x128xf32> to vector<2x128xf32>
    %cst_177 = arith.constant dense<0.000000e+00> : vector<2x128xf32>
    %635 = tpu.matmul %633, %481, %cst_177 {dimension_numbers = #tpu.dot_dimension_numbers<[1], [0], [0], [1], [0, 0, 1, 1], [], []>} : vector<2x32xf32>, vector<32x128xf32>, vector<2x128xf32> -> vector<2x128xf32>
    %636 = arith.addf %634, %635 : vector<2x128xf32>
    %637 = vector.extract_strided_slice %636 {offsets = [0, 0], sizes = [2, 96], strides = [1, 1]} : vector<2x128xf32> to vector<2x96xf32>
    %638 = arith.negf %637 : vector<2x96xf32>
    %639 = math.exp %638 : vector<2x96xf32>
    %cst_178 = arith.constant 1.000000e+00 : f32
    %640 = vector.broadcast %cst_178 : f32 to vector<2x96xf32>
    %641 = arith.addf %640, %639 : vector<2x96xf32>
    %642 = arith.divf %640, %641 : vector<2x96xf32>
    %643 = vector.extract_strided_slice %636 {offsets = [0, 96], sizes = [2, 32], strides = [1, 1]} : vector<2x128xf32> to vector<2x32xf32>
    %644 = math.tanh %643 : vector<2x32xf32>
    %645 = vector.extract_strided_slice %642 {offsets = [0, 0], sizes = [2, 32], strides = [1, 1]} : vector<2x96xf32> to vector<2x32xf32>
    %646 = vector.extract_strided_slice %642 {offsets = [0, 32], sizes = [2, 32], strides = [1, 1]} : vector<2x96xf32> to vector<2x32xf32>
    %647 = vector.extract_strided_slice %642 {offsets = [0, 64], sizes = [2, 32], strides = [1, 1]} : vector<2x96xf32> to vector<2x32xf32>
    %648 = arith.mulf %646, %631 : vector<2x32xf32>
    %649 = arith.mulf %645, %644 : vector<2x32xf32>
    %650 = arith.addf %648, %649 : vector<2x32xf32>
    %651 = math.tanh %650 : vector<2x32xf32>
    %652 = arith.mulf %647, %651 : vector<2x32xf32>
    %653 = vector.extract_strided_slice %519 {offsets = [0, 0], sizes = [2, 16], strides = [1, 1]} : vector<2x32xf32> to vector<2x16xf32>
    %654 = vector.extract_strided_slice %538 {offsets = [0, 0], sizes = [2, 16], strides = [1, 1]} : vector<2x32xf32> to vector<2x16xf32>
    %655 = vector.extract_strided_slice %557 {offsets = [0, 0], sizes = [2, 16], strides = [1, 1]} : vector<2x32xf32> to vector<2x16xf32>
    %656 = vector.extract_strided_slice %576 {offsets = [0, 0], sizes = [2, 16], strides = [1, 1]} : vector<2x32xf32> to vector<2x16xf32>
    %657 = vector.extract_strided_slice %595 {offsets = [0, 0], sizes = [2, 16], strides = [1, 1]} : vector<2x32xf32> to vector<2x16xf32>
    %658 = vector.extract_strided_slice %614 {offsets = [0, 0], sizes = [2, 16], strides = [1, 1]} : vector<2x32xf32> to vector<2x16xf32>
    %659 = vector.extract_strided_slice %633 {offsets = [0, 0], sizes = [2, 16], strides = [1, 1]} : vector<2x32xf32> to vector<2x16xf32>
    %660 = vector.extract_strided_slice %652 {offsets = [0, 0], sizes = [2, 16], strides = [1, 1]} : vector<2x32xf32> to vector<2x16xf32>
    %661 = tpu.concatenate %653, %654, %655, %656, %657, %658, %659, %660 in 0 : vector<2x16xf32>, vector<2x16xf32>, vector<2x16xf32>, vector<2x16xf32>, vector<2x16xf32>, vector<2x16xf32>, vector<2x16xf32>, vector<2x16xf32> -> vector<16x16xf32>
    %662 = vector.extract_strided_slice %652 {offsets = [0, 16], sizes = [2, 16], strides = [1, 1]} : vector<2x32xf32> to vector<2x16xf32>
    %663 = vector.extract_strided_slice %633 {offsets = [0, 16], sizes = [2, 16], strides = [1, 1]} : vector<2x32xf32> to vector<2x16xf32>
    %664 = vector.extract_strided_slice %614 {offsets = [0, 16], sizes = [2, 16], strides = [1, 1]} : vector<2x32xf32> to vector<2x16xf32>
    %665 = vector.extract_strided_slice %595 {offsets = [0, 16], sizes = [2, 16], strides = [1, 1]} : vector<2x32xf32> to vector<2x16xf32>
    %666 = vector.extract_strided_slice %576 {offsets = [0, 16], sizes = [2, 16], strides = [1, 1]} : vector<2x32xf32> to vector<2x16xf32>
    %667 = vector.extract_strided_slice %557 {offsets = [0, 16], sizes = [2, 16], strides = [1, 1]} : vector<2x32xf32> to vector<2x16xf32>
    %668 = vector.extract_strided_slice %538 {offsets = [0, 16], sizes = [2, 16], strides = [1, 1]} : vector<2x32xf32> to vector<2x16xf32>
    %669 = vector.extract_strided_slice %519 {offsets = [0, 16], sizes = [2, 16], strides = [1, 1]} : vector<2x32xf32> to vector<2x16xf32>
    %670 = tpu.concatenate %662, %663, %664, %665, %666, %667, %668, %669 in 0 : vector<2x16xf32>, vector<2x16xf32>, vector<2x16xf32>, vector<2x16xf32>, vector<2x16xf32>, vector<2x16xf32>, vector<2x16xf32>, vector<2x16xf32> -> vector<16x16xf32>
    %671 = tpu.concatenate %661, %670 in 1 : vector<16x16xf32>, vector<16x16xf32> -> vector<16x32xf32>
    %c0_179 = arith.constant 0 : index
    %c0_180 = arith.constant 0 : index
    %672 = vector.load %arg43[%c0_179, %c0_180] : memref<32x128xf32, #tpu.memory_space<vmem>>, vector<32x128xf32>
    %cst_181 = arith.constant dense<0.000000e+00> : vector<16x128xf32>
    %673 = tpu.matmul %671, %672, %cst_181 {dimension_numbers = #tpu.dot_dimension_numbers<[1], [0], [0], [1], [0, 0, 1, 1], [], []>} : vector<16x32xf32>, vector<32x128xf32>, vector<16x128xf32> -> vector<16x128xf32>
    %c0_182 = arith.constant 0 : index
    %c0_183 = arith.constant 0 : index
    %674 = vector.load %arg44[%c0_182, %c0_183] : memref<1x128xf32, #tpu.memory_space<vmem>>, vector<1x128xf32>
    %675 = vector.broadcast %674 : vector<1x128xf32> to vector<16x128xf32>
    %676 = arith.addf %673, %675 : vector<16x128xf32>
    %c0_184 = arith.constant 0 : index
    %c0_185 = arith.constant 0 : index
    %677 = vector.load %arg49[%c0_184, %c0_185] : memref<16x128xf32, #tpu.memory_space<vmem>>, vector<16x128xf32>
    tpu.vector_store %arg49[%c0_184, %c0_185], %676 {strides = array<i32>} : memref<16x128xf32, #tpu.memory_space<vmem>>, vector<16x128xf32>,
    %678 = vector.extract_strided_slice %676 {offsets = [0, 0], sizes = [16, 5], strides = [1, 1]} : vector<16x128xf32> to vector<16x5xf32>
    %c0_186 = arith.constant 0 : index
    %c0_187 = arith.constant 0 : index
    %679 = vector.load %arg45[%c0_186, %c0_187] : memref<1x5xf32, #tpu.memory_space<vmem>>, vector<1x5xf32>
    %c0_188 = arith.constant 0 : index
    %c0_189 = arith.constant 0 : index
    %680 = vector.load %arg46[%c0_188, %c0_189] : memref<5x5xf32, #tpu.memory_space<vmem>>, vector<5x5xf32>
    %c0_190 = arith.constant 0 : index
    %c0_191 = arith.constant 0 : index
    %681 = vector.load %arg47[%c0_190, %c0_191] : memref<1x5xf32, #tpu.memory_space<vmem>>, vector<1x5xf32>
    %682 = tpu.iota {dimensions = array<i32: 1>} : vector<2x5xi32>
    %683 = vector.extract_strided_slice %680 {offsets = [0, 0], sizes = [1, 5], strides = [1, 1]} : vector<5x5xf32> to vector<1x5xf32>
    %684 = vector.extract_strided_slice %680 {offsets = [1, 0], sizes = [1, 5], strides = [1, 1]} : vector<5x5xf32> to vector<1x5xf32>
    %685 = vector.extract_strided_slice %680 {offsets = [2, 0], sizes = [1, 5], strides = [1, 1]} : vector<5x5xf32> to vector<1x5xf32>
    %686 = vector.extract_strided_slice %680 {offsets = [3, 0], sizes = [1, 5], strides = [1, 1]} : vector<5x5xf32> to vector<1x5xf32>
    %687 = vector.extract_strided_slice %680 {offsets = [4, 0], sizes = [1, 5], strides = [1, 1]} : vector<5x5xf32> to vector<1x5xf32>
    %688 = vector.extract_strided_slice %678 {offsets = [0, 0], sizes = [2, 5], strides = [1, 1]} : vector<16x5xf32> to vector<2x5xf32>
    %689 = vector.extract_strided_slice %678 {offsets = [2, 0], sizes = [2, 5], strides = [1, 1]} : vector<16x5xf32> to vector<2x5xf32>
    %690 = vector.extract_strided_slice %678 {offsets = [4, 0], sizes = [2, 5], strides = [1, 1]} : vector<16x5xf32> to vector<2x5xf32>
    %691 = vector.extract_strided_slice %678 {offsets = [6, 0], sizes = [2, 5], strides = [1, 1]} : vector<16x5xf32> to vector<2x5xf32>
    %692 = vector.extract_strided_slice %678 {offsets = [8, 0], sizes = [2, 5], strides = [1, 1]} : vector<16x5xf32> to vector<2x5xf32>
    %693 = vector.extract_strided_slice %678 {offsets = [10, 0], sizes = [2, 5], strides = [1, 1]} : vector<16x5xf32> to vector<2x5xf32>
    %694 = vector.extract_strided_slice %678 {offsets = [12, 0], sizes = [2, 5], strides = [1, 1]} : vector<16x5xf32> to vector<2x5xf32>
    %695 = vector.extract_strided_slice %678 {offsets = [14, 0], sizes = [2, 5], strides = [1, 1]} : vector<16x5xf32> to vector<2x5xf32>
    %696 = vector.broadcast %679 : vector<1x5xf32> to vector<2x5xf32>
    %697 = arith.addf %696, %688 : vector<2x5xf32>
    %698 = vector.extract_strided_slice %697 {offsets = [0, 0], sizes = [2, 1], strides = [1, 1]} : vector<2x5xf32> to vector<2x1xf32>
    %699 = vector.broadcast %698 : vector<2x1xf32> to vector<2x5xf32>
    %700 = vector.broadcast %683 : vector<1x5xf32> to vector<2x5xf32>
    %701 = arith.addf %699, %700 : vector<2x5xf32>
    %702 = vector.extract_strided_slice %697 {offsets = [0, 1], sizes = [2, 1], strides = [1, 1]} : vector<2x5xf32> to vector<2x1xf32>
    %703 = vector.broadcast %702 : vector<2x1xf32> to vector<2x5xf32>
    %704 = vector.broadcast %684 : vector<1x5xf32> to vector<2x5xf32>
    %705 = arith.addf %703, %704 : vector<2x5xf32>
    %706 = vector.extract_strided_slice %697 {offsets = [0, 2], sizes = [2, 1], strides = [1, 1]} : vector<2x5xf32> to vector<2x1xf32>
    %707 = vector.broadcast %706 : vector<2x1xf32> to vector<2x5xf32>
    %708 = vector.broadcast %685 : vector<1x5xf32> to vector<2x5xf32>
    %709 = arith.addf %707, %708 : vector<2x5xf32>
    %710 = vector.extract_strided_slice %697 {offsets = [0, 3], sizes = [2, 1], strides = [1, 1]} : vector<2x5xf32> to vector<2x1xf32>
    %711 = vector.broadcast %710 : vector<2x1xf32> to vector<2x5xf32>
    %712 = vector.broadcast %686 : vector<1x5xf32> to vector<2x5xf32>
    %713 = arith.addf %711, %712 : vector<2x5xf32>
    %714 = vector.extract_strided_slice %697 {offsets = [0, 4], sizes = [2, 1], strides = [1, 1]} : vector<2x5xf32> to vector<2x1xf32>
    %715 = vector.broadcast %714 : vector<2x1xf32> to vector<2x5xf32>
    %716 = vector.broadcast %687 : vector<1x5xf32> to vector<2x5xf32>
    %717 = arith.addf %715, %716 : vector<2x5xf32>
    %718 = arith.maximumf %701, %705 : vector<2x5xf32>
    %719 = arith.maximumf %718, %709 : vector<2x5xf32>
    %720 = arith.maximumf %719, %713 : vector<2x5xf32>
    %721 = arith.maximumf %720, %717 : vector<2x5xf32>
    %c4_i32 = arith.constant 4 : i32
    %722 = vector.broadcast %c4_i32 : i32 to vector<2x5xi32>
    %723 = arith.cmpf oge, %713, %721 : vector<2x5xf32>
    %c3_i32 = arith.constant 3 : i32
    %724 = vector.broadcast %c3_i32 : i32 to vector<2x5xi32>
    %725 = arith.select %723, %724, %722 : vector<2x5xi1>, vector<2x5xi32>
    %726 = arith.cmpf oge, %709, %721 : vector<2x5xf32>
    %c2_i32 = arith.constant 2 : i32
    %727 = vector.broadcast %c2_i32 : i32 to vector<2x5xi32>
    %728 = arith.select %726, %727, %725 : vector<2x5xi1>, vector<2x5xi32>
    %729 = arith.cmpf oge, %705, %721 : vector<2x5xf32>
    %c1_i32 = arith.constant 1 : i32
    %730 = vector.broadcast %c1_i32 : i32 to vector<2x5xi32>
    %731 = arith.select %729, %730, %728 : vector<2x5xi1>, vector<2x5xi32>
    %732 = arith.cmpf oge, %701, %721 : vector<2x5xf32>
    %c0_i32_192 = arith.constant 0 : i32
    %733 = vector.broadcast %c0_i32_192 : i32 to vector<2x5xi32>
    %734 = arith.select %732, %733, %731 : vector<2x5xi1>, vector<2x5xi32>
    %735 = vector.extract_strided_slice %0 {offsets = [0, 1], sizes = [2, 1], strides = [1, 1]} : vector<2x8xi32> to vector<2x1xi32>
    %c0_i32_193 = arith.constant 0 : i32
    %736 = vector.broadcast %c0_i32_193 : i32 to vector<2x1xi32>
    %737 = arith.cmpi sgt, %735, %736 : vector<2x1xi32>
    %738 = arith.addf %721, %689 : vector<2x5xf32>
    %739 = vector.shape_cast %737 : vector<2x1xi1> to vector<2x1xi1>
    %740 = vector.broadcast %739 : vector<2x1xi1> to vector<2x5xi1>
    %741 = arith.select %740, %738, %697 : vector<2x5xi1>, vector<2x5xf32>
    %742 = vector.extract_strided_slice %741 {offsets = [0, 0], sizes = [2, 1], strides = [1, 1]} : vector<2x5xf32> to vector<2x1xf32>
    %743 = vector.broadcast %742 : vector<2x1xf32> to vector<2x5xf32>
    %744 = vector.broadcast %683 : vector<1x5xf32> to vector<2x5xf32>
    %745 = arith.addf %743, %744 : vector<2x5xf32>
    %746 = vector.extract_strided_slice %741 {offsets = [0, 1], sizes = [2, 1], strides = [1, 1]} : vector<2x5xf32> to vector<2x1xf32>
    %747 = vector.broadcast %746 : vector<2x1xf32> to vector<2x5xf32>
    %748 = vector.broadcast %684 : vector<1x5xf32> to vector<2x5xf32>
    %749 = arith.addf %747, %748 : vector<2x5xf32>
    %750 = vector.extract_strided_slice %741 {offsets = [0, 2], sizes = [2, 1], strides = [1, 1]} : vector<2x5xf32> to vector<2x1xf32>
    %751 = vector.broadcast %750 : vector<2x1xf32> to vector<2x5xf32>
    %752 = vector.broadcast %685 : vector<1x5xf32> to vector<2x5xf32>
    %753 = arith.addf %751, %752 : vector<2x5xf32>
    %754 = vector.extract_strided_slice %741 {offsets = [0, 3], sizes = [2, 1], strides = [1, 1]} : vector<2x5xf32> to vector<2x1xf32>
    %755 = vector.broadcast %754 : vector<2x1xf32> to vector<2x5xf32>
    %756 = vector.broadcast %686 : vector<1x5xf32> to vector<2x5xf32>
    %757 = arith.addf %755, %756 : vector<2x5xf32>
    %758 = vector.extract_strided_slice %741 {offsets = [0, 4], sizes = [2, 1], strides = [1, 1]} : vector<2x5xf32> to vector<2x1xf32>
    %759 = vector.broadcast %758 : vector<2x1xf32> to vector<2x5xf32>
    %760 = vector.broadcast %687 : vector<1x5xf32> to vector<2x5xf32>
    %761 = arith.addf %759, %760 : vector<2x5xf32>
    %762 = arith.maximumf %745, %749 : vector<2x5xf32>
    %763 = arith.maximumf %762, %753 : vector<2x5xf32>
    %764 = arith.maximumf %763, %757 : vector<2x5xf32>
    %765 = arith.maximumf %764, %761 : vector<2x5xf32>
    %c4_i32_194 = arith.constant 4 : i32
    %766 = vector.broadcast %c4_i32_194 : i32 to vector<2x5xi32>
    %767 = arith.cmpf oge, %757, %765 : vector<2x5xf32>
    %c3_i32_195 = arith.constant 3 : i32
    %768 = vector.broadcast %c3_i32_195 : i32 to vector<2x5xi32>
    %769 = arith.select %767, %768, %766 : vector<2x5xi1>, vector<2x5xi32>
    %770 = arith.cmpf oge, %753, %765 : vector<2x5xf32>
    %c2_i32_196 = arith.constant 2 : i32
    %771 = vector.broadcast %c2_i32_196 : i32 to vector<2x5xi32>
    %772 = arith.select %770, %771, %769 : vector<2x5xi1>, vector<2x5xi32>
    %773 = arith.cmpf oge, %749, %765 : vector<2x5xf32>
    %c1_i32_197 = arith.constant 1 : i32
    %774 = vector.broadcast %c1_i32_197 : i32 to vector<2x5xi32>
    %775 = arith.select %773, %774, %772 : vector<2x5xi1>, vector<2x5xi32>
    %776 = arith.cmpf oge, %745, %765 : vector<2x5xf32>
    %c0_i32_198 = arith.constant 0 : i32
    %777 = vector.broadcast %c0_i32_198 : i32 to vector<2x5xi32>
    %778 = arith.select %776, %777, %775 : vector<2x5xi1>, vector<2x5xi32>
    %779 = vector.extract_strided_slice %0 {offsets = [0, 2], sizes = [2, 1], strides = [1, 1]} : vector<2x8xi32> to vector<2x1xi32>
    %c0_i32_199 = arith.constant 0 : i32
    %780 = vector.broadcast %c0_i32_199 : i32 to vector<2x1xi32>
    %781 = arith.cmpi sgt, %779, %780 : vector<2x1xi32>
    %782 = arith.addf %765, %690 : vector<2x5xf32>
    %783 = vector.shape_cast %781 : vector<2x1xi1> to vector<2x1xi1>
    %784 = vector.broadcast %783 : vector<2x1xi1> to vector<2x5xi1>
    %785 = arith.select %784, %782, %741 : vector<2x5xi1>, vector<2x5xf32>
    %786 = vector.extract_strided_slice %785 {offsets = [0, 0], sizes = [2, 1], strides = [1, 1]} : vector<2x5xf32> to vector<2x1xf32>
    %787 = vector.broadcast %786 : vector<2x1xf32> to vector<2x5xf32>
    %788 = vector.broadcast %683 : vector<1x5xf32> to vector<2x5xf32>
    %789 = arith.addf %787, %788 : vector<2x5xf32>
    %790 = vector.extract_strided_slice %785 {offsets = [0, 1], sizes = [2, 1], strides = [1, 1]} : vector<2x5xf32> to vector<2x1xf32>
    %791 = vector.broadcast %790 : vector<2x1xf32> to vector<2x5xf32>
    %792 = vector.broadcast %684 : vector<1x5xf32> to vector<2x5xf32>
    %793 = arith.addf %791, %792 : vector<2x5xf32>
    %794 = vector.extract_strided_slice %785 {offsets = [0, 2], sizes = [2, 1], strides = [1, 1]} : vector<2x5xf32> to vector<2x1xf32>
    %795 = vector.broadcast %794 : vector<2x1xf32> to vector<2x5xf32>
    %796 = vector.broadcast %685 : vector<1x5xf32> to vector<2x5xf32>
    %797 = arith.addf %795, %796 : vector<2x5xf32>
    %798 = vector.extract_strided_slice %785 {offsets = [0, 3], sizes = [2, 1], strides = [1, 1]} : vector<2x5xf32> to vector<2x1xf32>
    %799 = vector.broadcast %798 : vector<2x1xf32> to vector<2x5xf32>
    %800 = vector.broadcast %686 : vector<1x5xf32> to vector<2x5xf32>
    %801 = arith.addf %799, %800 : vector<2x5xf32>
    %802 = vector.extract_strided_slice %785 {offsets = [0, 4], sizes = [2, 1], strides = [1, 1]} : vector<2x5xf32> to vector<2x1xf32>
    %803 = vector.broadcast %802 : vector<2x1xf32> to vector<2x5xf32>
    %804 = vector.broadcast %687 : vector<1x5xf32> to vector<2x5xf32>
    %805 = arith.addf %803, %804 : vector<2x5xf32>
    %806 = arith.maximumf %789, %793 : vector<2x5xf32>
    %807 = arith.maximumf %806, %797 : vector<2x5xf32>
    %808 = arith.maximumf %807, %801 : vector<2x5xf32>
    %809 = arith.maximumf %808, %805 : vector<2x5xf32>
    %c4_i32_200 = arith.constant 4 : i32
    %810 = vector.broadcast %c4_i32_200 : i32 to vector<2x5xi32>
    %811 = arith.cmpf oge, %801, %809 : vector<2x5xf32>
    %c3_i32_201 = arith.constant 3 : i32
    %812 = vector.broadcast %c3_i32_201 : i32 to vector<2x5xi32>
    %813 = arith.select %811, %812, %810 : vector<2x5xi1>, vector<2x5xi32>
    %814 = arith.cmpf oge, %797, %809 : vector<2x5xf32>
    %c2_i32_202 = arith.constant 2 : i32
    %815 = vector.broadcast %c2_i32_202 : i32 to vector<2x5xi32>
    %816 = arith.select %814, %815, %813 : vector<2x5xi1>, vector<2x5xi32>
    %817 = arith.cmpf oge, %793, %809 : vector<2x5xf32>
    %c1_i32_203 = arith.constant 1 : i32
    %818 = vector.broadcast %c1_i32_203 : i32 to vector<2x5xi32>
    %819 = arith.select %817, %818, %816 : vector<2x5xi1>, vector<2x5xi32>
    %820 = arith.cmpf oge, %789, %809 : vector<2x5xf32>
    %c0_i32_204 = arith.constant 0 : i32
    %821 = vector.broadcast %c0_i32_204 : i32 to vector<2x5xi32>
    %822 = arith.select %820, %821, %819 : vector<2x5xi1>, vector<2x5xi32>
    %823 = vector.extract_strided_slice %0 {offsets = [0, 3], sizes = [2, 1], strides = [1, 1]} : vector<2x8xi32> to vector<2x1xi32>
    %c0_i32_205 = arith.constant 0 : i32
    %824 = vector.broadcast %c0_i32_205 : i32 to vector<2x1xi32>
    %825 = arith.cmpi sgt, %823, %824 : vector<2x1xi32>
    %826 = arith.addf %809, %691 : vector<2x5xf32>
    %827 = vector.shape_cast %825 : vector<2x1xi1> to vector<2x1xi1>
    %828 = vector.broadcast %827 : vector<2x1xi1> to vector<2x5xi1>
    %829 = arith.select %828, %826, %785 : vector<2x5xi1>, vector<2x5xf32>
    %830 = vector.extract_strided_slice %829 {offsets = [0, 0], sizes = [2, 1], strides = [1, 1]} : vector<2x5xf32> to vector<2x1xf32>
    %831 = vector.broadcast %830 : vector<2x1xf32> to vector<2x5xf32>
    %832 = vector.broadcast %683 : vector<1x5xf32> to vector<2x5xf32>
    %833 = arith.addf %831, %832 : vector<2x5xf32>
    %834 = vector.extract_strided_slice %829 {offsets = [0, 1], sizes = [2, 1], strides = [1, 1]} : vector<2x5xf32> to vector<2x1xf32>
    %835 = vector.broadcast %834 : vector<2x1xf32> to vector<2x5xf32>
    %836 = vector.broadcast %684 : vector<1x5xf32> to vector<2x5xf32>
    %837 = arith.addf %835, %836 : vector<2x5xf32>
    %838 = vector.extract_strided_slice %829 {offsets = [0, 2], sizes = [2, 1], strides = [1, 1]} : vector<2x5xf32> to vector<2x1xf32>
    %839 = vector.broadcast %838 : vector<2x1xf32> to vector<2x5xf32>
    %840 = vector.broadcast %685 : vector<1x5xf32> to vector<2x5xf32>
    %841 = arith.addf %839, %840 : vector<2x5xf32>
    %842 = vector.extract_strided_slice %829 {offsets = [0, 3], sizes = [2, 1], strides = [1, 1]} : vector<2x5xf32> to vector<2x1xf32>
    %843 = vector.broadcast %842 : vector<2x1xf32> to vector<2x5xf32>
    %844 = vector.broadcast %686 : vector<1x5xf32> to vector<2x5xf32>
    %845 = arith.addf %843, %844 : vector<2x5xf32>
    %846 = vector.extract_strided_slice %829 {offsets = [0, 4], sizes = [2, 1], strides = [1, 1]} : vector<2x5xf32> to vector<2x1xf32>
    %847 = vector.broadcast %846 : vector<2x1xf32> to vector<2x5xf32>
    %848 = vector.broadcast %687 : vector<1x5xf32> to vector<2x5xf32>
    %849 = arith.addf %847, %848 : vector<2x5xf32>
    %850 = arith.maximumf %833, %837 : vector<2x5xf32>
    %851 = arith.maximumf %850, %841 : vector<2x5xf32>
    %852 = arith.maximumf %851, %845 : vector<2x5xf32>
    %853 = arith.maximumf %852, %849 : vector<2x5xf32>
    %c4_i32_206 = arith.constant 4 : i32
    %854 = vector.broadcast %c4_i32_206 : i32 to vector<2x5xi32>
    %855 = arith.cmpf oge, %845, %853 : vector<2x5xf32>
    %c3_i32_207 = arith.constant 3 : i32
    %856 = vector.broadcast %c3_i32_207 : i32 to vector<2x5xi32>
    %857 = arith.select %855, %856, %854 : vector<2x5xi1>, vector<2x5xi32>
    %858 = arith.cmpf oge, %841, %853 : vector<2x5xf32>
    %c2_i32_208 = arith.constant 2 : i32
    %859 = vector.broadcast %c2_i32_208 : i32 to vector<2x5xi32>
    %860 = arith.select %858, %859, %857 : vector<2x5xi1>, vector<2x5xi32>
    %861 = arith.cmpf oge, %837, %853 : vector<2x5xf32>
    %c1_i32_209 = arith.constant 1 : i32
    %862 = vector.broadcast %c1_i32_209 : i32 to vector<2x5xi32>
    %863 = arith.select %861, %862, %860 : vector<2x5xi1>, vector<2x5xi32>
    %864 = arith.cmpf oge, %833, %853 : vector<2x5xf32>
    %c0_i32_210 = arith.constant 0 : i32
    %865 = vector.broadcast %c0_i32_210 : i32 to vector<2x5xi32>
    %866 = arith.select %864, %865, %863 : vector<2x5xi1>, vector<2x5xi32>
    %867 = vector.extract_strided_slice %0 {offsets = [0, 4], sizes = [2, 1], strides = [1, 1]} : vector<2x8xi32> to vector<2x1xi32>
    %c0_i32_211 = arith.constant 0 : i32
    %868 = vector.broadcast %c0_i32_211 : i32 to vector<2x1xi32>
    %869 = arith.cmpi sgt, %867, %868 : vector<2x1xi32>
    %870 = arith.addf %853, %692 : vector<2x5xf32>
    %871 = vector.shape_cast %869 : vector<2x1xi1> to vector<2x1xi1>
    %872 = vector.broadcast %871 : vector<2x1xi1> to vector<2x5xi1>
    %873 = arith.select %872, %870, %829 : vector<2x5xi1>, vector<2x5xf32>
    %874 = vector.extract_strided_slice %873 {offsets = [0, 0], sizes = [2, 1], strides = [1, 1]} : vector<2x5xf32> to vector<2x1xf32>
    %875 = vector.broadcast %874 : vector<2x1xf32> to vector<2x5xf32>
    %876 = vector.broadcast %683 : vector<1x5xf32> to vector<2x5xf32>
    %877 = arith.addf %875, %876 : vector<2x5xf32>
    %878 = vector.extract_strided_slice %873 {offsets = [0, 1], sizes = [2, 1], strides = [1, 1]} : vector<2x5xf32> to vector<2x1xf32>
    %879 = vector.broadcast %878 : vector<2x1xf32> to vector<2x5xf32>
    %880 = vector.broadcast %684 : vector<1x5xf32> to vector<2x5xf32>
    %881 = arith.addf %879, %880 : vector<2x5xf32>
    %882 = vector.extract_strided_slice %873 {offsets = [0, 2], sizes = [2, 1], strides = [1, 1]} : vector<2x5xf32> to vector<2x1xf32>
    %883 = vector.broadcast %882 : vector<2x1xf32> to vector<2x5xf32>
    %884 = vector.broadcast %685 : vector<1x5xf32> to vector<2x5xf32>
    %885 = arith.addf %883, %884 : vector<2x5xf32>
    %886 = vector.extract_strided_slice %873 {offsets = [0, 3], sizes = [2, 1], strides = [1, 1]} : vector<2x5xf32> to vector<2x1xf32>
    %887 = vector.broadcast %886 : vector<2x1xf32> to vector<2x5xf32>
    %888 = vector.broadcast %686 : vector<1x5xf32> to vector<2x5xf32>
    %889 = arith.addf %887, %888 : vector<2x5xf32>
    %890 = vector.extract_strided_slice %873 {offsets = [0, 4], sizes = [2, 1], strides = [1, 1]} : vector<2x5xf32> to vector<2x1xf32>
    %891 = vector.broadcast %890 : vector<2x1xf32> to vector<2x5xf32>
    %892 = vector.broadcast %687 : vector<1x5xf32> to vector<2x5xf32>
    %893 = arith.addf %891, %892 : vector<2x5xf32>
    %894 = arith.maximumf %877, %881 : vector<2x5xf32>
    %895 = arith.maximumf %894, %885 : vector<2x5xf32>
    %896 = arith.maximumf %895, %889 : vector<2x5xf32>
    %897 = arith.maximumf %896, %893 : vector<2x5xf32>
    %c4_i32_212 = arith.constant 4 : i32
    %898 = vector.broadcast %c4_i32_212 : i32 to vector<2x5xi32>
    %899 = arith.cmpf oge, %889, %897 : vector<2x5xf32>
    %c3_i32_213 = arith.constant 3 : i32
    %900 = vector.broadcast %c3_i32_213 : i32 to vector<2x5xi32>
    %901 = arith.select %899, %900, %898 : vector<2x5xi1>, vector<2x5xi32>
    %902 = arith.cmpf oge, %885, %897 : vector<2x5xf32>
    %c2_i32_214 = arith.constant 2 : i32
    %903 = vector.broadcast %c2_i32_214 : i32 to vector<2x5xi32>
    %904 = arith.select %902, %903, %901 : vector<2x5xi1>, vector<2x5xi32>
    %905 = arith.cmpf oge, %881, %897 : vector<2x5xf32>
    %c1_i32_215 = arith.constant 1 : i32
    %906 = vector.broadcast %c1_i32_215 : i32 to vector<2x5xi32>
    %907 = arith.select %905, %906, %904 : vector<2x5xi1>, vector<2x5xi32>
    %908 = arith.cmpf oge, %877, %897 : vector<2x5xf32>
    %c0_i32_216 = arith.constant 0 : i32
    %909 = vector.broadcast %c0_i32_216 : i32 to vector<2x5xi32>
    %910 = arith.select %908, %909, %907 : vector<2x5xi1>, vector<2x5xi32>
    %911 = vector.extract_strided_slice %0 {offsets = [0, 5], sizes = [2, 1], strides = [1, 1]} : vector<2x8xi32> to vector<2x1xi32>
    %c0_i32_217 = arith.constant 0 : i32
    %912 = vector.broadcast %c0_i32_217 : i32 to vector<2x1xi32>
    %913 = arith.cmpi sgt, %911, %912 : vector<2x1xi32>
    %914 = arith.addf %897, %693 : vector<2x5xf32>
    %915 = vector.shape_cast %913 : vector<2x1xi1> to vector<2x1xi1>
    %916 = vector.broadcast %915 : vector<2x1xi1> to vector<2x5xi1>
    %917 = arith.select %916, %914, %873 : vector<2x5xi1>, vector<2x5xf32>
    %918 = vector.extract_strided_slice %917 {offsets = [0, 0], sizes = [2, 1], strides = [1, 1]} : vector<2x5xf32> to vector<2x1xf32>
    %919 = vector.broadcast %918 : vector<2x1xf32> to vector<2x5xf32>
    %920 = vector.broadcast %683 : vector<1x5xf32> to vector<2x5xf32>
    %921 = arith.addf %919, %920 : vector<2x5xf32>
    %922 = vector.extract_strided_slice %917 {offsets = [0, 1], sizes = [2, 1], strides = [1, 1]} : vector<2x5xf32> to vector<2x1xf32>
    %923 = vector.broadcast %922 : vector<2x1xf32> to vector<2x5xf32>
    %924 = vector.broadcast %684 : vector<1x5xf32> to vector<2x5xf32>
    %925 = arith.addf %923, %924 : vector<2x5xf32>
    %926 = vector.extract_strided_slice %917 {offsets = [0, 2], sizes = [2, 1], strides = [1, 1]} : vector<2x5xf32> to vector<2x1xf32>
    %927 = vector.broadcast %926 : vector<2x1xf32> to vector<2x5xf32>
    %928 = vector.broadcast %685 : vector<1x5xf32> to vector<2x5xf32>
    %929 = arith.addf %927, %928 : vector<2x5xf32>
    %930 = vector.extract_strided_slice %917 {offsets = [0, 3], sizes = [2, 1], strides = [1, 1]} : vector<2x5xf32> to vector<2x1xf32>
    %931 = vector.broadcast %930 : vector<2x1xf32> to vector<2x5xf32>
    %932 = vector.broadcast %686 : vector<1x5xf32> to vector<2x5xf32>
    %933 = arith.addf %931, %932 : vector<2x5xf32>
    %934 = vector.extract_strided_slice %917 {offsets = [0, 4], sizes = [2, 1], strides = [1, 1]} : vector<2x5xf32> to vector<2x1xf32>
    %935 = vector.broadcast %934 : vector<2x1xf32> to vector<2x5xf32>
    %936 = vector.broadcast %687 : vector<1x5xf32> to vector<2x5xf32>
    %937 = arith.addf %935, %936 : vector<2x5xf32>
    %938 = arith.maximumf %921, %925 : vector<2x5xf32>
    %939 = arith.maximumf %938, %929 : vector<2x5xf32>
    %940 = arith.maximumf %939, %933 : vector<2x5xf32>
    %941 = arith.maximumf %940, %937 : vector<2x5xf32>
    %c4_i32_218 = arith.constant 4 : i32
    %942 = vector.broadcast %c4_i32_218 : i32 to vector<2x5xi32>
    %943 = arith.cmpf oge, %933, %941 : vector<2x5xf32>
    %c3_i32_219 = arith.constant 3 : i32
    %944 = vector.broadcast %c3_i32_219 : i32 to vector<2x5xi32>
    %945 = arith.select %943, %944, %942 : vector<2x5xi1>, vector<2x5xi32>
    %946 = arith.cmpf oge, %929, %941 : vector<2x5xf32>
    %c2_i32_220 = arith.constant 2 : i32
    %947 = vector.broadcast %c2_i32_220 : i32 to vector<2x5xi32>
    %948 = arith.select %946, %947, %945 : vector<2x5xi1>, vector<2x5xi32>
    %949 = arith.cmpf oge, %925, %941 : vector<2x5xf32>
    %c1_i32_221 = arith.constant 1 : i32
    %950 = vector.broadcast %c1_i32_221 : i32 to vector<2x5xi32>
    %951 = arith.select %949, %950, %948 : vector<2x5xi1>, vector<2x5xi32>
    %952 = arith.cmpf oge, %921, %941 : vector<2x5xf32>
    %c0_i32_222 = arith.constant 0 : i32
    %953 = vector.broadcast %c0_i32_222 : i32 to vector<2x5xi32>
    %954 = arith.select %952, %953, %951 : vector<2x5xi1>, vector<2x5xi32>
    %955 = vector.extract_strided_slice %0 {offsets = [0, 6], sizes = [2, 1], strides = [1, 1]} : vector<2x8xi32> to vector<2x1xi32>
    %c0_i32_223 = arith.constant 0 : i32
    %956 = vector.broadcast %c0_i32_223 : i32 to vector<2x1xi32>
    %957 = arith.cmpi sgt, %955, %956 : vector<2x1xi32>
    %958 = arith.addf %941, %694 : vector<2x5xf32>
    %959 = vector.shape_cast %957 : vector<2x1xi1> to vector<2x1xi1>
    %960 = vector.broadcast %959 : vector<2x1xi1> to vector<2x5xi1>
    %961 = arith.select %960, %958, %917 : vector<2x5xi1>, vector<2x5xf32>
    %962 = vector.extract_strided_slice %961 {offsets = [0, 0], sizes = [2, 1], strides = [1, 1]} : vector<2x5xf32> to vector<2x1xf32>
    %963 = vector.broadcast %962 : vector<2x1xf32> to vector<2x5xf32>
    %964 = vector.broadcast %683 : vector<1x5xf32> to vector<2x5xf32>
    %965 = arith.addf %963, %964 : vector<2x5xf32>
    %966 = vector.extract_strided_slice %961 {offsets = [0, 1], sizes = [2, 1], strides = [1, 1]} : vector<2x5xf32> to vector<2x1xf32>
    %967 = vector.broadcast %966 : vector<2x1xf32> to vector<2x5xf32>
    %968 = vector.broadcast %684 : vector<1x5xf32> to vector<2x5xf32>
    %969 = arith.addf %967, %968 : vector<2x5xf32>
    %970 = vector.extract_strided_slice %961 {offsets = [0, 2], sizes = [2, 1], strides = [1, 1]} : vector<2x5xf32> to vector<2x1xf32>
    %971 = vector.broadcast %970 : vector<2x1xf32> to vector<2x5xf32>
    %972 = vector.broadcast %685 : vector<1x5xf32> to vector<2x5xf32>
    %973 = arith.addf %971, %972 : vector<2x5xf32>
    %974 = vector.extract_strided_slice %961 {offsets = [0, 3], sizes = [2, 1], strides = [1, 1]} : vector<2x5xf32> to vector<2x1xf32>
    %975 = vector.broadcast %974 : vector<2x1xf32> to vector<2x5xf32>
    %976 = vector.broadcast %686 : vector<1x5xf32> to vector<2x5xf32>
    %977 = arith.addf %975, %976 : vector<2x5xf32>
    %978 = vector.extract_strided_slice %961 {offsets = [0, 4], sizes = [2, 1], strides = [1, 1]} : vector<2x5xf32> to vector<2x1xf32>
    %979 = vector.broadcast %978 : vector<2x1xf32> to vector<2x5xf32>
    %980 = vector.broadcast %687 : vector<1x5xf32> to vector<2x5xf32>
    %981 = arith.addf %979, %980 : vector<2x5xf32>
    %982 = arith.maximumf %965, %969 : vector<2x5xf32>
    %983 = arith.maximumf %982, %973 : vector<2x5xf32>
    %984 = arith.maximumf %983, %977 : vector<2x5xf32>
    %985 = arith.maximumf %984, %981 : vector<2x5xf32>
    %c4_i32_224 = arith.constant 4 : i32
    %986 = vector.broadcast %c4_i32_224 : i32 to vector<2x5xi32>
    %987 = arith.cmpf oge, %977, %985 : vector<2x5xf32>
    %c3_i32_225 = arith.constant 3 : i32
    %988 = vector.broadcast %c3_i32_225 : i32 to vector<2x5xi32>
    %989 = arith.select %987, %988, %986 : vector<2x5xi1>, vector<2x5xi32>
    %990 = arith.cmpf oge, %973, %985 : vector<2x5xf32>
    %c2_i32_226 = arith.constant 2 : i32
    %991 = vector.broadcast %c2_i32_226 : i32 to vector<2x5xi32>
    %992 = arith.select %990, %991, %989 : vector<2x5xi1>, vector<2x5xi32>
    %993 = arith.cmpf oge, %969, %985 : vector<2x5xf32>
    %c1_i32_227 = arith.constant 1 : i32
    %994 = vector.broadcast %c1_i32_227 : i32 to vector<2x5xi32>
    %995 = arith.select %993, %994, %992 : vector<2x5xi1>, vector<2x5xi32>
    %996 = arith.cmpf oge, %965, %985 : vector<2x5xf32>
    %c0_i32_228 = arith.constant 0 : i32
    %997 = vector.broadcast %c0_i32_228 : i32 to vector<2x5xi32>
    %998 = arith.select %996, %997, %995 : vector<2x5xi1>, vector<2x5xi32>
    %999 = vector.extract_strided_slice %0 {offsets = [0, 7], sizes = [2, 1], strides = [1, 1]} : vector<2x8xi32> to vector<2x1xi32>
    %c0_i32_229 = arith.constant 0 : i32
    %1000 = vector.broadcast %c0_i32_229 : i32 to vector<2x1xi32>
    %1001 = arith.cmpi sgt, %999, %1000 : vector<2x1xi32>
    %1002 = arith.addf %985, %695 : vector<2x5xf32>
    %1003 = vector.shape_cast %1001 : vector<2x1xi1> to vector<2x1xi1>
    %1004 = vector.broadcast %1003 : vector<2x1xi1> to vector<2x5xi1>
    %1005 = arith.select %1004, %1002, %961 : vector<2x5xi1>, vector<2x5xf32>
    %1006 = vector.broadcast %681 : vector<1x5xf32> to vector<2x5xf32>
    %1007 = arith.addf %1005, %1006 : vector<2x5xf32>
    %cst_230 = arith.constant dense<0xFF800000> : vector<2xf32>
    %1008 = vector.multi_reduction <maximumf>, %1007, %cst_230 [1] : vector<2x5xf32> to vector<2xf32>
    %1009 = vector.shape_cast %1008 : vector<2xf32> to vector<2x1xf32>
    %1010 = vector.broadcast %1009 : vector<2x1xf32> to vector<2x5xf32>
    %1011 = arith.cmpf oge, %1007, %1010 : vector<2x5xf32>
    %c5_i32 = arith.constant 5 : i32
    %1012 = vector.broadcast %c5_i32 : i32 to vector<2x5xi32>
    %1013 = arith.select %1011, %682, %1012 : vector<2x5xi1>, vector<2x5xi32>
    %cst_231 = arith.constant dense<2147483647> : vector<2xi32>
    %1014 = vector.multi_reduction <minsi>, %1013, %cst_231 [1] : vector<2x5xi32> to vector<2xi32>
    %1015 = vector.shape_cast %1014 : vector<2xi32> to vector<2x1xi32>
    %1016 = tpu.iota {dimensions = array<i32: 1>} : vector<2x8xi32>
    %c0_i32_232 = arith.constant 0 : i32
    %1017 = vector.broadcast %c0_i32_232 : i32 to vector<2x8xi32>
    %1018 = vector.extract_strided_slice %0 {offsets = [0, 7], sizes = [2, 1], strides = [1, 1]} : vector<2x8xi32> to vector<2x1xi32>
    %c0_i32_233 = arith.constant 0 : i32
    %1019 = vector.broadcast %c0_i32_233 : i32 to vector<2x1xi32>
    %1020 = arith.cmpi sgt, %1018, %1019 : vector<2x1xi32>
    %1021 = arith.select %1020, %1015, %1015 : vector<2x1xi1>, vector<2x1xi32>
    %c7_i32 = arith.constant 7 : i32
    %1022 = vector.broadcast %c7_i32 : i32 to vector<2x8xi32>
    %1023 = arith.cmpi eq, %1016, %1022 : vector<2x8xi32>
    %1024 = vector.broadcast %1020 : vector<2x1xi1> to vector<2x8xi1>
    %1025 = arith.andi %1023, %1024 : vector<2x8xi1>
    %1026 = vector.shape_cast %1021 : vector<2x1xi32> to vector<2x1xi32>
    %1027 = vector.broadcast %1026 : vector<2x1xi32> to vector<2x8xi32>
    %1028 = arith.select %1025, %1027, %1017 : vector<2x8xi1>, vector<2x8xi32>
    %1029 = vector.extract_strided_slice %0 {offsets = [0, 6], sizes = [2, 1], strides = [1, 1]} : vector<2x8xi32> to vector<2x1xi32>
    %c0_i32_234 = arith.constant 0 : i32
    %1030 = vector.broadcast %c0_i32_234 : i32 to vector<2x1xi32>
    %1031 = arith.cmpi sgt, %1029, %1030 : vector<2x1xi32>
    %1032 = vector.extract_strided_slice %0 {offsets = [0, 7], sizes = [2, 1], strides = [1, 1]} : vector<2x8xi32> to vector<2x1xi32>
    %c0_i32_235 = arith.constant 0 : i32
    %1033 = vector.broadcast %c0_i32_235 : i32 to vector<2x1xi32>
    %1034 = arith.cmpi eq, %1032, %1033 : vector<2x1xi32>
    %1035 = arith.andi %1031, %1034 : vector<2x1xi1>
    %1036 = vector.broadcast %1021 : vector<2x1xi32> to vector<2x5xi32>
    %1037 = arith.cmpi eq, %682, %1036 : vector<2x5xi32>
    %c0_i32_236 = arith.constant 0 : i32
    %1038 = vector.broadcast %c0_i32_236 : i32 to vector<2x5xi32>
    %1039 = arith.select %1037, %998, %1038 : vector<2x5xi1>, vector<2x5xi32>
    %cst_237 = arith.constant dense<0> : vector<2xi32>
    %1040 = vector.multi_reduction <add>, %1039, %cst_237 [1] : vector<2x5xi32> to vector<2xi32>
    %1041 = vector.shape_cast %1040 : vector<2xi32> to vector<2x1xi32>
    %1042 = arith.select %1035, %1015, %1041 : vector<2x1xi1>, vector<2x1xi32>
    %1043 = arith.select %1031, %1042, %1021 : vector<2x1xi1>, vector<2x1xi32>
    %c6_i32 = arith.constant 6 : i32
    %1044 = vector.broadcast %c6_i32 : i32 to vector<2x8xi32>
    %1045 = arith.cmpi eq, %1016, %1044 : vector<2x8xi32>
    %1046 = vector.broadcast %1031 : vector<2x1xi1> to vector<2x8xi1>
    %1047 = arith.andi %1045, %1046 : vector<2x8xi1>
    %1048 = vector.shape_cast %1043 : vector<2x1xi32> to vector<2x1xi32>
    %1049 = vector.broadcast %1048 : vector<2x1xi32> to vector<2x8xi32>
    %1050 = arith.select %1047, %1049, %1028 : vector<2x8xi1>, vector<2x8xi32>
    %1051 = vector.extract_strided_slice %0 {offsets = [0, 5], sizes = [2, 1], strides = [1, 1]} : vector<2x8xi32> to vector<2x1xi32>
    %c0_i32_238 = arith.constant 0 : i32
    %1052 = vector.broadcast %c0_i32_238 : i32 to vector<2x1xi32>
    %1053 = arith.cmpi sgt, %1051, %1052 : vector<2x1xi32>
    %1054 = vector.extract_strided_slice %0 {offsets = [0, 6], sizes = [2, 1], strides = [1, 1]} : vector<2x8xi32> to vector<2x1xi32>
    %c0_i32_239 = arith.constant 0 : i32
    %1055 = vector.broadcast %c0_i32_239 : i32 to vector<2x1xi32>
    %1056 = arith.cmpi eq, %1054, %1055 : vector<2x1xi32>
    %1057 = arith.andi %1053, %1056 : vector<2x1xi1>
    %1058 = vector.broadcast %1043 : vector<2x1xi32> to vector<2x5xi32>
    %1059 = arith.cmpi eq, %682, %1058 : vector<2x5xi32>
    %c0_i32_240 = arith.constant 0 : i32
    %1060 = vector.broadcast %c0_i32_240 : i32 to vector<2x5xi32>
    %1061 = arith.select %1059, %954, %1060 : vector<2x5xi1>, vector<2x5xi32>
    %cst_241 = arith.constant dense<0> : vector<2xi32>
    %1062 = vector.multi_reduction <add>, %1061, %cst_241 [1] : vector<2x5xi32> to vector<2xi32>
    %1063 = vector.shape_cast %1062 : vector<2xi32> to vector<2x1xi32>
    %1064 = arith.select %1057, %1015, %1063 : vector<2x1xi1>, vector<2x1xi32>
    %1065 = arith.select %1053, %1064, %1043 : vector<2x1xi1>, vector<2x1xi32>
    %c5_i32_242 = arith.constant 5 : i32
    %1066 = vector.broadcast %c5_i32_242 : i32 to vector<2x8xi32>
    %1067 = arith.cmpi eq, %1016, %1066 : vector<2x8xi32>
    %1068 = vector.broadcast %1053 : vector<2x1xi1> to vector<2x8xi1>
    %1069 = arith.andi %1067, %1068 : vector<2x8xi1>
    %1070 = vector.shape_cast %1065 : vector<2x1xi32> to vector<2x1xi32>
    %1071 = vector.broadcast %1070 : vector<2x1xi32> to vector<2x8xi32>
    %1072 = arith.select %1069, %1071, %1050 : vector<2x8xi1>, vector<2x8xi32>
    %1073 = vector.extract_strided_slice %0 {offsets = [0, 4], sizes = [2, 1], strides = [1, 1]} : vector<2x8xi32> to vector<2x1xi32>
    %c0_i32_243 = arith.constant 0 : i32
    %1074 = vector.broadcast %c0_i32_243 : i32 to vector<2x1xi32>
    %1075 = arith.cmpi sgt, %1073, %1074 : vector<2x1xi32>
    %1076 = vector.extract_strided_slice %0 {offsets = [0, 5], sizes = [2, 1], strides = [1, 1]} : vector<2x8xi32> to vector<2x1xi32>
    %c0_i32_244 = arith.constant 0 : i32
    %1077 = vector.broadcast %c0_i32_244 : i32 to vector<2x1xi32>
    %1078 = arith.cmpi eq, %1076, %1077 : vector<2x1xi32>
    %1079 = arith.andi %1075, %1078 : vector<2x1xi1>
    %1080 = vector.broadcast %1065 : vector<2x1xi32> to vector<2x5xi32>
    %1081 = arith.cmpi eq, %682, %1080 : vector<2x5xi32>
    %c0_i32_245 = arith.constant 0 : i32
    %1082 = vector.broadcast %c0_i32_245 : i32 to vector<2x5xi32>
    %1083 = arith.select %1081, %910, %1082 : vector<2x5xi1>, vector<2x5xi32>
    %cst_246 = arith.constant dense<0> : vector<2xi32>
    %1084 = vector.multi_reduction <add>, %1083, %cst_246 [1] : vector<2x5xi32> to vector<2xi32>
    %1085 = vector.shape_cast %1084 : vector<2xi32> to vector<2x1xi32>
    %1086 = arith.select %1079, %1015, %1085 : vector<2x1xi1>, vector<2x1xi32>
    %1087 = arith.select %1075, %1086, %1065 : vector<2x1xi1>, vector<2x1xi32>
    %c4_i32_247 = arith.constant 4 : i32
    %1088 = vector.broadcast %c4_i32_247 : i32 to vector<2x8xi32>
    %1089 = arith.cmpi eq, %1016, %1088 : vector<2x8xi32>
    %1090 = vector.broadcast %1075 : vector<2x1xi1> to vector<2x8xi1>
    %1091 = arith.andi %1089, %1090 : vector<2x8xi1>
    %1092 = vector.shape_cast %1087 : vector<2x1xi32> to vector<2x1xi32>
    %1093 = vector.broadcast %1092 : vector<2x1xi32> to vector<2x8xi32>
    %1094 = arith.select %1091, %1093, %1072 : vector<2x8xi1>, vector<2x8xi32>
    %1095 = vector.extract_strided_slice %0 {offsets = [0, 3], sizes = [2, 1], strides = [1, 1]} : vector<2x8xi32> to vector<2x1xi32>
    %c0_i32_248 = arith.constant 0 : i32
    %1096 = vector.broadcast %c0_i32_248 : i32 to vector<2x1xi32>
    %1097 = arith.cmpi sgt, %1095, %1096 : vector<2x1xi32>
    %1098 = vector.extract_strided_slice %0 {offsets = [0, 4], sizes = [2, 1], strides = [1, 1]} : vector<2x8xi32> to vector<2x1xi32>
    %c0_i32_249 = arith.constant 0 : i32
    %1099 = vector.broadcast %c0_i32_249 : i32 to vector<2x1xi32>
    %1100 = arith.cmpi eq, %1098, %1099 : vector<2x1xi32>
    %1101 = arith.andi %1097, %1100 : vector<2x1xi1>
    %1102 = vector.broadcast %1087 : vector<2x1xi32> to vector<2x5xi32>
    %1103 = arith.cmpi eq, %682, %1102 : vector<2x5xi32>
    %c0_i32_250 = arith.constant 0 : i32
    %1104 = vector.broadcast %c0_i32_250 : i32 to vector<2x5xi32>
    %1105 = arith.select %1103, %866, %1104 : vector<2x5xi1>, vector<2x5xi32>
    %cst_251 = arith.constant dense<0> : vector<2xi32>
    %1106 = vector.multi_reduction <add>, %1105, %cst_251 [1] : vector<2x5xi32> to vector<2xi32>
    %1107 = vector.shape_cast %1106 : vector<2xi32> to vector<2x1xi32>
    %1108 = arith.select %1101, %1015, %1107 : vector<2x1xi1>, vector<2x1xi32>
    %1109 = arith.select %1097, %1108, %1087 : vector<2x1xi1>, vector<2x1xi32>
    %c3_i32_252 = arith.constant 3 : i32
    %1110 = vector.broadcast %c3_i32_252 : i32 to vector<2x8xi32>
    %1111 = arith.cmpi eq, %1016, %1110 : vector<2x8xi32>
    %1112 = vector.broadcast %1097 : vector<2x1xi1> to vector<2x8xi1>
    %1113 = arith.andi %1111, %1112 : vector<2x8xi1>
    %1114 = vector.shape_cast %1109 : vector<2x1xi32> to vector<2x1xi32>
    %1115 = vector.broadcast %1114 : vector<2x1xi32> to vector<2x8xi32>
    %1116 = arith.select %1113, %1115, %1094 : vector<2x8xi1>, vector<2x8xi32>
    %1117 = vector.extract_strided_slice %0 {offsets = [0, 2], sizes = [2, 1], strides = [1, 1]} : vector<2x8xi32> to vector<2x1xi32>
    %c0_i32_253 = arith.constant 0 : i32
    %1118 = vector.broadcast %c0_i32_253 : i32 to vector<2x1xi32>
    %1119 = arith.cmpi sgt, %1117, %1118 : vector<2x1xi32>
    %1120 = vector.extract_strided_slice %0 {offsets = [0, 3], sizes = [2, 1], strides = [1, 1]} : vector<2x8xi32> to vector<2x1xi32>
    %c0_i32_254 = arith.constant 0 : i32
    %1121 = vector.broadcast %c0_i32_254 : i32 to vector<2x1xi32>
    %1122 = arith.cmpi eq, %1120, %1121 : vector<2x1xi32>
    %1123 = arith.andi %1119, %1122 : vector<2x1xi1>
    %1124 = vector.broadcast %1109 : vector<2x1xi32> to vector<2x5xi32>
    %1125 = arith.cmpi eq, %682, %1124 : vector<2x5xi32>
    %c0_i32_255 = arith.constant 0 : i32
    %1126 = vector.broadcast %c0_i32_255 : i32 to vector<2x5xi32>
    %1127 = arith.select %1125, %822, %1126 : vector<2x5xi1>, vector<2x5xi32>
    %cst_256 = arith.constant dense<0> : vector<2xi32>
    %1128 = vector.multi_reduction <add>, %1127, %cst_256 [1] : vector<2x5xi32> to vector<2xi32>
    %1129 = vector.shape_cast %1128 : vector<2xi32> to vector<2x1xi32>
    %1130 = arith.select %1123, %1015, %1129 : vector<2x1xi1>, vector<2x1xi32>
    %1131 = arith.select %1119, %1130, %1109 : vector<2x1xi1>, vector<2x1xi32>
    %c2_i32_257 = arith.constant 2 : i32
    %1132 = vector.broadcast %c2_i32_257 : i32 to vector<2x8xi32>
    %1133 = arith.cmpi eq, %1016, %1132 : vector<2x8xi32>
    %1134 = vector.broadcast %1119 : vector<2x1xi1> to vector<2x8xi1>
    %1135 = arith.andi %1133, %1134 : vector<2x8xi1>
    %1136 = vector.shape_cast %1131 : vector<2x1xi32> to vector<2x1xi32>
    %1137 = vector.broadcast %1136 : vector<2x1xi32> to vector<2x8xi32>
    %1138 = arith.select %1135, %1137, %1116 : vector<2x8xi1>, vector<2x8xi32>
    %1139 = vector.extract_strided_slice %0 {offsets = [0, 1], sizes = [2, 1], strides = [1, 1]} : vector<2x8xi32> to vector<2x1xi32>
    %c0_i32_258 = arith.constant 0 : i32
    %1140 = vector.broadcast %c0_i32_258 : i32 to vector<2x1xi32>
    %1141 = arith.cmpi sgt, %1139, %1140 : vector<2x1xi32>
    %1142 = vector.extract_strided_slice %0 {offsets = [0, 2], sizes = [2, 1], strides = [1, 1]} : vector<2x8xi32> to vector<2x1xi32>
    %c0_i32_259 = arith.constant 0 : i32
    %1143 = vector.broadcast %c0_i32_259 : i32 to vector<2x1xi32>
    %1144 = arith.cmpi eq, %1142, %1143 : vector<2x1xi32>
    %1145 = arith.andi %1141, %1144 : vector<2x1xi1>
    %1146 = vector.broadcast %1131 : vector<2x1xi32> to vector<2x5xi32>
    %1147 = arith.cmpi eq, %682, %1146 : vector<2x5xi32>
    %c0_i32_260 = arith.constant 0 : i32
    %1148 = vector.broadcast %c0_i32_260 : i32 to vector<2x5xi32>
    %1149 = arith.select %1147, %778, %1148 : vector<2x5xi1>, vector<2x5xi32>
    %cst_261 = arith.constant dense<0> : vector<2xi32>
    %1150 = vector.multi_reduction <add>, %1149, %cst_261 [1] : vector<2x5xi32> to vector<2xi32>
    %1151 = vector.shape_cast %1150 : vector<2xi32> to vector<2x1xi32>
    %1152 = arith.select %1145, %1015, %1151 : vector<2x1xi1>, vector<2x1xi32>
    %1153 = arith.select %1141, %1152, %1131 : vector<2x1xi1>, vector<2x1xi32>
    %c1_i32_262 = arith.constant 1 : i32
    %1154 = vector.broadcast %c1_i32_262 : i32 to vector<2x8xi32>
    %1155 = arith.cmpi eq, %1016, %1154 : vector<2x8xi32>
    %1156 = vector.broadcast %1141 : vector<2x1xi1> to vector<2x8xi1>
    %1157 = arith.andi %1155, %1156 : vector<2x8xi1>
    %1158 = vector.shape_cast %1153 : vector<2x1xi32> to vector<2x1xi32>
    %1159 = vector.broadcast %1158 : vector<2x1xi32> to vector<2x8xi32>
    %1160 = arith.select %1157, %1159, %1138 : vector<2x8xi1>, vector<2x8xi32>
    %1161 = vector.extract_strided_slice %0 {offsets = [0, 0], sizes = [2, 1], strides = [1, 1]} : vector<2x8xi32> to vector<2x1xi32>
    %c0_i32_263 = arith.constant 0 : i32
    %1162 = vector.broadcast %c0_i32_263 : i32 to vector<2x1xi32>
    %1163 = arith.cmpi sgt, %1161, %1162 : vector<2x1xi32>
    %1164 = vector.extract_strided_slice %0 {offsets = [0, 1], sizes = [2, 1], strides = [1, 1]} : vector<2x8xi32> to vector<2x1xi32>
    %c0_i32_264 = arith.constant 0 : i32
    %1165 = vector.broadcast %c0_i32_264 : i32 to vector<2x1xi32>
    %1166 = arith.cmpi eq, %1164, %1165 : vector<2x1xi32>
    %1167 = arith.andi %1163, %1166 : vector<2x1xi1>
    %1168 = vector.broadcast %1153 : vector<2x1xi32> to vector<2x5xi32>
    %1169 = arith.cmpi eq, %682, %1168 : vector<2x5xi32>
    %c0_i32_265 = arith.constant 0 : i32
    %1170 = vector.broadcast %c0_i32_265 : i32 to vector<2x5xi32>
    %1171 = arith.select %1169, %734, %1170 : vector<2x5xi1>, vector<2x5xi32>
    %cst_266 = arith.constant dense<0> : vector<2xi32>
    %1172 = vector.multi_reduction <add>, %1171, %cst_266 [1] : vector<2x5xi32> to vector<2xi32>
    %1173 = vector.shape_cast %1172 : vector<2xi32> to vector<2x1xi32>
    %1174 = arith.select %1167, %1015, %1173 : vector<2x1xi1>, vector<2x1xi32>
    %1175 = arith.select %1163, %1174, %1153 : vector<2x1xi1>, vector<2x1xi32>
    %c0_i32_267 = arith.constant 0 : i32
    %1176 = vector.broadcast %c0_i32_267 : i32 to vector<2x8xi32>
    %1177 = arith.cmpi eq, %1016, %1176 : vector<2x8xi32>
    %1178 = vector.broadcast %1163 : vector<2x1xi1> to vector<2x8xi1>
    %1179 = arith.andi %1177, %1178 : vector<2x8xi1>
    %1180 = vector.shape_cast %1175 : vector<2x1xi32> to vector<2x1xi32>
    %1181 = vector.broadcast %1180 : vector<2x1xi32> to vector<2x8xi32>
    %1182 = arith.select %1179, %1181, %1160 : vector<2x8xi1>, vector<2x8xi32>
    %c0_268 = arith.constant 0 : index
    %c0_269 = arith.constant 0 : index
    %1183 = vector.load %arg48[%c0_268, %c0_269] : memref<2x8xi32, #tpu.memory_space<vmem>>, vector<2x8xi32>
    tpu.vector_store %arg48[%c0_268, %c0_269], %1182 {strides = array<i32>} : memref<2x8xi32, #tpu.memory_space<vmem>>, vector<2x8xi32>,
    return
  }
}

</mosaic_0001>

<bundles_post_ra>
// kernel: bert_bilstm_crf_forward.1
= control target key start
LH: loop header
LB: loop body
LE: loop exit
PB: predicated region body
PF: predicated region fallthrough
CT: control target
= control target key end

     0   :  { %s7012_s6 = smov 1   ;;  %s7013_s10 = smov 2   ;;  %s8371_s0 = inlined_call_operand.smem [shape: u32[50], index: -1, kind: input, shape index: {}] }
   0x1   :  { %s7096_s5 = sld [smem:[%s8371_s0]]   ;;  %s7014_s14 = smov 3  }
   0x2   :  { %s7101_s9 = sld [smem:[%s8371_s0 + %s7012_s6]]   ;;  %s7015_s18 = smov 4  }
   0x3   :  { %s7106_s13 = sld [smem:[%s8371_s0 + %s7013_s10]]   ;;  %s7016_s22 = smov 5  }
   0x4   :  { %s7111_s17 = sld [smem:[%s8371_s0 + %s7014_s14]]   ;;  %s7017_s26 = smov 6  }
   0x5   :  { %s7116_s21 = sld [smem:[%s8371_s0 + %s7015_s18]]   ;;  %s7018_s30 = smov 7  }
   0x6   :  { %s7121_s25 = sld [smem:[%s8371_s0 + %s7016_s22]]   ;;  %s7019_s4 = smov 8  }
   0x7   :  { %s7126_s29 = sld [smem:[%s8371_s0 + %s7017_s26]]   ;;  %s7020_s10 = smov 9  }
   0x8   :  { %8387 = sst [smem:[#allocation19_spill]] %s7101_s9  ;;  %s7021_s15 = smov 10  }
   0x9   :  { %8388 = sst [smem:[#allocation20_spill]] %s7106_s13  ;;  %s7022_s20 = smov 11  }
   0xa   :  { %s7131_s3 = sld [smem:[%s8371_s0 + %s7018_s30]]   ;;  %s7023_s26 = smov 12  }
   0xb   :  { %s7136_s8 = sld [smem:[%s8371_s0 + %s7019_s4]]   ;;  %s7024_s1 = smov 13  }
   0xc   :  { %s7141_s14 = sld [smem:[%s8371_s0 + %s7020_s10]]   ;;  %s7025_s7 = smov 14  }
   0xd   :  { %s7146_s19 = sld [smem:[%s8371_s0 + %s7021_s15]]   ;;  %s7026_s15 = smov 15  }
   0xe   :  { %s7151_s24 = sld [smem:[%s8371_s0 + %s7022_s20]]   ;;  %s7027_s22 = smov 16  }
   0xf   :  { %s7156_s30 = sld [smem:[%s8371_s0 + %s7023_s26]]   ;;  %s7028_s28 = smov 17  }
  0x10   :  { %s7161_s6 = sld [smem:[%s8371_s0 + %s7024_s1]]  }
  0x11   :  { %s7166_s12 = sld [smem:[%s8371_s0 + %s7025_s7]]   ;;  %s7029_s7 = smov 18  }
  0x12   :  { %s7171_s20 = sld [smem:[%s8371_s0 + %s7026_s15]]   ;;  %s7030_s15 = smov 19  }
  0x13   :  { %s7176_s27 = sld [smem:[%s8371_s0 + %s7027_s22]]   ;;  %s7031_s22 = smov 20  }
  0x14   :  { %8389 = sst [smem:[#allocation21_spill]] %s7151_s24 }
  0x15   :  { %8390 = sst [smem:[#allocation22_spill]] %s7156_s30 }
  0x16   :  { %8391 = sst [smem:[#allocation23_spill]] %s7161_s6 }
  0x17   :  { %8392 = sst [smem:[#allocation24_spill]] %s7166_s12 }
  0x18   :  { %8393 = sst [smem:[#allocation25_spill]] %s7171_s20 }
  0x19   :  { %8394 = sst [smem:[#allocation26_spill]] %s7176_s27 }
  0x1a   :  { %s7181_s4 = sld [smem:[%s8371_s0 + %s7028_s28]]   ;;  %s7032_s28 = smov 21  }
  0x1b   :  { %s7186_s13 = sld [smem:[%s8371_s0 + %s7029_s7]]   ;;  %s7033_s7 = smov 22  }
  0x1c   :  { %s7191_s12 = sld [smem:[%s8371_s0 + %s7030_s15]]   ;;  %s7034_s15 = smov 23  }
  0x1d   :  { %s7196_s27 = sld [smem:[%s8371_s0 + %s7031_s22]]   ;;  %s7035_s22 = smov 24  }
  0x20   :  { %8395 = sst [smem:[#allocation27_spill]] %s7181_s4 }
  0x21   :  { %8396 = sst [smem:[#allocation28_spill]] %s7186_s13 }
  0x22   :  { %8397 = sst [smem:[#allocation29_spill]] %s7191_s12 }
  0x23   :  { %8398 = sst [smem:[#allocation30_spill]] %s7196_s27 }
  0x24   :  { %s7201_s4 = sld [smem:[%s8371_s0 + %s7032_s28]]   ;;  %s7036_s28 = smov 25  }
  0x25   :  { %s7206_s13 = sld [smem:[%s8371_s0 + %s7033_s7]]   ;;  %s7037_s7 = smov 26  }
  0x26   :  { %s7211_s12 = sld [smem:[%s8371_s0 + %s7034_s15]]   ;;  %s7038_s15 = smov 27  }
  0x27   :  { %s7216_s27 = sld [smem:[%s8371_s0 + %s7035_s22]]   ;;  %s7039_s22 = smov 28  }
  0x2a   :  { %8399 = sst [smem:[#allocation31_spill]] %s7201_s4 }
  0x2b   :  { %8400 = sst [smem:[#allocation32_spill]] %s7206_s13 }
  0x2c   :  { %8401 = sst [smem:[#allocation33_spill]] %s7211_s12 }
  0x2d   :  { %8402 = sst [smem:[#allocation34_spill]] %s7216_s27 }
  0x2e   :  { %s7221_s4 = sld [smem:[%s8371_s0 + %s7036_s28]]   ;;  %s7040_s28 = smov 29  }
  0x2f   :  { %s7226_s13 = sld [smem:[%s8371_s0 + %s7037_s7]]   ;;  %s7041_s7 = smov 30  }
  0x30   :  { %s7231_s12 = sld [smem:[%s8371_s0 + %s7038_s15]]   ;;  %s7042_s15 = smov 31  }
  0x31   :  { %s7236_s27 = sld [smem:[%s8371_s0 + %s7039_s22]]   ;;  %s7043_s22 = smov 32  }
  0x34   :  { %8403 = sst [smem:[#allocation35_spill]] %s7221_s4 }
  0x35   :  { %8404 = sst [smem:[#allocation36_spill]] %s7226_s13 }
  0x36   :  { %8405 = sst [smem:[#allocation37_spill]] %s7231_s12 }
  0x37   :  { %8406 = sst [smem:[#allocation38_spill]] %s7236_s27 }
  0x38   :  { %s7241_s4 = sld [smem:[%s8371_s0 + %s7040_s28]]   ;;  %s7044_s28 = smov 33  }
  0x39   :  { %s7246_s13 = sld [smem:[%s8371_s0 + %s7041_s7]]   ;;  %s7045_s7 = smov 34  }
  0x3a   :  { %s7251_s12 = sld [smem:[%s8371_s0 + %s7042_s15]]   ;;  %s7046_s15 = smov 35  }
  0x3b   :  { %s7256_s27 = sld [smem:[%s8371_s0 + %s7043_s22]]   ;;  %s7047_s22 = smov 36  }
  0x3e   :  { %8407 = sst [smem:[#allocation39_spill]] %s7241_s4 }
  0x3f   :  { %8408 = sst [smem:[#allocation40_spill]] %s7246_s13 }
  0x40   :  { %8409 = sst [smem:[#allocation41_spill]] %s7251_s12 }
  0x41   :  { %8410 = sst [smem:[#allocation42_spill]] %s7256_s27 }
  0x42   :  { %s7261_s4 = sld [smem:[%s8371_s0 + %s7044_s28]]   ;;  %s7048_s28 = smov 37  }
  0x43   :  { %s7266_s13 = sld [smem:[%s8371_s0 + %s7045_s7]]   ;;  %s7049_s7 = smov 38  }
  0x44   :  { %s7271_s12 = sld [smem:[%s8371_s0 + %s7046_s15]]   ;;  %s7050_s15 = smov 39  }
  0x45   :  { %s7276_s27 = sld [smem:[%s8371_s0 + %s7047_s22]]   ;;  %s7051_s22 = smov 40  }
  0x46   :  { %s7291_s6 = sld [smem:[%s8371_s0 + %s7050_s15]]   ;;  %s7054_s15 = smov 43  }
  0x47   :  { %s7296_s20 = sld [smem:[%s8371_s0 + %s7051_s22]]   ;;  %s7055_s22 = smov 44  }
  0x48   :  { %8411 = sst [smem:[#allocation43_spill]] %s7261_s4 }
  0x49   :  { %8412 = sst [smem:[#allocation44_spill]] %s7266_s13 }
  0x4a   :  { %s7281_s4 = sld [smem:[%s8371_s0 + %s7048_s28]]   ;;  %s7052_s28 = smov 41  }
  0x4b   :  { %s7286_s13 = sld [smem:[%s8371_s0 + %s7049_s7]]   ;;  %s7053_s7 = smov 42  }
  0x4c   :  { %s7311_s30 = sld [smem:[%s8371_s0 + %s7054_s15]]   ;;  %s7058_s15 = smov 47  }
  0x4d   :  { %8415 = sst [smem:[#allocation47_spill]] %s7296_s20 }
  0x4e   :  { %s7316_s20 = sld [smem:[%s8371_s0 + %s7055_s22]]   ;;  %s7059_s22 = smov 48  }
  0x50   :  { %8413 = sst [smem:[#allocation45_spill]] %s7281_s4 }
  0x51   :  { %8414 = sst [smem:[#allocation46_spill]] %s7286_s13 }
  0x52   :  { %s7301_s4 = sld [smem:[%s8371_s0 + %s7052_s28]]   ;;  %s7056_s28 = smov 45  }
  0x53   :  { %s7306_s13 = sld [smem:[%s8371_s0 + %s7053_s7]]   ;;  %s7057_s7 = smov 46  }
  0x54   :  { %8417 = sst [smem:[#allocation49_spill]] %s7311_s30 }
  0x55   :  { %8418 = sst [smem:[#allocation50_spill]] %s7316_s20 }
  0x56   :  { %s7326_s24 = sld [smem:[%s8371_s0 + %s7057_s7]]  }
  0x57   :  { %s7331_s30 = sld [smem:[%s8371_s0 + %s7058_s15]]  }
  0x58   :  { %8416 = sst [smem:[#allocation48_spill]] %s7301_s4 }
  0x59   :  { %s7321_s4 = sld [smem:[%s8371_s0 + %s7056_s28]]   ;;  %s7060_s28 = smov 49  }
  0x5a   :  { %s7336_s20 = sld [smem:[%s8371_s0 + %s7059_s22]]  }
  0x5b   :  { %s7341_s9 = sld [smem:[%s8371_s0 + %s7060_s28]]  }
  0x5c   :  { %105 = vsyncpa [#allocation3], 0 }
  0x5d   :  { %106 = vsyncpa [#allocation6], 0 }
  0x5e   :  { %107 = vsyncpa [#allocation9], 0 }
  0x5f   :  { %108 = vsyncpa [#allocation12], 0 }
  0x60   :  { %109 = vsyncpa [#allocation4], 0  ;;  %s7061_s7 = smov [#allocation5]   ;;  %s7062_s11 = smov [#allocation8]  }
  0x61   :  { %s196_s10 = sshll.u32 %s7061_s7, 4  ;;  %s224_s15 = sshll.u32 %s7062_s11, 4  ;;  %s197_s10 = int_to_ptr.vmem [resolvable:$true] %s196_s10  ;;  %s225_s15 = int_to_ptr.vmem [resolvable:$true] %s224_s15 }
  0x62   :  { %s6848_s16 = scalar_lea.hbm %s7276_s27, 16 }
  0x63   :  { %p6849_p0 = scmp.ne.s32.totalorder %s7276_s27, %s6848_s16  ;;  %p6852_p1 = scmp.lt.u32.totalorder %s6848_s16, %s7276_s27 }
  0x65   :  { %p6854_p2 = pnand %p6852_p1, %p6849_p0 }
  0x67   :  { %6857 = shalt.err (!%p6854_p2)
}
  0x68   :  { %s6858_s0 = scalar_lea.vmem %s197_s10, 16  ;;  %s6862_s18 = scalar_lea.vmem %s197_s10, 32 }
  0x69   :  { %p6859_p3 = scmp.ne.s32.totalorder %s197_s10, %s6858_s0  ;;  %p6863_p4 = scmp.lt.s32.totalorder %s197_s10, %s197_s10 }
  0x6a   :  { %p6864_p5 = scmp.lt.s32.totalorder %s6862_s18, %s6858_s0 }
  0x6c   :  { %p6865_p6 = por %p6864_p5, %p6863_p4 }
  0x6e   :  { %p6866_p7 = pnand %p6865_p6, %p6859_p3 }
  0x70   :  { %6869 = shalt.err (!%p6866_p7)
}
  0x71   :  { %199 = dma.hbm_to_vmem [thread:$0]  %s7276_s27, 16, %s197_s10, [#allocation6]  }
  0x72   :  { %s6870_s22 = scalar_lea.hbm %s7306_s13, 16 }
  0x73   :  { %p6871_p8 = scmp.ne.s32.totalorder %s7306_s13, %s6870_s22  ;;  %p6874_p9 = scmp.lt.u32.totalorder %s6870_s22, %s7306_s13 }
  0x75   :  { %p6876_p10 = pnand %p6874_p9, %p6871_p8 }
  0x77   :  { %6879 = shalt.err (!%p6876_p10)
}
  0x78   :  { %s6880_s23 = scalar_lea.vmem %s225_s15, 16  ;;  %s6884_s26 = scalar_lea.vmem %s225_s15, 32 }
  0x79   :  { %p6881_p11 = scmp.ne.s32.totalorder %s225_s15, %s6880_s23  ;;  %p6885_p12 = scmp.lt.s32.totalorder %s225_s15, %s225_s15 }
  0x7a   :  { %p6886_p13 = scmp.lt.s32.totalorder %s6884_s26, %s6880_s23 }
  0x7c   :  { %p6887_p0 = por %p6886_p13, %p6885_p12 }
  0x7e   :  { %p6888_p1 = pnand %p6887_p0, %p6881_p11 }
  0x80   :  { %6891 = shalt.err (!%p6888_p1)
}
  0x81   :  { %227 = dma.hbm_to_vmem [thread:$0]  %s7306_s13, 16, %s225_s15, [#allocation9]  }
  0x82   :  { %s7063_s28 = smov [#allocation2]   ;;  %s7064_s1 = smov [#allocation7]  }
  0x83   :  { %s186_s27 = sshll.u32 %s7063_s28, 4  ;;  %s210_s2 = sshll.u32 %s7064_s1, 4  ;;  %s187_s27 = int_to_ptr.vmem [resolvable:$true] %s186_s27  ;;  %s211_s2 = int_to_ptr.vmem [resolvable:$true] %s210_s2 }
  0x84   :  { %s6892_s7 = scalar_lea.hbm %s7271_s12, 16 }
  0x85   :  { %p6893_p2 = scmp.ne.s32.totalorder %s7271_s12, %s6892_s7  ;;  %p6896_p3 = scmp.lt.u32.totalorder %s6892_s7, %s7271_s12 }
  0x87   :  { %p6898_p4 = pnand %p6896_p3, %p6893_p2 }
  0x89   :  { %6901 = shalt.err (!%p6898_p4)
}
  0x8a   :  { %s6902_s10 = scalar_lea.vmem %s187_s27, 16  ;;  %s6906_s11 = scalar_lea.vmem %s187_s27, 32 }
  0x8b   :  { %p6903_p5 = scmp.ne.s32.totalorder %s187_s27, %s6902_s10  ;;  %p6907_p6 = scmp.lt.s32.totalorder %s187_s27, %s187_s27 }
  0x8c   :  { %p6908_p7 = scmp.lt.s32.totalorder %s6906_s11, %s6902_s10 }
  0x8e   :  { %p6909_p8 = por %p6908_p7, %p6907_p6 }
  0x90   :  { %p6910_p9 = pnand %p6909_p8, %p6903_p5 }
  0x92   :  { %6913 = shalt.err (!%p6910_p9)
}
  0x93   :  { %189 = dma.hbm_to_vmem [thread:$0]  %s7271_s12, 16, %s187_s27, [#allocation3]  }
  0x94   :  { %s6914_s13 = scalar_lea.hbm %s7291_s6, 16 }
  0x95   :  { %p6915_p10 = scmp.ne.s32.totalorder %s7291_s6, %s6914_s13  ;;  %p6918_p11 = scmp.lt.u32.totalorder %s6914_s13, %s7291_s6 }
  0x97   :  { %p6920_p12 = pnand %p6918_p11, %p6915_p10 }
  0x99   :  { %6923 = shalt.err (!%p6920_p12)
}
  0x9a   :  { %s6924_s15 = scalar_lea.vmem %s211_s2, 16  ;;  %s6928_s16 = scalar_lea.vmem %s211_s2, 32 }
  0x9b   :  { %p6925_p13 = scmp.ne.s32.totalorder %s211_s2, %s6924_s15  ;;  %p6929_p0 = scmp.lt.s32.totalorder %s211_s2, %s211_s2 }
  0x9c   :  { %p6930_p1 = scmp.lt.s32.totalorder %s6928_s16, %s6924_s15 }
  0x9e   :  { %p6931_p2 = por %p6930_p1, %p6929_p0 }
  0xa0   :  { %p6932_p3 = pnand %p6931_p2, %p6925_p13 }
  0xa2   :  { %6935 = shalt.err (!%p6932_p3)
}
  0xa3   :  { %213 = dma.hbm_to_vmem [thread:$0]  %s7291_s6, 16, %s211_s2, [#allocation6]  }
  0xa4   :  { %s7065_s0 = smov [#allocation10]   ;;  %s7066_s18 = smov [#allocation11]  }
  0xa5   :  { %s238_s12 = sshll.u32 %s7065_s0, 4  ;;  %s250_s22 = sshll.u32 %s7066_s18, 4  ;;  %s239_s12 = int_to_ptr.vmem [resolvable:$true] %s238_s12  ;;  %s251_s22 = int_to_ptr.vmem [resolvable:$true] %s250_s22 }
  0xa6   :  { %s6936_s23 = scalar_lea.hbm %s7321_s4, 16 }
  0xa7   :  { %p6937_p4 = scmp.ne.s32.totalorder %s7321_s4, %s6936_s23  ;;  %p6940_p5 = scmp.lt.u32.totalorder %s6936_s23, %s7321_s4 }
  0xa9   :  { %p6942_p6 = pnand %p6940_p5, %p6937_p4 }
  0xab   :  { %6945 = shalt.err (!%p6942_p6)
}
  0xac   :  { %s6946_s26 = scalar_lea.vmem %s239_s12, 16  ;;  %s6950_s28 = scalar_lea.vmem %s239_s12, 32 }
  0xad   :  { %p6947_p7 = scmp.ne.s32.totalorder %s239_s12, %s6946_s26  ;;  %p6951_p8 = scmp.lt.s32.totalorder %s239_s12, %s239_s12 }
  0xae   :  { %p6952_p9 = scmp.lt.s32.totalorder %s6950_s28, %s6946_s26 }
  0xb0   :  { %p6953_p10 = por %p6952_p9, %p6951_p8 }
  0xb2   :  { %p6954_p11 = pnand %p6953_p10, %p6947_p7 }
  0xb4   :  { %6957 = shalt.err (!%p6954_p11)
}
  0xb5   :  { %241 = dma.hbm_to_vmem [thread:$0]  %s7321_s4, 16, %s239_s12, [#allocation9]  }
  0xb6   :  { %s6958_s6 = scalar_lea.hbm %s7331_s30, 16 }
  0xb7   :  { %p6959_p12 = scmp.ne.s32.totalorder %s7331_s30, %s6958_s6  ;;  %p6962_p13 = scmp.lt.u32.totalorder %s6958_s6, %s7331_s30 }
  0xb9   :  { %p6964_p0 = pnand %p6962_p13, %p6959_p12 }
  0xbb   :  { %6967 = shalt.err (!%p6964_p0)
}
  0xbc   :  { %s6968_s27 = scalar_lea.vmem %s251_s22, 16  ;;  %s6972_s1 = scalar_lea.vmem %s251_s22, 32 }
  0xbd   :  { %p6969_p1 = scmp.ne.s32.totalorder %s251_s22, %s6968_s27  ;;  %p6973_p2 = scmp.lt.s32.totalorder %s251_s22, %s251_s22 }
  0xbe   :  { %p6974_p3 = scmp.lt.s32.totalorder %s6972_s1, %s6968_s27 }
  0xc0   :  { %p6975_p4 = por %p6974_p3, %p6973_p2 }
  0xc2   :  { %p6976_p5 = pnand %p6975_p4, %p6969_p1 }
  0xc4   :  { %6979 = shalt.err (!%p6976_p5)
}
  0xc5   :  { %253 = dma.hbm_to_vmem [thread:$0]  %s7331_s30, 16, %s251_s22, [#allocation12]  }
  0xc6   :  { %7002 = dma.done.wait [#allocation3], 16  }
  0xc7   :  { %7003 = vsyncadd [#allocation3], 4294967280 }
  0xc8   :  { %7004 = dma.done.wait [#allocation6], 32  }
  0xc9   :  { %7005 = vsyncadd [#allocation6], 4294967264 }
  0xca   :  { %7006 = dma.done.wait [#allocation9], 32  }
  0xcb   :  { %7007 = vsyncadd [#allocation9], 4294967264 }
  0xcc   :  { %7008 = dma.done.wait [#allocation12], 16  }
  0xcd   :  { %7009 = vsyncadd [#allocation12], 4294967280  ;;  %vm285_vm0 = vcmask 261120   ;;  %v281_v0 = vld [vmem:[%s7096_s5] sm:$0xff]  ;;  %v282_v1 = vld [vmem:[%s7096_s5 + $0x8] sm:$0xff]  ;;  %vm664_vm1 = vcmask 64512  }
  0xce   :  { %v286_v2 = vsel %vm285_vm0, %v281_v0, 0.0  ;;  %v289_v3 = vsel %vm285_vm0, %v282_v1, 0.0  ;;  %v329_v14 = vld [vmem:[%s7121_s25] sm:$0xff]  ;;  %v330_v15 = vld [vmem:[%s7121_s25 + $0x8] sm:$0xff]  ;;  %v331_v19 = vld [vmem:[%s7121_s25 + $0x10] sm:$0xff]  ;;  %s7067_s5 = smov 112  }
  0xcf   :  { %287 = vadd.xlane.f32.xlu0 %v286_v2  ;;  %v334_v16 = vld [vmem:[%s7131_s3] sm:$0xff]  ;;  %v6132_v17 = vpack.c.bf16 %v330_v15, %v329_v14  ;;  %v335_v18 = vld [vmem:[%s7131_s3 + $0x8] sm:$0xff]  ;;  %v332_v20 = vld [vmem:[%s7121_s25 + $0x18] sm:$0xff]  ;;  %s8421_s25 = sld [smem:[#allocation19_spill]]  ;;  %vm818_vm3 = vcmask 523264   ;;  %vm1062_vm4 = vcmask 130048  }
  0xd0   :  { %v6140_v21 = vpack.c.bf16 %v335_v18, %v334_v16  ;;  %v6136_v22 = vpack.c.bf16 %v332_v20, %v331_v19  ;;  %v336_v23 = vld [vmem:[%s7131_s3 + $0x10] sm:$0xff]  ;;  %v337_v24 = vld [vmem:[%s7131_s3 + $0x18] sm:$0xff]  ;;  %v339_v26 = vld [vmem:[%s7141_s14] sm:$0xff]  ;;  %s7070_s3 = smov 8   ;;  %vm1065_vm5 = vcmask 195584   ;;  %s8424_s30 = sld [smem:[#allocation25_spill]] }
  0xd1   :  { %6133 = vmatprep.subr.bf16.mxu0 %v6132_v17  ;;  %v6144_v25 = vpack.c.bf16 %v337_v24, %v336_v23  ;;  %v340_v27 = vld [vmem:[%s7141_s14 + $0x8] sm:$0xff]  ;;  %v5286_v36 = vld [vmem:[%s7111_s17] ss:$0 sm:$0xff]  ;;  %v341_v43 = vld [vmem:[%s7141_s14 + $0x10] sm:$0xff]  ;;  %s7068_s17 = smov 120   ;;  %s8425_s4 = sld [smem:[#allocation23_spill]] }
  0xd2   :  { %6135 = vmatpush3.bf16.msra.mxu0 %v6132_v17  ;;  %6141 = vmatprep.subr.bf16.mxu1 %v6140_v21  ;;  %v6148_v28 = vpack.c.bf16 %v340_v27, %v339_v26  ;;  %v5287_v38 = vld [vmem:[%s7116_s21] ss:$0 sm:$0xff]  ;;  %v342_v44 = vld [vmem:[%s7141_s14 + $0x18] sm:$0xff]  ;;  %vm7408_vm2 = vmpackc.low %vm664_vm1, %vm664_vm1  ;;  %s7069_s21 = smov 104   ;;  %s7072_s14 = smov 24   ;;  %vm7074_vm6 = vmmov 0  }
  0xd3   :  { %290 = vadd.xlane.f32.xlu0 %v289_v3  ;;  %6143 = vmatpush3.bf16.msra.mxu1 %v6140_v21  ;;  %v6152_v47 = vpack.c.bf16 %v342_v44, %v341_v43  ;;  %v5291_v48 = vld [vmem:[%s7136_s8] ss:$0 sm:$0xff]  ;;  %s7071_s8 = smov 16   ;;  %s8426_s2 = sld [smem:[#allocation24_spill]]  ;;  %vm2651_vm7 = vcmask 1041408   ;;  %vm2653_vm8 = vcmask 1043456  }
  0xd4   :  { %6137 = vmatprep.subr.bf16.mxu0 %v6136_v22  ;;  %6145 = vmatprep.subr.bf16.mxu1 %v6144_v25  ;;  %v5288_v49 = vld [vmem:[%s7126_s29] ss:$0 sm:$0xff]  ;;  %s8422_s29 = sld [smem:[#allocation21_spill]]  ;;  %s8427_s7 = sld [smem:[#allocation27_spill]]  ;;  %vm2655_vm9 = vcmask 1045504  }
  0xd5   :  { %v5294_v60 = vld [vmem:[%s7146_s19] ss:$0 sm:$0xff]  ;;  %v7448_v23 = vld [vmem:[%s8421_s25 + $0x8] sm:$0xff]  ;;  %s8423_s19 = sld [smem:[#allocation22_spill]]  ;;  %s8428_s10 = sld [smem:[#allocation26_spill]] }
  0xd6   :  { %6139 = vmatpush3.bf16.msra.mxu0 %v6136_v22  ;;  %v7451_v26 = vld [vmem:[%s8421_s25] sm:$0xff]  ;;  %s8429_s11 = sld [smem:[#allocation28_spill]]  ;;  %s8430_s13 = sld [smem:[#allocation31_spill]] }
  0xd7   :  { %6147 = vmatpush3.bf16.msra.mxu1 %v6144_v25  ;;  %6149 = vmatprep.subr.bf16.mxu0 %v6148_v28  ;;  %v7466_v43 = vld [vmem:[%s8421_s25 + $0x20] sm:$0xff]  ;;  %s8431_s15 = sld [smem:[#allocation33_spill]]  ;;  %s8432_s16 = sld [smem:[#allocation35_spill]] }
  0xd8   :  { %s8433_s0 = sld [smem:[#allocation29_spill]]  ;;  %s8434_s12 = sld [smem:[#allocation30_spill]] }
  0xd9   :  { %s8435_s18 = sld [smem:[#allocation34_spill]]  ;;  %s8436_s22 = sld [smem:[#allocation32_spill]] }
  0xda   :  { %s8437_s23 = sld [smem:[#allocation36_spill]]  ;;  %s8438_s26 = sld [smem:[#allocation37_spill]] }
  0xdb   :  { %s8439_s28 = sld [smem:[#allocation38_spill]]  ;;  %s8440_s6 = sld [smem:[#allocation41_spill]] }
  0xdc   :  { %s8441_s27 = sld [smem:[#allocation39_spill]]  ;;  %s8442_s1 = sld [smem:[#allocation40_spill]] }
 0x15c   :  { %v288_v4 = vpop.xlane.xlu0 %287 }
 0x15d   :  { %v293_v5 = vmul.f32 0.03125, %v288_v4 }
 0x15f   :  { %v295_v6 = vsub.f32 %v281_v0, %v293_v5 }
 0x160   :  { %v291_v7 = vpop.xlane.xlu0 %290 }
 0x161   :  { %v294_v8 = vmul.f32 0.03125, %v291_v7  ;;  %v297_v9 = vmul.f32 %v295_v6, %v295_v6 }
 0x163   :  { %v296_v10 = vsub.f32 %v282_v1, %v294_v8  ;;  %v299_v11 = vsel %vm285_vm0, %v297_v9, 0.0 }
 0x164   :  { %300 = vadd.xlane.f32.xlu1 %v299_v11 }
 0x165   :  { %v298_v12 = vmul.f32 %v296_v10, %v296_v10 }
 0x167   :  { %v302_v13 = vsel %vm285_vm0, %v298_v12, 0.0 }
 0x168   :  { %303 = vadd.xlane.f32.xlu1 %v302_v13 }
 0x1f1   :  { %v301_v29 = vpop.xlane.xlu1 %300 }
 0x1f2   :  { %v305_v30 = vmul.f32 0.03125, %v301_v29 }
 0x1f4   :  { %v307_v31 = vadd.f32 1e-12, %v305_v30 }
 0x1f5   :  { %v304_v32 = vpop.xlane.xlu1 %303 }
 0x1f6   :  { %6628 = vrsqrt.f32 %v307_v31  ;;  %v306_v33 = vmul.f32 0.03125, %v304_v32 }
 0x1f8   :  { %v308_v34 = vadd.f32 1e-12, %v306_v33 }
 0x1fa   :  { %6630 = vrsqrt.f32 %v308_v34  ;;  %v7457_v34 = vld [vmem:[%s8421_s25 + $0x10] sm:$0xff] }
 0x200   :  { %v6629_v35 = vpop.eup %6628 }
 0x201   :  { %v311_v37 = vmul.f32 %v6629_v35, %v295_v6 }
 0x203   :  { %v319_v39 = vmul.f32 %v5286_v36, %v311_v37  ;;  %v7461_v37 = vld [vmem:[%s8421_s25 + $0x18] sm:$0xff] }
 0x204   :  { %v6631_v40 = vpop.eup %6630 }
 0x205   :  { %v7385_v41 = vadd.f32 %v5287_v38, %v319_v39  ;;  %v312_v42 = vmul.f32 %v6631_v40, %v296_v10 }
 0x207   :  { %5671 = vmatprep.mubr.msk.f32.mxu0 %vm285_vm0, %v7385_v41  ;;  %5682 = vmatprep.mubr.msk.f32.mxu1 %vm285_vm0, %v7385_v41  ;;  %v320_v45 = vmul.f32 %v5286_v36, %v312_v42 }
 0x209   :  { %v7393_v46 = vadd.f32 %v5287_v38, %v320_v45 }
 0x20b   :  { %5672 = vmatmul.mubr.msk.f32.vlgmr.msra.gmra.mrb[0].mxu0 %vm285_vm0, %v7393_v46  ;;  %5683 = vmatmul.mubr.msk.f32.vlgmr.msra.gmra.mrb[0].mxu1 %vm285_vm0, %v7393_v46 }
 0x20c   :  { %6151 = vmatpush3.bf16.msra.mxu0 %v6148_v28  ;;  %5693 = vmatprep.mubr.msk.f32.mxu0 %vm285_vm0, %v7385_v41 }
 0x20d   :  { %6153 = vmatprep.subr.bf16.mxu0 %v6152_v47 }
 0x210   :  { %6155 = vmatpush3.bf16.msra.mxu0 %v6152_v47 }
 0x213   :  { %5694 = vmatmul.mubr.msk.f32.vlgmr.msra.gmra.mrb[2].mxu0 %vm285_vm0, %v7393_v46 }
 0x2de   :  { %v5673_v50 = vpop.f32.mrb[0].mxu0  ;;  %v5684_v51 = vpop.f32.mrb[0].mxu1 }
 0x2df   :  { %v532_v52 = vadd.f32 %v5684_v51, %v5291_v48  ;;  %v445_v53 = vpop.f32.mrb[1].mxu0  ;;  %v526_v54 = vpop.f32.mrb[1].mxu1  ;;  %v451_v61 = vadd.f32 %v5673_v50, %v5288_v49 }
 0x2e0   :  { %v446_v55 = vadd.f32 %v5288_v49, %v445_v53  ;;  %v527_v56 = vadd.f32 %v5291_v48, %v526_v54  ;;  %v7470_v48 = vld [vmem:[%s8421_s25 + $0x28] sm:$0xff]  ;;  %v7475_v53 = vld [vmem:[%s8421_s25 + $0x30] sm:$0xff] }
 0x2e2   :  { %5712 = vmatprep.mubr.msk.f32.mxu1 %vm664_vm1, %v446_v55  ;;  %v6525_v57 = vpack.i.bf16 %v532_v52, %v527_v56  ;;  %v6156_v58 = vpack.c.bf16 %v532_v52, %v527_v56 }
 0x2e4   :  { %6526 = vrot.lane.b32.xlu1 %v6525_v57, %s7067_s5  ;;  %6521 = vrot.lane.b32.xlu0 %v6525_v57, %s7068_s17 }
 0x2e5   :  { %6158 = vmatprep.subr.msk.bf16.mxu1 %vm7408_vm2, %v6156_v58 }
 0x2e6   :  { %v5695_v62 = vpop.f32.mrb[2].mxu0  ;;  %6161 = vmatpush3.bf16.xpose.msk.msra.mxu1 %vm7408_vm2, %v6156_v58  ;;  %v7480_v58 = vld [vmem:[%s8421_s25 + $0x38] sm:$0xff]  ;;  %s8446_s25 = sld [smem:[#allocation45_spill]] }
 0x2e7   :  { %v613_v63 = vadd.f32 %v5695_v62, %v5294_v60  ;;  %v607_v0 = vpop.f32.mrb[3].mxu0 }
 0x2e8   :  { %v608_v1 = vadd.f32 %v5294_v60, %v607_v0  ;;  %6531 = vrot.lane.b32.xlu1 %v6525_v57, %s7069_s21  ;;  %620 = vrot.lane.b32.xlu0 %v451_v61, %s7068_s17 }
 0x2ea   :  { %v6180_v2 = vpack.c.bf16 %v613_v63, %v608_v1  ;;  %v7421_v3 = vpack.i.bf16 %v613_v63, %v608_v1 }
 0x2ec   :  { %6181 = vmatprep.subr.bf16.mxu0 %v6180_v2  ;;  %624 = vrot.lane.b32.xlu0 %v451_v61, %s7067_s5 }
 0x2ed   :  { %6183 = vmatpush3.bf16.msra.mxu0 %v6180_v2  ;;  %618 = vrot.lane.b32.xlu1 %v446_v55, %s7068_s17 }
 0x2f0   :  { %628 = vrot.lane.b32.xlu0 %v451_v61, %s7069_s21 }
 0x2f1   :  { %622 = vrot.lane.b32.xlu1 %v446_v55, %s7067_s5 }
 0x2f5   :  { %626 = vrot.lane.b32.xlu1 %v446_v55, %s7069_s21 }
 0x356   :  { %v6527_v4 = vpop.permute.xlu1 %6526  ;;  %v6522_v5 = vpop.permute.xlu0 %6521 }
 0x357   :  { %v6529_v6 = vunpack.i.h.bf16 %v6527_v4  ;;  %v6528_v7 = vunpack.i.l.bf16 %v6527_v4  ;;  %v6524_v8 = vunpack.i.h.bf16 %v6522_v5  ;;  %v6523_v9 = vunpack.i.l.bf16 %v6522_v5 }
 0x359   :  { %v6162_v10 = vpack.c.bf16 %v6524_v8, %v6523_v9  ;;  %v6168_v11 = vpack.c.bf16 %v6529_v6, %v6528_v7 }
 0x35a   :  { %v6532_v12 = vpop.permute.xlu1 %6531  ;;  %v621_v17 = vpop.permute.xlu0 %620 }
 0x35b   :  { %6164 = vmatprep.subr.msk.bf16.mxu1 %vm7408_vm2, %v6162_v10  ;;  %v6534_v13 = vunpack.i.h.bf16 %v6532_v12  ;;  %v6533_v14 = vunpack.i.l.bf16 %v6532_v12 }
 0x35c   :  { %6167 = vmatpush3.bf16.xpose.msk.msra.mxu1 %vm7408_vm2, %v6162_v10 }
 0x35d   :  { %6170 = vmatprep.subr.msk.bf16.mxu1 %vm7408_vm2, %v6168_v11  ;;  %v6174_v15 = vpack.c.bf16 %v6534_v13, %v6533_v14 }
 0x35e   :  { %v625_v19 = vpop.permute.xlu0 %624 }
 0x35f   :  { %v619_v16 = vpop.permute.xlu1 %618 }
 0x362   :  { %v629_v21 = vpop.permute.xlu0 %628 }
 0x363   :  { %v623_v18 = vpop.permute.xlu1 %622 }
 0x364   :  { %6173 = vmatpush3.bf16.xpose.msk.msra.mxu1 %vm7408_vm2, %v6168_v11 }
 0x365   :  { %6176 = vmatprep.subr.msk.bf16.mxu1 %vm7408_vm2, %v6174_v15 }
 0x367   :  { %v627_v20 = vpop.permute.xlu1 %626 }
 0x36c   :  { %6179 = vmatpush3.bf16.xpose.msk.msra.mxu1 %vm7408_vm2, %v6174_v15 }
 0x373   :  { %5713 = vmatmul.mubr.msk.f32.vlgmr.msra.gmra.mrb[2].mxu1 %vm664_vm1, %v451_v61 }
 0x374   :  { %5715 = vmatprep.mubr.msk.f32.mxu1 %vm664_vm1, %v619_v16 }
 0x377   :  { %5716 = vmatmul.mubr.msk.f32.gmra.mrb[4].mxu1 %vm664_vm1, %v621_v17 }
 0x378   :  { %5718 = vmatprep.mubr.msk.f32.mxu1 %vm664_vm1, %v623_v18 }
 0x37b   :  { %5719 = vmatmul.mubr.msk.f32.gmra.mrb[6].mxu1 %vm664_vm1, %v625_v19 }
 0x37c   :  { %5721 = vmatprep.mubr.msk.f32.mxu1 %vm664_vm1, %v627_v20 }
 0x37f   :  { %5722 = vmatmul.mubr.msk.f32.gmra.mrb[8].mxu1 %vm664_vm1, %v629_v21 }
 0x446   :  { %v5714_v22 = vpop.f32.mrb[2].mxu1 }
 0x447   :  { %v803_v24 = vmul.f32 0.35355338, %v5714_v22  ;;  %v763_v25 = vpop.f32.mrb[3].mxu1 }
 0x448   :  { %v802_v27 = vmul.f32 0.35355338, %v763_v25 }
 0x449   :  { %v811_v28 = vadd.f32 %v803_v24, %v7448_v23 }
 0x44a   :  { %v5717_v29 = vpop.f32.mrb[4].mxu1  ;;  %v810_v30 = vadd.f32 %v802_v27, %v7451_v26 }
 0x44b   :  { %v805_v31 = vmul.f32 0.35355338, %v5717_v29  ;;  %v773_v32 = vpop.f32.mrb[5].mxu1  ;;  %v822_v33 = vsel %vm818_vm3, %v811_v28, -inf }
 0x44c   :  { %v804_v35 = vmul.f32 0.35355338, %v773_v32  ;;  %823 = vmax.xlane.f32.xlu0 %v822_v33  ;;  %v819_v36 = vsel %vm818_vm3, %v810_v30, -inf }
 0x44d   :  { %820 = vmax.xlane.f32.xlu1 %v819_v36  ;;  %v813_v42 = vadd.f32 %v805_v31, %v7461_v37 }
 0x44e   :  { %v5720_v38 = vpop.f32.mrb[6].mxu1  ;;  %v812_v39 = vadd.f32 %v804_v35, %v7457_v34 }
 0x44f   :  { %v783_v40 = vpop.f32.mrb[7].mxu1  ;;  %v807_v44 = vmul.f32 0.35355338, %v5720_v38  ;;  %v828_v52 = vsel %vm818_vm3, %v813_v42, -inf }
 0x450   :  { %v806_v45 = vmul.f32 0.35355338, %v783_v40  ;;  %v825_v47 = vsel %vm818_vm3, %v812_v39, -inf }
 0x451   :  { %826 = vmax.xlane.f32.xlu0 %v825_v47  ;;  %v815_v57 = vadd.f32 %v807_v44, %v7470_v48 }
 0x452   :  { %v5723_v49 = vpop.f32.mrb[8].mxu1  ;;  %v814_v50 = vadd.f32 %v806_v45, %v7466_v43 }
 0x453   :  { %v793_v51 = vpop.f32.mrb[9].mxu1  ;;  %v809_v54 = vmul.f32 0.35355338, %v5723_v49  ;;  %v834_v61 = vsel %vm818_vm3, %v815_v57, -inf }
 0x454   :  { %v808_v55 = vmul.f32 0.35355338, %v793_v51  ;;  %v831_v56 = vsel %vm818_vm3, %v814_v50, -inf }
 0x455   :  { %829 = vmax.xlane.f32.xlu0 %v828_v52  ;;  %832 = vmax.xlane.f32.xlu1 %v831_v56  ;;  %v817_v63 = vadd.f32 %v809_v54, %v7480_v58 }
 0x456   :  { %v816_v60 = vadd.f32 %v808_v55, %v7475_v53 }
 0x457   :  { %v840_v0 = vsel %vm818_vm3, %v817_v63, -inf }
 0x458   :  { %v837_v62 = vsel %vm818_vm3, %v816_v60, -inf }
 0x459   :  { %835 = vmax.xlane.f32.xlu0 %v834_v61  ;;  %838 = vmax.xlane.f32.xlu1 %v837_v62 }
 0x45d   :  { %841 = vmax.xlane.f32.xlu0 %v840_v0 }
 0x46a   :  { %6536 = vrot.lane.b32.xlu1 %v7421_v3, %s7068_s17 }
 0x4d9   :  { %v824_v1 = vpop.xlane.xlu0 %823 }
 0x4da   :  { %v844_v2 = vsub.f32 %v811_v28, %v824_v1  ;;  %v821_v4 = vpop.xlane.xlu1 %820 }
 0x4db   :  { %v843_v5 = vsub.f32 %v810_v30, %v821_v4 }
 0x4dc   :  { %v853_v6 = vmul.f32 1.442695, %v844_v2 }
 0x4dd   :  { %v851_v7 = vmul.f32 1.442695, %v843_v5 }
 0x4de   :  { %6632 = vpow2.f32 %v853_v6  ;;  %v827_v8 = vpop.xlane.xlu0 %826 }
 0x4df   :  { %6634 = vpow2.f32 %v851_v7  ;;  %v845_v9 = vsub.f32 %v812_v39, %v827_v8 }
 0x4e1   :  { %v855_v10 = vmul.f32 1.442695, %v845_v9 }
 0x4e2   :  { %v830_v11 = vpop.xlane.xlu0 %829  ;;  %v833_v12 = vpop.xlane.xlu1 %832 }
 0x4e3   :  { %6636 = vpow2.f32 %v855_v10  ;;  %v846_v13 = vsub.f32 %v813_v42, %v830_v11  ;;  %v847_v14 = vsub.f32 %v814_v50, %v833_v12 }
 0x4e5   :  { %v857_v15 = vmul.f32 1.442695, %v846_v13  ;;  %v859_v16 = vmul.f32 1.442695, %v847_v14 }
 0x4e6   :  { %v836_v17 = vpop.xlane.xlu0 %835  ;;  %v839_v18 = vpop.xlane.xlu1 %838 }
 0x4e7   :  { %6638 = vpow2.f32 %v857_v15  ;;  %v848_v19 = vsub.f32 %v815_v57, %v836_v17  ;;  %v849_v20 = vsub.f32 %v816_v60, %v839_v18 }
 0x4e8   :  { %v7489_v21 = vpop.eup %6632  ;;  %6640 = vpow2.f32 %v859_v16 }
 0x4e9   :  { %v6635_v22 = vpop.eup %6634  ;;  %v861_v24 = vmul.f32 1.442695, %v848_v19  ;;  %v863_v25 = vmul.f32 1.442695, %v849_v20  ;;  %v870_v27 = vsel %vm818_vm3, %v7489_v21, 0.0 }
 0x4ea   :  { %871 = vadd.xlane.f32.xlu0 %v870_v27  ;;  %v842_v28 = vpop.xlane.xlu0 %841  ;;  %v6537_v29 = vpop.permute.xlu1 %6536  ;;  %v867_v30 = vsel %vm818_vm3, %v6635_v22, 0.0  ;;  %v344_v27 = vld [vmem:[%s8422_s29] sm:$0xff] }
 0x4eb   :  { %6642 = vpow2.f32 %v861_v24  ;;  %v850_v31 = vsub.f32 %v817_v63, %v842_v28  ;;  %v6539_v32 = vunpack.i.h.bf16 %v6537_v29  ;;  %v6538_v33 = vunpack.i.l.bf16 %v6537_v29  ;;  %868 = vadd.xlane.f32.xlu1 %v867_v30  ;;  %v345_v28 = vld [vmem:[%s8422_s29 + $0x8] sm:$0xff]  ;;  %v346_v30 = vld [vmem:[%s8422_s29 + $0x10] sm:$0xff] }
 0x4ec   :  { %6644 = vpow2.f32 %v863_v25  ;;  %v6196_v29 = vpack.c.bf16 %v345_v28, %v344_v27 }
 0x4ed   :  { %v6637_v35 = vpop.eup %6636  ;;  %v865_v36 = vmul.f32 1.442695, %v850_v31  ;;  %v6184_v38 = vpack.c.bf16 %v6539_v32, %v6538_v33  ;;  %v347_v31 = vld [vmem:[%s8422_s29 + $0x18] sm:$0xff]  ;;  %s8447_s29 = sld [smem:[#allocation46_spill]] }
 0x4ee   :  { %v873_v39 = vsel %vm818_vm3, %v6637_v35, 0.0  ;;  %v6200_v32 = vpack.c.bf16 %v347_v31, %v346_v30  ;;  %v5324_v30 = vld [vmem:[%s8425_s4] ss:$0 sm:$0xff]  ;;  %s8453_s4 = sld [smem:[#allocation50_spill]] }
 0x4ef   :  { %6646 = vpow2.f32 %v865_v36  ;;  %874 = vadd.xlane.f32.xlu1 %v873_v39  ;;  %6185 = vmatprep.subr.bf16.mxu0 %v6184_v38 }
 0x4f0   :  { %6187 = vmatpush3.bf16.msra.mxu0 %v6184_v38 }
 0x4f1   :  { %v6639_v40 = vpop.eup %6638 }
 0x4f2   :  { %v6641_v42 = vpop.eup %6640  ;;  %v876_v44 = vsel %vm818_vm3, %v6639_v40, 0.0 }
 0x4f3   :  { %877 = vadd.xlane.f32.xlu0 %v876_v44  ;;  %v879_v45 = vsel %vm818_vm3, %v6641_v42, 0.0 }
 0x4f4   :  { %880 = vadd.xlane.f32.xlu1 %v879_v45 }
 0x4f5   :  { %v6643_v47 = vpop.eup %6642 }
 0x4f6   :  { %v6645_v49 = vpop.eup %6644  ;;  %v882_v50 = vsel %vm818_vm3, %v6643_v47, 0.0 }
 0x4f7   :  { %883 = vadd.xlane.f32.xlu0 %v882_v50  ;;  %v885_v51 = vsel %vm818_vm3, %v6645_v49, 0.0 }
 0x4f8   :  { %886 = vadd.xlane.f32.xlu1 %v885_v51 }
 0x4f9   :  { %v6647_v52 = vpop.eup %6646 }
 0x4fa   :  { %v888_v54 = vsel %vm818_vm3, %v6647_v52, 0.0 }
 0x4fb   :  { %889 = vadd.xlane.f32.xlu0 %v888_v54 }
 0x509   :  { %6546 = vrot.lane.b32.xlu1 %v7421_v3, %s7069_s21 }
 0x511   :  { %6541 = vrot.lane.b32.xlu0 %v7421_v3, %s7067_s5 }
 0x577   :  { %v872_v56 = vpop.xlane.xlu0 %871 }
 0x578   :  { %v869_v55 = vpop.xlane.xlu1 %868 }
 0x579   :  { %6648 = vrcp.f32 %v869_v55 }
 0x57a   :  { %6650 = vrcp.f32 %v872_v56 }
 0x57c   :  { %v875_v57 = vpop.xlane.xlu1 %874 }
 0x57d   :  { %6652 = vrcp.f32 %v875_v57 }
 0x580   :  { %v878_v60 = vpop.xlane.xlu0 %877 }
 0x581   :  { %v881_v61 = vpop.xlane.xlu1 %880  ;;  %6654 = vrcp.f32 %v878_v60 }
 0x582   :  { %6656 = vrcp.f32 %v881_v61 }
 0x583   :  { %v6649_v62 = vpop.eup %6648 }
 0x584   :  { %v884_v63 = vpop.xlane.xlu0 %883  ;;  %v892_v0 = vmul.f32 %v6649_v62, %v6635_v22  ;;  %v6651_v11 = vpop.eup %6650  ;;  %v5321_v62 = vld [vmem:[%s8423_s19] ss:$0 sm:$0xff]  ;;  %s8451_s19 = sld [smem:[#allocation48_spill]] }
 0x585   :  { %v887_v1 = vpop.xlane.xlu1 %886  ;;  %6658 = vrcp.f32 %v884_v63  ;;  %v894_v13 = vmul.f32 %v6651_v11, %v7489_v21 }
 0x586   :  { %5740 = vmatprep.mubr.msk.f32.mxu0 %vm818_vm3, %v892_v0  ;;  %6660 = vrcp.f32 %v887_v1 }
 0x587   :  { %v6653_v12 = vpop.eup %6652 }
 0x588   :  { %v890_v2 = vpop.xlane.xlu0 %889  ;;  %v896_v15 = vmul.f32 %v6653_v12, %v6637_v35 }
 0x589   :  { %v6547_v4 = vpop.permute.xlu1 %6546  ;;  %6662 = vrcp.f32 %v890_v2 }
 0x58a   :  { %v6549_v6 = vunpack.i.h.bf16 %v6547_v4  ;;  %v6548_v7 = vunpack.i.l.bf16 %v6547_v4 }
 0x58b   :  { %v6655_v14 = vpop.eup %6654 }
 0x58c   :  { %v6542_v5 = vpop.permute.xlu0 %6541  ;;  %v6192_v10 = vpack.c.bf16 %v6549_v6, %v6548_v7  ;;  %v6657_v16 = vpop.eup %6656  ;;  %v898_v17 = vmul.f32 %v6655_v14, %v6639_v40 }
 0x58d   :  { %v6544_v3 = vunpack.i.h.bf16 %v6542_v5  ;;  %v6543_v8 = vunpack.i.l.bf16 %v6542_v5  ;;  %v900_v19 = vmul.f32 %v6657_v16, %v6641_v42  ;;  %v352_v16 = vld [vmem:[%s8424_s30 + $0x8] sm:$0xff] }
 0x58f   :  { %v6188_v9 = vpack.c.bf16 %v6544_v3, %v6543_v8  ;;  %v6659_v18 = vpop.eup %6658 }
 0x590   :  { %v6661_v20 = vpop.eup %6660  ;;  %v902_v21 = vmul.f32 %v6659_v18, %v6643_v47 }
 0x591   :  { %6189 = vmatprep.subr.bf16.mxu0 %v6188_v9  ;;  %v904_v24 = vmul.f32 %v6661_v20, %v6645_v49 }
 0x592   :  { %6191 = vmatpush3.bf16.msra.mxu0 %v6188_v9 }
 0x593   :  { %6193 = vmatprep.subr.bf16.mxu0 %v6192_v10  ;;  %v6663_v22 = vpop.eup %6662 }
 0x594   :  { %v906_v25 = vmul.f32 %v6663_v22, %v6647_v52 }
 0x596   :  { %6195 = vmatpush3.bf16.msra.mxu0 %v6192_v10 }
 0x597   :  { %6197 = vmatprep.subr.bf16.mxu0 %v6196_v29 }
 0x599   :  { %5741 = vmatmul.mubr.msk.f32.vlgmr.msra.gmra.mrb[4].mxu0 %vm818_vm3, %v894_v13 }
 0x59a   :  { %5743 = vmatprep.mubr.msk.f32.mxu0 %vm818_vm3, %v896_v15  ;;  %6199 = vmatpush3.bf16.msra.mxu0 %v6196_v29  ;;  %v351_v15 = vld [vmem:[%s8424_s30] sm:$0xff] }
 0x59b   :  { %6201 = vmatprep.subr.bf16.mxu0 %v6200_v32  ;;  %v6204_v18 = vpack.c.bf16 %v352_v16, %v351_v15 }
 0x59d   :  { %5744 = vmatmul.mubr.msk.f32.gmra.mrb[6].mxu0 %vm818_vm3, %v898_v17  ;;  %v353_v17 = vld [vmem:[%s8424_s30 + $0x10] sm:$0xff] }
 0x59e   :  { %5746 = vmatprep.mubr.msk.f32.mxu0 %vm818_vm3, %v900_v19  ;;  %6203 = vmatpush3.bf16.msra.mxu0 %v6200_v32  ;;  %v354_v19 = vld [vmem:[%s8424_s30 + $0x18] sm:$0xff]  ;;  %v5325_v32 = vld [vmem:[%s8426_s2] ss:$0 sm:$0xff]  ;;  %s8452_s30 = sld [smem:[#allocation49_spill]]  ;;  %s8454_s2 = sld [smem:[#allocation20_spill]] }
 0x59f   :  { %v6208_v20 = vpack.c.bf16 %v354_v19, %v353_v17  ;;  %6205 = vmatprep.subr.bf16.mxu0 %v6204_v18 }
 0x5a1   :  { %5747 = vmatmul.mubr.msk.f32.gmra.mrb[8].mxu0 %vm818_vm3, %v902_v21 }
 0x5a2   :  { %5749 = vmatprep.mubr.msk.f32.mxu0 %vm818_vm3, %v904_v24 }
 0x5a5   :  { %5750 = vmatmul.mubr.msk.f32.gmra.mrb[10].mxu0 %vm818_vm3, %v906_v25 }
 0x66c   :  { %v5742_v33 = vpop.f32.mrb[4].mxu0 }
 0x66d   :  { %v997_v35 = vpop.f32.mrb[5].mxu0 }
 0x670   :  { %v5745_v36 = vpop.f32.mrb[6].mxu0 }
 0x671   :  { %1040 = vrot.lane.b32.xlu1 %v5745_v36, %s7070_s3  ;;  %v1007_v38 = vpop.f32.mrb[7].mxu0 }
 0x674   :  { %v5748_v39 = vpop.f32.mrb[8].mxu0 }
 0x675   :  { %1038 = vrot.lane.b32.xlu1 %v1007_v38, %s7070_s3  ;;  %v1017_v40 = vpop.f32.mrb[9].mxu0 }
 0x676   :  { %1046 = vrot.lane.b32.xlu0 %v1017_v40, %s7071_s8 }
 0x678   :  { %v5751_v42 = vpop.f32.mrb[10].mxu0 }
 0x679   :  { %1048 = vrot.lane.b32.xlu1 %v5748_v39, %s7071_s8  ;;  %v1027_v44 = vpop.f32.mrb[11].mxu0 }
 0x67a   :  { %1054 = vrot.lane.b32.xlu0 %v1027_v44, %s7072_s14  ;;  %v357_v44 = vld [vmem:[%s8427_s7 + $0x8] sm:$0xff] }
 0x67d   :  { %1056 = vrot.lane.b32.xlu1 %v5751_v42, %s7072_s14  ;;  %v356_v42 = vld [vmem:[%s8427_s7] sm:$0xff] }
 0x6e3   :  { %v1041_v45 = vpop.permute.xlu1 %1040 }
 0x6e4   :  { %v1061_v56 = vsel %vm664_vm1, %v5742_v33, %v1041_v45  ;;  %v6212_v45 = vpack.c.bf16 %v357_v44, %v356_v42  ;;  %v1438_v42 = vld [vmem:[%s8430_s13 + $0x8] sm:$0xff]  ;;  %v1442_v44 = vld [vmem:[%s8431_s15] sm:$0xff] }
 0x6e6   :  { %6213 = vmatprep.subr.bf16.mxu1 %v6212_v45 }
 0x6e7   :  { %v1039_v47 = vpop.permute.xlu1 %1038  ;;  %6215 = vmatpush3.bf16.msra.mxu1 %v6212_v45 }
 0x6e8   :  { %v1047_v49 = vpop.permute.xlu0 %1046  ;;  %v1060_v50 = vsel %vm664_vm1, %v997_v35, %v1039_v47  ;;  %v358_v47 = vld [vmem:[%s8427_s7 + $0x10] sm:$0xff] }
 0x6e9   :  { %v1063_v52 = vsel %vm1062_vm4, %v1060_v50, %v1047_v49  ;;  %v359_v49 = vld [vmem:[%s8427_s7 + $0x18] sm:$0xff] }
 0x6ea   :  { %v6216_v50 = vpack.c.bf16 %v359_v49, %v358_v47  ;;  %v1443_v47 = vld [vmem:[%s8431_s15 + $0x8] sm:$0xff]  ;;  %v1439_v49 = vld [vmem:[%s8430_s13 + $0x10] sm:$0xff] }
 0x6eb   :  { %v1049_v51 = vpop.permute.xlu1 %1048 }
 0x6ec   :  { %v1055_v54 = vpop.permute.xlu0 %1054  ;;  %v1064_v57 = vsel %vm1062_vm4, %v1061_v56, %v1049_v51  ;;  %6217 = vmatprep.subr.bf16.mxu1 %v6216_v50  ;;  %v360_v51 = vld [vmem:[%s8427_s7 + $0x20] sm:$0xff]  ;;  %v363_v56 = vld [vmem:[%s8427_s7 + $0x38] sm:$0xff] }
 0x6ed   :  { %v1066_v55 = vsel %vm1065_vm5, %v1063_v52, %v1055_v54  ;;  %6219 = vmatpush3.bf16.msra.mxu1 %v6216_v50  ;;  %v361_v52 = vld [vmem:[%s8427_s7 + $0x28] sm:$0xff]  ;;  %v1440_v50 = vld [vmem:[%s8430_s13 + $0x18] sm:$0xff] }
 0x6ee   :  { %5760 = vmatprep.mubr.msk.f32.mxu0 %vm285_vm0, %v1066_v55  ;;  %v6220_v54 = vpack.c.bf16 %v361_v52, %v360_v51  ;;  %v362_v55 = vld [vmem:[%s8427_s7 + $0x30] sm:$0xff]  ;;  %v6236_v51 = vpack.c.bf16 %v1443_v47, %v1442_v44  ;;  %v6232_v52 = vpack.c.bf16 %v1440_v50, %v1439_v49 }
 0x6ef   :  { %v1057_v60 = vpop.permute.xlu1 %1056 }
 0x6f0   :  { %v1067_v61 = vsel %vm1065_vm5, %v1064_v57, %v1057_v60  ;;  %6221 = vmatprep.subr.bf16.mxu1 %v6220_v54  ;;  %v6224_v57 = vpack.c.bf16 %v363_v56, %v362_v55  ;;  %v5326_v60 = vld [vmem:[%s8428_s10] ss:$0 sm:$0xff]  ;;  %v1445_v55 = vld [vmem:[%s8431_s15 + $0x18] sm:$0xff] }
 0x6f1   :  { %5761 = vmatmul.mubr.msk.f32.vlgmr.msra.gmra.mrb[12].mxu0 %vm285_vm0, %v1067_v61  ;;  %6223 = vmatpush3.bf16.msra.mxu1 %v6220_v54  ;;  %v1444_v54 = vld [vmem:[%s8431_s15 + $0x10] sm:$0xff] }
 0x6f2   :  { %6207 = vmatpush3.bf16.msra.mxu0 %v6204_v18  ;;  %6225 = vmatprep.subr.bf16.mxu1 %v6224_v57  ;;  %v5331_v18 = vld [vmem:[%s8429_s11] ss:$0 sm:$0xff]  ;;  %v6240_v56 = vpack.c.bf16 %v1445_v55, %v1444_v54 }
 0x6f3   :  { %6209 = vmatprep.subr.bf16.mxu0 %v6208_v20 }
 0x6f5   :  { %6227 = vmatpush3.bf16.msra.mxu1 %v6224_v57  ;;  %v1447_v57 = vld [vmem:[%s8432_s16] sm:$0xff] }
 0x6f6   :  { %6211 = vmatpush3.bf16.msra.mxu0 %v6208_v20  ;;  %6237 = vmatprep.subr.bf16.mxu1 %v6236_v51 }
 0x7c4   :  { %v5762_v63 = vpop.f32.mrb[12].mxu0 }
 0x7c5   :  { %v1152_v0 = vadd.f32 %v5762_v63, %v5321_v62  ;;  %v1146_v1 = vpop.f32.mrb[13].mxu0 }
 0x7c6   :  { %v1147_v2 = vadd.f32 %v5321_v62, %v1146_v1 }
 0x7c7   :  { %v1156_v4 = vadd.f32 %v1152_v0, %v7393_v46 }
 0x7c8   :  { %v1155_v5 = vadd.f32 %v1147_v2, %v7385_v41 }
 0x7c9   :  { %v1160_v6 = vsel %vm285_vm0, %v1156_v4, 0.0 }
 0x7ca   :  { %1161 = vadd.xlane.f32.xlu1 %v1160_v6  ;;  %v1157_v7 = vsel %vm285_vm0, %v1155_v5, 0.0 }
 0x7cb   :  { %1158 = vadd.xlane.f32.xlu0 %v1157_v7 }
 0x857   :  { %v1162_v3 = vpop.xlane.xlu1 %1161 }
 0x858   :  { %v1164_v8 = vmul.f32 0.03125, %v1162_v3  ;;  %v1159_v9 = vpop.xlane.xlu0 %1158 }
 0x859   :  { %v1163_v10 = vmul.f32 0.03125, %v1159_v9 }
 0x85a   :  { %v1166_v11 = vsub.f32 %v1156_v4, %v1164_v8 }
 0x85b   :  { %v1165_v12 = vsub.f32 %v1155_v5, %v1163_v10 }
 0x85c   :  { %v1168_v41 = vmul.f32 %v1166_v11, %v1166_v11 }
 0x85d   :  { %v1167_v13 = vmul.f32 %v1165_v12, %v1165_v12 }
 0x85e   :  { %v1172_v14 = vsel %vm285_vm0, %v1168_v41, 0.0 }
 0x85f   :  { %v1169_v46 = vsel %vm285_vm0, %v1167_v13, 0.0 }
 0x860   :  { %1170 = vadd.xlane.f32.xlu0 %v1169_v46 }
 0x864   :  { %1173 = vadd.xlane.f32.xlu0 %v1172_v14 }
 0x8ed   :  { %v1171_v21 = vpop.xlane.xlu0 %1170 }
 0x8ee   :  { %v1175_v22 = vmul.f32 0.03125, %v1171_v21 }
 0x8f0   :  { %v1177_v24 = vadd.f32 1e-12, %v1175_v22 }
 0x8f1   :  { %v1174_v25 = vpop.xlane.xlu0 %1173 }
 0x8f2   :  { %6664 = vrsqrt.f32 %v1177_v24  ;;  %v1176_v27 = vmul.f32 0.03125, %v1174_v25 }
 0x8f4   :  { %v1178_v28 = vadd.f32 1e-12, %v1176_v27 }
 0x8f6   :  { %6666 = vrsqrt.f32 %v1178_v28 }
 0x8fc   :  { %v6665_v29 = vpop.eup %6664 }
 0x8fd   :  { %v1181_v31 = vmul.f32 %v6665_v29, %v1165_v12 }
 0x8ff   :  { %v1189_v33 = vmul.f32 %v5324_v30, %v1181_v31 }
 0x900   :  { %v6667_v35 = vpop.eup %6666 }
 0x901   :  { %v1182_v36 = vmul.f32 %v6667_v35, %v1166_v11  ;;  %v1197_v38 = vadd.f32 %v5325_v32, %v1189_v33 }
 0x903   :  { %v1190_v39 = vmul.f32 %v5324_v30, %v1182_v36  ;;  %5771 = vmatprep.mubr.msk.f32.mxu0 %vm285_vm0, %v1197_v38 }
 0x905   :  { %v1198_v40 = vadd.f32 %v5325_v32, %v1190_v39 }
 0x907   :  { %5772 = vmatmul.mubr.msk.f32.vlgmr.msra.gmra.mrb[14].mxu0 %vm285_vm0, %v1198_v40 }
 0x9da   :  { %v5773_v61 = vpop.f32.mrb[14].mxu0 }
 0x9db   :  { %v1283_v62 = vadd.f32 %v5773_v61, %v5326_v60  ;;  %v1277_v63 = vpop.f32.mrb[15].mxu0 }
 0x9dc   :  { %v1278_v0 = vadd.f32 %v5326_v60, %v1277_v63  ;;  %v1448_v60 = vld [vmem:[%s8432_s16 + $0x8] sm:$0xff] }
 0x9dd   :  { %v1289_v1 = vmul.f32 0.044715, %v1283_v62  ;;  %v1287_v14 = vmul.f32 0.5, %v1283_v62  ;;  %v6244_v61 = vpack.c.bf16 %v1448_v60, %v1447_v57 }
 0x9de   :  { %v1288_v2 = vmul.f32 0.044715, %v1278_v0  ;;  %v1286_v46 = vmul.f32 0.5, %v1278_v0 }
 0x9df   :  { %v1291_v4 = vmul.f32 %v1289_v1, %v1283_v62 }
 0x9e0   :  { %v1290_v5 = vmul.f32 %v1288_v2, %v1278_v0 }
 0x9e1   :  { %v1293_v6 = vmul.f32 %v1291_v4, %v1283_v62 }
 0x9e2   :  { %v1292_v7 = vmul.f32 %v1290_v5, %v1278_v0 }
 0x9e3   :  { %v1295_v3 = vadd.f32 %v1293_v6, %v1283_v62  ;;  %v5332_v6 = vld [vmem:[%s8433_s0] ss:$0 sm:$0xff] }
 0x9e4   :  { %v1294_v8 = vadd.f32 %v1292_v7, %v1278_v0 }
 0x9e5   :  { %v1297_v9 = vmul.f32 0.7978846, %v1295_v3 }
 0x9e6   :  { %v1296_v10 = vmul.f32 0.7978846, %v1294_v8 }
 0x9e7   :  { %6668 = vtanh.f32 %v1297_v9  ;;  %v5333_v9 = vld [vmem:[%s8434_s12] ss:$0 sm:$0xff] }
 0x9e8   :  { %6670 = vtanh.f32 %v1296_v10 }
 0x9f1   :  { %v6669_v11 = vpop.eup %6668 }
 0x9f2   :  { %v6671_v12 = vpop.eup %6670  ;;  %v1301_v13 = vadd.f32 1.0, %v6669_v11 }
 0x9f3   :  { %v1300_v41 = vadd.f32 1.0, %v6671_v12  ;;  %v1449_v12 = vld [vmem:[%s8432_s16 + $0x10] sm:$0xff] }
 0x9f4   :  { %v1303_v16 = vmul.f32 %v1301_v13, %v1287_v14  ;;  %v1450_v13 = vld [vmem:[%s8432_s16 + $0x18] sm:$0xff] }
 0x9f5   :  { %v1302_v15 = vmul.f32 %v1300_v41, %v1286_v46  ;;  %v6248_v14 = vpack.c.bf16 %v1450_v13, %v1449_v12 }
 0x9f7   :  { %5790 = vmatprep.mubr.msk.f32.mxu1 %vm818_vm3, %v1302_v15  ;;  %v5337_v15 = vld [vmem:[%s8435_s18] ss:$0 sm:$0xff] }
 0x9f8   :  { %5791 = vmatmul.mubr.msk.f32.vlgmr.msra.gmra.mrb[10].mxu1 %vm818_vm3, %v1303_v16  ;;  %v5334_v16 = vld [vmem:[%s8436_s22] ss:$0 sm:$0xff] }
 0x9f9   :  { %6239 = vmatpush3.bf16.msra.mxu1 %v6236_v51 }
 0x9fa   :  { %6241 = vmatprep.subr.bf16.mxu1 %v6240_v56 }
 0x9fd   :  { %6243 = vmatpush3.bf16.msra.mxu1 %v6240_v56 }
 0xacb   :  { %v5792_v17 = vpop.f32.mrb[10].mxu1 }
 0xacc   :  { %v1386_v19 = vadd.f32 %v5792_v17, %v1198_v40  ;;  %v1376_v20 = vpop.f32.mrb[11].mxu1  ;;  %v1437_v40 = vld [vmem:[%s8430_s13] sm:$0xff] }
 0xacd   :  { %v1385_v21 = vadd.f32 %v1376_v20, %v1197_v38  ;;  %v6228_v45 = vpack.c.bf16 %v1438_v42, %v1437_v40 }
 0xace   :  { %v1394_v22 = vadd.f32 %v5331_v18, %v1386_v19 }
 0xacf   :  { %v1393_v24 = vadd.f32 %v5331_v18, %v1385_v21  ;;  %6229 = vmatprep.subr.bf16.mxu0 %v6228_v45 }
 0xad0   :  { %v1398_v25 = vsel %vm285_vm0, %v1394_v22, 0.0  ;;  %6231 = vmatpush3.bf16.msra.mxu0 %v6228_v45 }
 0xad1   :  { %1399 = vadd.xlane.f32.xlu1 %v1398_v25  ;;  %v1395_v27 = vsel %vm285_vm0, %v1393_v24, 0.0  ;;  %6233 = vmatprep.subr.bf16.mxu0 %v6232_v52 }
 0xad2   :  { %1396 = vadd.xlane.f32.xlu0 %v1395_v27 }
 0xad4   :  { %6235 = vmatpush3.bf16.msra.mxu0 %v6232_v52 }
 0xad5   :  { %6245 = vmatprep.subr.bf16.mxu0 %v6244_v61 }
 0xb5e   :  { %v1400_v28 = vpop.xlane.xlu1 %1399 }
 0xb5f   :  { %v1402_v29 = vmul.f32 0.03125, %v1400_v28  ;;  %v1397_v30 = vpop.xlane.xlu0 %1396  ;;  %v5340_v28 = vld [vmem:[%s8437_s23] ss:$0 sm:$0xff] }
 0xb60   :  { %v1401_v31 = vmul.f32 0.03125, %v1397_v30 }
 0xb61   :  { %v1404_v32 = vsub.f32 %v1394_v22, %v1402_v29 }
 0xb62   :  { %v1403_v33 = vsub.f32 %v1393_v24, %v1401_v31 }
 0xb63   :  { %v1406_v35 = vmul.f32 %v1404_v32, %v1404_v32 }
 0xb64   :  { %v1405_v36 = vmul.f32 %v1403_v33, %v1403_v33 }
 0xb65   :  { %v1410_v38 = vsel %vm285_vm0, %v1406_v35, 0.0 }
 0xb66   :  { %1411 = vadd.xlane.f32.xlu1 %v1410_v38  ;;  %v1407_v39 = vsel %vm285_vm0, %v1405_v36, 0.0 }
 0xb67   :  { %1408 = vadd.xlane.f32.xlu0 %v1407_v39 }
 0xbf3   :  { %v1412_v62 = vpop.xlane.xlu1 %1411 }
 0xbf4   :  { %v1414_v63 = vmul.f32 0.03125, %v1412_v62  ;;  %v1409_v0 = vpop.xlane.xlu0 %1408 }
 0xbf5   :  { %v1413_v1 = vmul.f32 0.03125, %v1409_v0 }
 0xbf6   :  { %v1416_v2 = vadd.f32 1e-12, %v1414_v63 }
 0xbf7   :  { %v1415_v4 = vadd.f32 1e-12, %v1413_v1 }
 0xbf8   :  { %6672 = vrsqrt.f32 %v1416_v2 }
 0xbf9   :  { %6674 = vrsqrt.f32 %v1415_v4 }
 0xc02   :  { %v6673_v5 = vpop.eup %6672 }
 0xc03   :  { %v6675_v7 = vpop.eup %6674  ;;  %v1420_v3 = vmul.f32 %v6673_v5, %v1404_v32 }
 0xc04   :  { %v1419_v8 = vmul.f32 %v6675_v7, %v1403_v33 }
 0xc05   :  { %v1428_v10 = vmul.f32 %v5332_v6, %v1420_v3 }
 0xc06   :  { %v1427_v11 = vmul.f32 %v5332_v6, %v1419_v8 }
 0xc07   :  { %v7578_v41 = vadd.f32 %v5333_v9, %v1428_v10 }
 0xc08   :  { %v7576_v46 = vadd.f32 %v5333_v9, %v1427_v11 }
 0xc0a   :  { %5801 = vmatprep.mubr.msk.f32.mxu0 %vm285_vm0, %v7576_v46  ;;  %5812 = vmatprep.mubr.msk.f32.mxu1 %vm285_vm0, %v7576_v46 }
 0xc0b   :  { %5802 = vmatmul.mubr.msk.f32.vlgmr.msra.gmra.mrb[16].mxu0 %vm285_vm0, %v7578_v41  ;;  %5813 = vmatmul.mubr.msk.f32.vlgmr.msra.gmra.mrb[12].mxu1 %vm285_vm0, %v7578_v41 }
 0xc0c   :  { %6247 = vmatpush3.bf16.msra.mxu0 %v6244_v61  ;;  %5823 = vmatprep.mubr.msk.f32.mxu0 %vm285_vm0, %v7576_v46 }
 0xc0d   :  { %6249 = vmatprep.subr.bf16.mxu0 %v6248_v14 }
 0xc10   :  { %6251 = vmatpush3.bf16.msra.mxu0 %v6248_v14 }
 0xc13   :  { %5824 = vmatmul.mubr.msk.f32.vlgmr.msra.gmra.mrb[18].mxu0 %vm285_vm0, %v7578_v41 }
 0xcde   :  { %v5803_v17 = vpop.f32.mrb[16].mxu0  ;;  %v5814_v18 = vpop.f32.mrb[12].mxu1 }
 0xcdf   :  { %v1640_v19 = vadd.f32 %v5814_v18, %v5337_v15  ;;  %v1553_v20 = vpop.f32.mrb[17].mxu0  ;;  %v1634_v21 = vpop.f32.mrb[13].mxu1  ;;  %v1559_v29 = vadd.f32 %v5803_v17, %v5334_v16 }
 0xce0   :  { %v1554_v22 = vadd.f32 %v5334_v16, %v1553_v20  ;;  %v1635_v24 = vadd.f32 %v5337_v15, %v1634_v21 }
 0xce2   :  { %5842 = vmatprep.mubr.msk.f32.mxu1 %vm664_vm1, %v1554_v22  ;;  %v6555_v25 = vpack.i.bf16 %v1640_v19, %v1635_v24  ;;  %v6252_v27 = vpack.c.bf16 %v1640_v19, %v1635_v24 }
 0xce4   :  { %6556 = vrot.lane.b32.xlu1 %v6555_v25, %s7067_s5  ;;  %6551 = vrot.lane.b32.xlu0 %v6555_v25, %s7068_s17 }
 0xce5   :  { %6254 = vmatprep.subr.msk.bf16.mxu1 %vm7408_vm2, %v6252_v27 }
 0xce6   :  { %v5825_v30 = vpop.f32.mrb[18].mxu0  ;;  %6257 = vmatpush3.bf16.xpose.msk.msra.mxu1 %vm7408_vm2, %v6252_v27 }
 0xce7   :  { %v1721_v31 = vadd.f32 %v5825_v30, %v5340_v28  ;;  %v1715_v32 = vpop.f32.mrb[19].mxu0 }
 0xce8   :  { %v1716_v33 = vadd.f32 %v5340_v28, %v1715_v32  ;;  %6561 = vrot.lane.b32.xlu1 %v6555_v25, %s7069_s21  ;;  %1728 = vrot.lane.b32.xlu0 %v1559_v29, %s7068_s17 }
 0xcea   :  { %v6276_v35 = vpack.c.bf16 %v1721_v31, %v1716_v33  ;;  %v7604_v36 = vpack.i.bf16 %v1721_v31, %v1716_v33 }
 0xcec   :  { %6277 = vmatprep.subr.bf16.mxu0 %v6276_v35  ;;  %1732 = vrot.lane.b32.xlu0 %v1559_v29, %s7067_s5 }
 0xced   :  { %6279 = vmatpush3.bf16.msra.mxu0 %v6276_v35  ;;  %1726 = vrot.lane.b32.xlu1 %v1554_v22, %s7068_s17 }
 0xcf0   :  { %1736 = vrot.lane.b32.xlu0 %v1559_v29, %s7069_s21 }
 0xcf1   :  { %1730 = vrot.lane.b32.xlu1 %v1554_v22, %s7067_s5 }
 0xcf5   :  { %1734 = vrot.lane.b32.xlu1 %v1554_v22, %s7069_s21 }
 0xd56   :  { %v6557_v38 = vpop.permute.xlu1 %6556  ;;  %v6552_v39 = vpop.permute.xlu0 %6551 }
 0xd57   :  { %v6559_v40 = vunpack.i.h.bf16 %v6557_v38  ;;  %v6558_v42 = vunpack.i.l.bf16 %v6557_v38  ;;  %v6554_v44 = vunpack.i.h.bf16 %v6552_v39  ;;  %v6553_v45 = vunpack.i.l.bf16 %v6552_v39 }
 0xd59   :  { %v6258_v47 = vpack.c.bf16 %v6554_v44, %v6553_v45  ;;  %v6264_v49 = vpack.c.bf16 %v6559_v40, %v6558_v42 }
 0xd5a   :  { %v6562_v50 = vpop.permute.xlu1 %6561  ;;  %v1729_v56 = vpop.permute.xlu0 %1728 }
 0xd5b   :  { %6260 = vmatprep.subr.msk.bf16.mxu1 %vm7408_vm2, %v6258_v47  ;;  %v6564_v51 = vunpack.i.h.bf16 %v6562_v50  ;;  %v6563_v52 = vunpack.i.l.bf16 %v6562_v50 }
 0xd5c   :  { %6263 = vmatpush3.bf16.xpose.msk.msra.mxu1 %vm7408_vm2, %v6258_v47 }
 0xd5d   :  { %6266 = vmatprep.subr.msk.bf16.mxu1 %vm7408_vm2, %v6264_v49  ;;  %v6270_v54 = vpack.c.bf16 %v6564_v51, %v6563_v52 }
 0xd5e   :  { %v1733_v60 = vpop.permute.xlu0 %1732 }
 0xd5f   :  { %v1727_v55 = vpop.permute.xlu1 %1726 }
 0xd62   :  { %v1737_v62 = vpop.permute.xlu0 %1736 }
 0xd63   :  { %v1731_v57 = vpop.permute.xlu1 %1730 }
 0xd64   :  { %6269 = vmatpush3.bf16.xpose.msk.msra.mxu1 %vm7408_vm2, %v6264_v49 }
 0xd65   :  { %6272 = vmatprep.subr.msk.bf16.mxu1 %vm7408_vm2, %v6270_v54 }
 0xd67   :  { %v1735_v61 = vpop.permute.xlu1 %1734 }
 0xd6c   :  { %6275 = vmatpush3.bf16.xpose.msk.msra.mxu1 %vm7408_vm2, %v6270_v54 }
 0xd73   :  { %5843 = vmatmul.mubr.msk.f32.vlgmr.msra.gmra.mrb[14].mxu1 %vm664_vm1, %v1559_v29 }
 0xd74   :  { %5845 = vmatprep.mubr.msk.f32.mxu1 %vm664_vm1, %v1727_v55 }
 0xd77   :  { %5846 = vmatmul.mubr.msk.f32.gmra.mrb[16].mxu1 %vm664_vm1, %v1729_v56 }
 0xd78   :  { %5848 = vmatprep.mubr.msk.f32.mxu1 %vm664_vm1, %v1731_v57 }
 0xd7b   :  { %5849 = vmatmul.mubr.msk.f32.gmra.mrb[18].mxu1 %vm664_vm1, %v1733_v60 }
 0xd7c   :  { %5851 = vmatprep.mubr.msk.f32.mxu1 %vm664_vm1, %v1735_v61 }
 0xd7f   :  { %5852 = vmatmul.mubr.msk.f32.gmra.mrb[20].mxu1 %vm664_vm1, %v1737_v62 }
 0xe46   :  { %v5844_v59 = vpop.f32.mrb[14].mxu1 }
 0xe47   :  { %v1910_v63 = vmul.f32 0.35355338, %v5844_v59  ;;  %v1870_v0 = vpop.f32.mrb[15].mxu1 }
 0xe48   :  { %v1909_v1 = vmul.f32 0.35355338, %v1870_v0 }
 0xe49   :  { %v1918_v2 = vadd.f32 %v1910_v63, %v7448_v23 }
 0xe4a   :  { %v5847_v4 = vpop.f32.mrb[16].mxu1  ;;  %v1917_v5 = vadd.f32 %v1909_v1, %v7451_v26 }
 0xe4b   :  { %v1912_v6 = vmul.f32 0.35355338, %v5847_v4  ;;  %v1880_v7 = vpop.f32.mrb[17].mxu1  ;;  %v1928_v3 = vsel %vm818_vm3, %v1918_v2, -inf }
 0xe4c   :  { %v1911_v8 = vmul.f32 0.35355338, %v1880_v7  ;;  %1929 = vmax.xlane.f32.xlu0 %v1928_v3  ;;  %v1925_v9 = vsel %vm818_vm3, %v1917_v5, -inf }
 0xe4d   :  { %1926 = vmax.xlane.f32.xlu1 %v1925_v9  ;;  %v1920_v13 = vadd.f32 %v1912_v6, %v7461_v37 }
 0xe4e   :  { %v5850_v10 = vpop.f32.mrb[18].mxu1  ;;  %v1919_v11 = vadd.f32 %v1911_v8, %v7457_v34 }
 0xe4f   :  { %v1890_v12 = vpop.f32.mrb[19].mxu1  ;;  %v1914_v14 = vmul.f32 0.35355338, %v5850_v10  ;;  %v1934_v18 = vsel %vm818_vm3, %v1920_v13, -inf }
 0xe50   :  { %v1913_v23 = vmul.f32 0.35355338, %v1890_v12  ;;  %v1931_v15 = vsel %vm818_vm3, %v1919_v11, -inf }
 0xe51   :  { %1932 = vmax.xlane.f32.xlu0 %v1931_v15  ;;  %v1922_v34 = vadd.f32 %v1914_v14, %v7470_v48 }
 0xe52   :  { %v5853_v26 = vpop.f32.mrb[20].mxu1  ;;  %v1921_v16 = vadd.f32 %v1913_v23, %v7466_v43 }
 0xe53   :  { %v1900_v17 = vpop.f32.mrb[21].mxu1  ;;  %v1916_v19 = vmul.f32 0.35355338, %v5853_v26  ;;  %v1940_v22 = vsel %vm818_vm3, %v1922_v34, -inf }
 0xe54   :  { %v1915_v20 = vmul.f32 0.35355338, %v1900_v17  ;;  %v1937_v21 = vsel %vm818_vm3, %v1921_v16, -inf }
 0xe55   :  { %1935 = vmax.xlane.f32.xlu0 %v1934_v18  ;;  %1938 = vmax.xlane.f32.xlu1 %v1937_v21  ;;  %v1924_v25 = vadd.f32 %v1916_v19, %v7480_v58 }
 0xe56   :  { %v1923_v37 = vadd.f32 %v1915_v20, %v7475_v53 }
 0xe57   :  { %v1946_v43 = vsel %vm818_vm3, %v1924_v25, -inf }
 0xe58   :  { %v1943_v24 = vsel %vm818_vm3, %v1923_v37, -inf }
 0xe59   :  { %1941 = vmax.xlane.f32.xlu0 %v1940_v22  ;;  %1944 = vmax.xlane.f32.xlu1 %v1943_v24 }
 0xe5d   :  { %1947 = vmax.xlane.f32.xlu0 %v1946_v43 }
 0xe6a   :  { %6566 = vrot.lane.b32.xlu1 %v7604_v36, %s7068_s17  ;;  %s8444_s17 = sld [smem:[#allocation42_spill]] }
 0xed9   :  { %v1930_v27 = vpop.xlane.xlu0 %1929 }
 0xeda   :  { %v1950_v48 = vsub.f32 %v1918_v2, %v1930_v27  ;;  %v1927_v28 = vpop.xlane.xlu1 %1926 }
 0xedb   :  { %v1949_v29 = vsub.f32 %v1917_v5, %v1927_v28 }
 0xedc   :  { %v1959_v30 = vmul.f32 1.442695, %v1950_v48 }
 0xedd   :  { %v1957_v53 = vmul.f32 1.442695, %v1949_v29 }
 0xede   :  { %6676 = vpow2.f32 %v1959_v30  ;;  %v1933_v31 = vpop.xlane.xlu0 %1932 }
 0xedf   :  { %6678 = vpow2.f32 %v1957_v53  ;;  %v1951_v32 = vsub.f32 %v1919_v11, %v1933_v31 }
 0xee1   :  { %v1961_v33 = vmul.f32 1.442695, %v1951_v32 }
 0xee2   :  { %v1936_v58 = vpop.xlane.xlu0 %1935  ;;  %v1939_v35 = vpop.xlane.xlu1 %1938 }
 0xee3   :  { %6680 = vpow2.f32 %v1961_v33  ;;  %v1952_v38 = vsub.f32 %v1920_v13, %v1936_v58  ;;  %v1953_v39 = vsub.f32 %v1921_v16, %v1939_v35 }
 0xee5   :  { %v1963_v40 = vmul.f32 1.442695, %v1952_v38  ;;  %v1965_v42 = vmul.f32 1.442695, %v1953_v39 }
 0xee6   :  { %v1942_v44 = vpop.xlane.xlu0 %1941  ;;  %v1945_v45 = vpop.xlane.xlu1 %1944 }
 0xee7   :  { %6682 = vpow2.f32 %v1963_v40  ;;  %v1954_v47 = vsub.f32 %v1922_v34, %v1942_v44  ;;  %v1955_v49 = vsub.f32 %v1923_v37, %v1945_v45  ;;  %v1453_v44 = vld [vmem:[%s8438_s26 + $0x8] sm:$0xff] }
 0xee8   :  { %v7648_v50 = vpop.eup %6676  ;;  %6684 = vpow2.f32 %v1965_v42  ;;  %v1452_v42 = vld [vmem:[%s8438_s26] sm:$0xff] }
 0xee9   :  { %v6679_v51 = vpop.eup %6678  ;;  %v1967_v52 = vmul.f32 1.442695, %v1954_v47  ;;  %v1969_v54 = vmul.f32 1.442695, %v1955_v49  ;;  %v1976_v55 = vsel %vm818_vm3, %v7648_v50, 0.0  ;;  %v6292_v45 = vpack.c.bf16 %v1453_v44, %v1452_v42  ;;  %v1454_v47 = vld [vmem:[%s8438_s26 + $0x10] sm:$0xff] }
 0xeea   :  { %1977 = vadd.xlane.f32.xlu0 %v1976_v55  ;;  %v1948_v56 = vpop.xlane.xlu0 %1947  ;;  %v6567_v57 = vpop.permute.xlu1 %6566  ;;  %v1973_v60 = vsel %vm818_vm3, %v6679_v51, 0.0  ;;  %v1455_v49 = vld [vmem:[%s8438_s26 + $0x18] sm:$0xff] }
 0xeeb   :  { %6686 = vpow2.f32 %v1967_v52  ;;  %v1956_v61 = vsub.f32 %v1924_v25, %v1948_v56  ;;  %v6569_v62 = vunpack.i.h.bf16 %v6567_v57  ;;  %v6568_v59 = vunpack.i.l.bf16 %v6567_v57  ;;  %1974 = vadd.xlane.f32.xlu1 %v1973_v60 }
 0xeec   :  { %6688 = vpow2.f32 %v1969_v54 }
 0xeed   :  { %v6681_v63 = vpop.eup %6680  ;;  %v1971_v0 = vmul.f32 1.442695, %v1956_v61  ;;  %v6280_v1 = vpack.c.bf16 %v6569_v62, %v6568_v59 }
 0xeee   :  { %v1979_v2 = vsel %vm818_vm3, %v6681_v63, 0.0 }
 0xeef   :  { %6690 = vpow2.f32 %v1971_v0  ;;  %1980 = vadd.xlane.f32.xlu1 %v1979_v2  ;;  %6281 = vmatprep.subr.bf16.mxu0 %v6280_v1 }
 0xef0   :  { %6283 = vmatpush3.bf16.msra.mxu0 %v6280_v1 }
 0xef1   :  { %v6683_v4 = vpop.eup %6682 }
 0xef2   :  { %v6685_v5 = vpop.eup %6684  ;;  %v1982_v6 = vsel %vm818_vm3, %v6683_v4, 0.0 }
 0xef3   :  { %1983 = vadd.xlane.f32.xlu0 %v1982_v6  ;;  %v1985_v7 = vsel %vm818_vm3, %v6685_v5, 0.0 }
 0xef4   :  { %1986 = vadd.xlane.f32.xlu1 %v1985_v7 }
 0xef5   :  { %v6687_v3 = vpop.eup %6686 }
 0xef6   :  { %v6689_v8 = vpop.eup %6688  ;;  %v1988_v9 = vsel %vm818_vm3, %v6687_v3, 0.0 }
 0xef7   :  { %1989 = vadd.xlane.f32.xlu0 %v1988_v9  ;;  %v1991_v10 = vsel %vm818_vm3, %v6689_v8, 0.0  ;;  %v5367_v9 = vld [vmem:[%s8439_s28] ss:$0 sm:$0xff] }
 0xef8   :  { %1992 = vadd.xlane.f32.xlu1 %v1991_v10 }
 0xef9   :  { %v6691_v11 = vpop.eup %6690 }
 0xefa   :  { %v1994_v12 = vsel %vm818_vm3, %v6691_v11, 0.0 }
 0xefb   :  { %1995 = vadd.xlane.f32.xlu0 %v1994_v12 }
 0xf09   :  { %6576 = vrot.lane.b32.xlu1 %v7604_v36, %s7069_s21  ;;  %s8445_s21 = sld [smem:[#allocation44_spill]] }
 0xf11   :  { %6571 = vrot.lane.b32.xlu0 %v7604_v36, %s7067_s5  ;;  %s8443_s5 = sld [smem:[#allocation43_spill]] }
 0xf77   :  { %v1978_v14 = vpop.xlane.xlu0 %1977 }
 0xf78   :  { %v1975_v13 = vpop.xlane.xlu1 %1974 }
 0xf79   :  { %6692 = vrcp.f32 %v1975_v13 }
 0xf7a   :  { %6694 = vrcp.f32 %v1978_v14 }
 0xf7c   :  { %v1981_v23 = vpop.xlane.xlu1 %1980 }
 0xf7d   :  { %6696 = vrcp.f32 %v1981_v23 }
 0xf80   :  { %v1984_v15 = vpop.xlane.xlu0 %1983 }
 0xf81   :  { %v1987_v26 = vpop.xlane.xlu1 %1986  ;;  %6698 = vrcp.f32 %v1984_v15 }
 0xf82   :  { %6700 = vrcp.f32 %v1987_v26 }
 0xf83   :  { %v6693_v16 = vpop.eup %6692 }
 0xf84   :  { %v1990_v17 = vpop.xlane.xlu0 %1989  ;;  %v1998_v18 = vmul.f32 %v6693_v16, %v6679_v51  ;;  %v6695_v27 = vpop.eup %6694 }
 0xf85   :  { %v1993_v19 = vpop.xlane.xlu1 %1992  ;;  %6702 = vrcp.f32 %v1990_v17  ;;  %v2000_v28 = vmul.f32 %v6695_v27, %v7648_v50  ;;  %v6296_v50 = vpack.c.bf16 %v1455_v49, %v1454_v47  ;;  %v1464_v47 = vld [vmem:[%s8443_s5] sm:$0xff]  ;;  %v1465_v49 = vld [vmem:[%s8443_s5 + $0x8] sm:$0xff] }
 0xf86   :  { %5870 = vmatprep.mubr.msk.f32.mxu0 %vm818_vm3, %v1998_v18  ;;  %6704 = vrcp.f32 %v1993_v19 }
 0xf87   :  { %v6697_v48 = vpop.eup %6696 }
 0xf88   :  { %v1996_v20 = vpop.xlane.xlu0 %1995  ;;  %v2002_v30 = vmul.f32 %v6697_v48, %v6681_v63 }
 0xf89   :  { %v6577_v21 = vpop.permute.xlu1 %6576  ;;  %6706 = vrcp.f32 %v1996_v20 }
 0xf8a   :  { %v6579_v37 = vunpack.i.h.bf16 %v6577_v21  ;;  %v6578_v22 = vunpack.i.l.bf16 %v6577_v21 }
 0xf8b   :  { %v6699_v29 = vpop.eup %6698 }
 0xf8c   :  { %v6572_v34 = vpop.permute.xlu0 %6571  ;;  %v6288_v43 = vpack.c.bf16 %v6579_v37, %v6578_v22  ;;  %v6701_v53 = vpop.eup %6700  ;;  %v2004_v31 = vmul.f32 %v6699_v29, %v6683_v4  ;;  %v1459_v22 = vld [vmem:[%s8440_s6] sm:$0xff] }
 0xf8d   :  { %v6574_v36 = vunpack.i.h.bf16 %v6572_v34  ;;  %v6573_v24 = vunpack.i.l.bf16 %v6572_v34  ;;  %v2006_v33 = vmul.f32 %v6701_v53, %v6685_v5 }
 0xf8f   :  { %v6284_v25 = vpack.c.bf16 %v6574_v36, %v6573_v24  ;;  %v6703_v32 = vpop.eup %6702  ;;  %v1460_v36 = vld [vmem:[%s8440_s6 + $0x8] sm:$0xff]  ;;  %v1461_v24 = vld [vmem:[%s8440_s6 + $0x10] sm:$0xff] }
 0xf90   :  { %v6705_v58 = vpop.eup %6704  ;;  %v2008_v35 = vmul.f32 %v6703_v32, %v6687_v3 }
 0xf91   :  { %6285 = vmatprep.subr.bf16.mxu0 %v6284_v25  ;;  %v2010_v39 = vmul.f32 %v6705_v58, %v6689_v8 }
 0xf92   :  { %6287 = vmatpush3.bf16.msra.mxu0 %v6284_v25  ;;  %v6300_v25 = vpack.c.bf16 %v1460_v36, %v1459_v22 }
 0xf93   :  { %6289 = vmatprep.subr.bf16.mxu0 %v6288_v43  ;;  %v6707_v38 = vpop.eup %6706 }
 0xf94   :  { %v2012_v40 = vmul.f32 %v6707_v38, %v6691_v11 }
 0xf96   :  { %6291 = vmatpush3.bf16.msra.mxu0 %v6288_v43  ;;  %v1462_v43 = vld [vmem:[%s8440_s6 + $0x18] sm:$0xff] }
 0xf97   :  { %6293 = vmatprep.subr.bf16.mxu0 %v6292_v45  ;;  %v6304_v27 = vpack.c.bf16 %v1462_v43, %v1461_v24 }
 0xf99   :  { %5871 = vmatmul.mubr.msk.f32.vlgmr.msra.gmra.mrb[20].mxu0 %vm818_vm3, %v2000_v28 }
 0xf9a   :  { %5873 = vmatprep.mubr.msk.f32.mxu0 %vm818_vm3, %v2002_v30  ;;  %6295 = vmatpush3.bf16.msra.mxu0 %v6292_v45 }
 0xf9b   :  { %6297 = vmatprep.subr.bf16.mxu0 %v6296_v50 }
 0xf9d   :  { %5874 = vmatmul.mubr.msk.f32.gmra.mrb[22].mxu0 %vm818_vm3, %v2004_v31 }
 0xf9e   :  { %5876 = vmatprep.mubr.msk.f32.mxu0 %vm818_vm3, %v2006_v33  ;;  %6299 = vmatpush3.bf16.msra.mxu0 %v6296_v50  ;;  %v5370_v33 = vld [vmem:[%s8441_s27] ss:$0 sm:$0xff]  ;;  %v6308_v50 = vpack.c.bf16 %v1465_v49, %v1464_v47  ;;  %v2547_v47 = vld [vmem:[%s8447_s29 + $0x10] sm:$0xff]  ;;  %v2548_v49 = vld [vmem:[%s8447_s29 + $0x18] sm:$0xff] }
 0xf9f   :  { %6301 = vmatprep.subr.bf16.mxu0 %v6300_v25 }
 0xfa0   :  { %6309 = vmatprep.subr.bf16.mxu1 %v6308_v50 }
 0xfa1   :  { %5877 = vmatmul.mubr.msk.f32.gmra.mrb[24].mxu0 %vm818_vm3, %v2008_v35  ;;  %v5371_v35 = vld [vmem:[%s8442_s1] ss:$0 sm:$0xff]  ;;  %6311 = vmatpush3.bf16.msra.mxu1 %v6308_v50  ;;  %v7734_v50 = vpack.c.bf16 %v2548_v49, %v2547_v47 }
 0xfa2   :  { %5879 = vmatprep.mubr.msk.f32.mxu0 %vm818_vm3, %v2010_v39 }
 0xfa5   :  { %5880 = vmatmul.mubr.msk.f32.gmra.mrb[26].mxu0 %vm818_vm3, %v2012_v40 }
0x106c   :  { %v5872_v51 = vpop.f32.mrb[20].mxu0 }
0x106d   :  { %v2103_v52 = vpop.f32.mrb[21].mxu0 }
0x1070   :  { %v5875_v54 = vpop.f32.mrb[22].mxu0 }
0x1071   :  { %2146 = vrot.lane.b32.xlu1 %v5875_v54, %s7070_s3  ;;  %v2113_v55 = vpop.f32.mrb[23].mxu0 }
0x1074   :  { %v5878_v56 = vpop.f32.mrb[24].mxu0 }
0x1075   :  { %2144 = vrot.lane.b32.xlu1 %v2113_v55, %s7070_s3  ;;  %v2123_v57 = vpop.f32.mrb[25].mxu0  ;;  %v1468_v55 = vld [vmem:[%s8443_s5 + $0x20] sm:$0xff]  ;;  %s7076_s3 = smov 32  }
0x1076   :  { %2152 = vrot.lane.b32.xlu0 %v2123_v57, %s7071_s8 }
0x1078   :  { %v5881_v60 = vpop.f32.mrb[26].mxu0 }
0x1079   :  { %2154 = vrot.lane.b32.xlu1 %v5878_v56, %s7071_s8  ;;  %v2133_v61 = vpop.f32.mrb[27].mxu0  ;;  %v1469_v56 = vld [vmem:[%s8443_s5 + $0x28] sm:$0xff]  ;;  %s7077_s8 = smov 64  }
0x107a   :  { %2160 = vrot.lane.b32.xlu0 %v2133_v61, %s7072_s14  ;;  %v6316_v57 = vpack.c.bf16 %v1469_v56, %v1468_v55  ;;  %v1471_v61 = vld [vmem:[%s8443_s5 + $0x38] sm:$0xff] }
0x107d   :  { %2162 = vrot.lane.b32.xlu1 %v5881_v60, %s7072_s14  ;;  %v1470_v60 = vld [vmem:[%s8443_s5 + $0x30] sm:$0xff]  ;;  %s8450_s14 = sld [smem:[#allocation47_spill]] }
0x10e3   :  { %v2147_v62 = vpop.permute.xlu1 %2146 }
0x10e4   :  { %v2167_v6 = vsel %vm664_vm1, %v5872_v51, %v2147_v62  ;;  %v1466_v51 = vld [vmem:[%s8443_s5 + $0x10] sm:$0xff]  ;;  %v6320_v62 = vpack.c.bf16 %v1471_v61, %v1470_v60 }
0x10e7   :  { %v2145_v59 = vpop.permute.xlu1 %2144 }
0x10e8   :  { %v2153_v63 = vpop.permute.xlu0 %2152  ;;  %v2166_v0 = vsel %vm664_vm1, %v2103_v52, %v2145_v59  ;;  %v1467_v52 = vld [vmem:[%s8443_s5 + $0x18] sm:$0xff]  ;;  %v5372_v59 = vld [vmem:[%s8444_s17] ss:$0 sm:$0xff] }
0x10e9   :  { %v2168_v2 = vsel %vm1062_vm4, %v2166_v0, %v2153_v63  ;;  %v6312_v54 = vpack.c.bf16 %v1467_v52, %v1466_v51  ;;  %v7075_v51 = vmov 0.0  }
0x10eb   :  { %v2155_v1 = vpop.permute.xlu1 %2154  ;;  %6313 = vmatprep.subr.bf16.mxu1 %v6312_v54 }
0x10ec   :  { %v2161_v4 = vpop.permute.xlu0 %2160  ;;  %v2169_v7 = vsel %vm1062_vm4, %v2167_v6, %v2155_v1  ;;  %6315 = vmatpush3.bf16.msra.mxu1 %v6312_v54 }
0x10ed   :  { %v2170_v5 = vsel %vm1065_vm5, %v2168_v2, %v2161_v4  ;;  %6317 = vmatprep.subr.bf16.mxu1 %v6316_v57 }
0x10ee   :  { %5890 = vmatprep.mubr.msk.f32.mxu0 %vm285_vm0, %v2170_v5 }
0x10ef   :  { %v2163_v3 = vpop.permute.xlu1 %2162 }
0x10f0   :  { %v2171_v8 = vsel %vm1065_vm5, %v2169_v7, %v2163_v3  ;;  %6319 = vmatpush3.bf16.msra.mxu1 %v6316_v57 }
0x10f1   :  { %5891 = vmatmul.mubr.msk.f32.vlgmr.msra.gmra.mrb[28].mxu0 %vm285_vm0, %v2171_v8  ;;  %6321 = vmatprep.subr.bf16.mxu1 %v6320_v62 }
0x10f2   :  { %6303 = vmatpush3.bf16.msra.mxu0 %v6300_v25 }
0x10f3   :  { %6305 = vmatprep.subr.bf16.mxu0 %v6304_v27 }
0x10f4   :  { %6323 = vmatpush3.bf16.msra.mxu1 %v6320_v62  ;;  %v5378_v62 = vld [vmem:[#allocation2] ss:$0 sm:$0xff] }
0x10f6   :  { %6307 = vmatpush3.bf16.msra.mxu0 %v6304_v27 }
0x11c4   :  { %v5892_v10 = vpop.f32.mrb[28].mxu0 }
0x11c5   :  { %v2256_v11 = vadd.f32 %v5892_v10, %v5367_v9  ;;  %v2250_v12 = vpop.f32.mrb[29].mxu0 }
0x11c6   :  { %v2251_v13 = vadd.f32 %v5367_v9, %v2250_v12 }
0x11c7   :  { %v2260_v14 = vadd.f32 %v2256_v11, %v7578_v41 }
0x11c8   :  { %v2259_v23 = vadd.f32 %v2251_v13, %v7576_v46 }
0x11c9   :  { %v2264_v15 = vsel %vm285_vm0, %v2260_v14, 0.0 }
0x11ca   :  { %2265 = vadd.xlane.f32.xlu1 %v2264_v15  ;;  %v2261_v26 = vsel %vm285_vm0, %v2259_v23, 0.0 }
0x11cb   :  { %2262 = vadd.xlane.f32.xlu0 %v2261_v26 }
0x1257   :  { %v2266_v16 = vpop.xlane.xlu1 %2265 }
0x1258   :  { %v2268_v17 = vmul.f32 0.03125, %v2266_v16  ;;  %v2263_v18 = vpop.xlane.xlu0 %2262 }
0x1259   :  { %v2267_v19 = vmul.f32 0.03125, %v2263_v18 }
0x125a   :  { %v2270_v20 = vsub.f32 %v2260_v14, %v2268_v17 }
0x125b   :  { %v2269_v21 = vsub.f32 %v2259_v23, %v2267_v19 }
0x125c   :  { %v2272_v46 = vmul.f32 %v2270_v20, %v2270_v20 }
0x125d   :  { %v2271_v34 = vmul.f32 %v2269_v21, %v2269_v21 }
0x125e   :  { %v2276_v37 = vsel %vm285_vm0, %v2272_v46, 0.0 }
0x125f   :  { %v2273_v41 = vsel %vm285_vm0, %v2271_v34, 0.0 }
0x1260   :  { %2274 = vadd.xlane.f32.xlu0 %v2273_v41 }
0x1264   :  { %2277 = vadd.xlane.f32.xlu0 %v2276_v37 }
0x12ed   :  { %v2275_v48 = vpop.xlane.xlu0 %2274 }
0x12ee   :  { %v2279_v28 = vmul.f32 0.03125, %v2275_v48 }
0x12f0   :  { %v2281_v29 = vadd.f32 1e-12, %v2279_v28 }
0x12f1   :  { %v2278_v30 = vpop.xlane.xlu0 %2277 }
0x12f2   :  { %6708 = vrsqrt.f32 %v2281_v29  ;;  %v2280_v53 = vmul.f32 0.03125, %v2278_v30 }
0x12f4   :  { %v2282_v31 = vadd.f32 1e-12, %v2280_v53 }
0x12f6   :  { %6710 = vrsqrt.f32 %v2282_v31 }
0x12fc   :  { %v6709_v32 = vpop.eup %6708 }
0x12fd   :  { %v2285_v58 = vmul.f32 %v6709_v32, %v2269_v21  ;;  %v2549_v32 = vld [vmem:[%s8446_s25] sm:$0xff] }
0x12ff   :  { %v2293_v38 = vmul.f32 %v5370_v33, %v2285_v58  ;;  %v2551_v58 = vld [vmem:[%s8446_s25 + $0x10] sm:$0xff] }
0x1300   :  { %v6711_v39 = vpop.eup %6710 }
0x1301   :  { %v2286_v40 = vmul.f32 %v6711_v39, %v2270_v20  ;;  %v2301_v42 = vadd.f32 %v5371_v35, %v2293_v38  ;;  %v5377_v20 = vld [vmem:[%s8445_s21] ss:$0 sm:$0xff]  ;;  %v2552_v38 = vld [vmem:[%s8446_s25 + $0x18] sm:$0xff] }
0x1302   :  { %v6328_v39 = vpack.c.bf16 %v2552_v38, %v2551_v58 }
0x1303   :  { %v2294_v44 = vmul.f32 %v5370_v33, %v2286_v40  ;;  %5901 = vmatprep.mubr.msk.f32.mxu0 %vm285_vm0, %v2301_v42  ;;  %v2550_v33 = vld [vmem:[%s8446_s25 + $0x8] sm:$0xff]  ;;  %v2545_v40 = vld [vmem:[%s8447_s29] sm:$0xff] }
0x1305   :  { %v2302_v45 = vadd.f32 %v5371_v35, %v2294_v44  ;;  %v6324_v35 = vpack.c.bf16 %v2550_v33, %v2549_v32 }
0x1307   :  { %5902 = vmatmul.mubr.msk.f32.vlgmr.msra.gmra.mrb[30].mxu0 %vm285_vm0, %v2302_v45  ;;  %6325 = vmatprep.subr.bf16.mxu0 %v6324_v35 }
0x1308   :  { %6327 = vmatpush3.bf16.msra.mxu0 %v6324_v35 }
0x1309   :  { %6329 = vmatprep.subr.bf16.mxu0 %v6328_v39 }
0x130c   :  { %6331 = vmatpush3.bf16.msra.mxu0 %v6328_v39 }
0x13da   :  { %v5903_v63 = vpop.f32.mrb[30].mxu0 }
0x13db   :  { %v2387_v0 = vadd.f32 %v5903_v63, %v5372_v59  ;;  %v2381_v1 = vpop.f32.mrb[31].mxu0 }
0x13dc   :  { %v2382_v2 = vadd.f32 %v5372_v59, %v2381_v1  ;;  %v5379_v1 = vld [vmem:[#allocation5] ss:$0 sm:$0xff] }
0x13dd   :  { %v2393_v4 = vmul.f32 0.044715, %v2387_v0  ;;  %v2391_v16 = vmul.f32 0.5, %v2387_v0 }
0x13de   :  { %v2392_v5 = vmul.f32 0.044715, %v2382_v2  ;;  %v2390_v15 = vmul.f32 0.5, %v2382_v2 }
0x13df   :  { %v2395_v6 = vmul.f32 %v2393_v4, %v2387_v0 }
0x13e0   :  { %v2394_v7 = vmul.f32 %v2392_v5, %v2382_v2 }
0x13e1   :  { %v2397_v3 = vmul.f32 %v2395_v6, %v2387_v0 }
0x13e2   :  { %v2396_v8 = vmul.f32 %v2394_v7, %v2382_v2 }
0x13e3   :  { %v2399_v9 = vadd.f32 %v2397_v3, %v2387_v0 }
0x13e4   :  { %v2398_v10 = vadd.f32 %v2396_v8, %v2382_v2  ;;  %v2541_v8 = vlaneseq }
0x13e5   :  { %v2401_v11 = vmul.f32 0.7978846, %v2399_v9 }
0x13e6   :  { %v2400_v12 = vmul.f32 0.7978846, %v2398_v10  ;;  %v7757_v9 = vand.u32 127, %v2541_v8  ;;  %v5380_v10 = vld [vmem:[#allocation7] ss:$0 sm:$0xff] }
0x13e7   :  { %6712 = vtanh.f32 %v2401_v11 }
0x13e8   :  { %6714 = vtanh.f32 %v2400_v12 }
0x13f1   :  { %v6713_v13 = vpop.eup %6712 }
0x13f2   :  { %v6715_v14 = vpop.eup %6714  ;;  %v2405_v23 = vadd.f32 1.0, %v6713_v13 }
0x13f3   :  { %v2404_v26 = vadd.f32 1.0, %v6715_v14  ;;  %v2543_v14 = vand.u32 16, %v7757_v9 }
0x13f4   :  { %v2407_v18 = vmul.f32 %v2405_v23, %v2391_v16 }
0x13f5   :  { %v2406_v17 = vmul.f32 %v2404_v26, %v2390_v15  ;;  %vm7761_vm10 = vcmp.eq.s32.totalorder %v2543_v14, 0 }
0x13f7   :  { %5920 = vmatprep.mubr.msk.f32.mxu1 %vm818_vm3, %v2406_v17 }
0x13f8   :  { %5921 = vmatmul.mubr.msk.f32.vlgmr.msra.gmra.mrb[22].mxu1 %vm818_vm3, %v2407_v18 }
0x13f9   :  { %5942 = vmatprep.mubr.msk.f32.mxu1 %vm7074_vm6, %v7075_v51 }
0x14cb   :  { %v5922_v19 = vpop.f32.mrb[22].mxu1 }
0x14cc   :  { %v2490_v21 = vadd.f32 %v5922_v19, %v2302_v45  ;;  %v2480_v34 = vpop.f32.mrb[23].mxu1  ;;  %v7073_v45 = vmov 0.0|0.0  }
0x14cd   :  { %v2489_v41 = vadd.f32 %v2480_v34, %v2301_v42  ;;  %v2546_v42 = vld [vmem:[%s8447_s29 + $0x8] sm:$0xff]  ;;  %6332 = vmatprep.subr.bf16.mxu1 %v7073_v45  ;;  %6338 = vmatprep.subr.bf16.mxu0 %v7073_v45 }
0x14ce   :  { %v2498_v46 = vadd.f32 %v5377_v20, %v2490_v21  ;;  %v7727_v44 = vpack.c.bf16 %v2546_v42, %v2545_v40 }
0x14cf   :  { %v2497_v37 = vadd.f32 %v5377_v20, %v2489_v41 }
0x14d0   :  { %v2502_v22 = vsel %vm285_vm0, %v2498_v46, 0.0  ;;  %6334 = vmatpush3.bf16.msra.mxu1 %v7727_v44 }
0x14d1   :  { %2503 = vadd.xlane.f32.xlu1 %v2502_v22  ;;  %v2499_v36 = vsel %vm285_vm0, %v2497_v37, 0.0  ;;  %6335 = vmatprep.subr.bf16.mxu1 %v7073_v45 }
0x14d2   :  { %2500 = vadd.xlane.f32.xlu0 %v2499_v36 }
0x14d4   :  { %6337 = vmatpush3.bf16.msra.mxu1 %v7734_v50 }
0x14d5   :  { %6344 = vmatprep.subr.bf16.mxu1 %v7073_v45 }
0x14d7   :  { %5943 = vmatmul.mubr.f32.vlgmr.msra.gmra.mrb[24].mxu1 %v7075_v51 }
0x14d8   :  { %6346 = vmatpush3.bf16.msra.mxu1 %v7727_v44  ;;  %5964 = vmatprep.mubr.msk.f32.mxu1 %vm7074_vm6, %v7075_v51 }
0x14d9   :  { %6347 = vmatprep.subr.bf16.mxu1 %v7073_v45 }
0x14dc   :  { %6349 = vmatpush3.bf16.msra.mxu1 %v7734_v50 }
0x14dd   :  { %6356 = vmatprep.subr.bf16.mxu1 %v7073_v45 }
0x155e   :  { %v2504_v24 = vpop.xlane.xlu1 %2503 }
0x155f   :  { %v2506_v25 = vmul.f32 0.03125, %v2504_v24  ;;  %v2501_v43 = vpop.xlane.xlu0 %2500 }
0x1560   :  { %v2505_v27 = vmul.f32 0.03125, %v2501_v43 }
0x1561   :  { %v2508_v48 = vsub.f32 %v2498_v46, %v2506_v25 }
0x1562   :  { %v2507_v28 = vsub.f32 %v2497_v37, %v2505_v27 }
0x1563   :  { %v2510_v29 = vmul.f32 %v2508_v48, %v2508_v48 }
0x1564   :  { %v2509_v30 = vmul.f32 %v2507_v28, %v2507_v28 }
0x1565   :  { %v2514_v53 = vsel %vm285_vm0, %v2510_v29, 0.0 }
0x1566   :  { %2515 = vadd.xlane.f32.xlu1 %v2514_v53  ;;  %v2511_v31 = vsel %vm285_vm0, %v2509_v30, 0.0 }
0x1567   :  { %2512 = vadd.xlane.f32.xlu0 %v2511_v31 }
0x15aa   :  { %v2733_v7 = vpop.f32.mrb[24].mxu1 }
0x15ab   :  { %v5944_v3 = vpop.f32.mrb[25].mxu1 }
0x15f3   :  { %v2516_v52 = vpop.xlane.xlu1 %2515 }
0x15f4   :  { %v2518_v54 = vmul.f32 0.03125, %v2516_v52  ;;  %v2513_v55 = vpop.xlane.xlu0 %2512 }
0x15f5   :  { %v2517_v56 = vmul.f32 0.03125, %v2513_v55 }
0x15f6   :  { %v2520_v57 = vadd.f32 1e-12, %v2518_v54 }
0x15f7   :  { %v2519_v60 = vadd.f32 1e-12, %v2517_v56 }
0x15f8   :  { %6716 = vrsqrt.f32 %v2520_v57 }
0x15f9   :  { %6718 = vrsqrt.f32 %v2519_v60 }
0x1602   :  { %v6717_v61 = vpop.eup %6716 }
0x1603   :  { %v6719_v59 = vpop.eup %6718  ;;  %v2524_v63 = vmul.f32 %v6717_v61, %v2508_v48 }
0x1604   :  { %v2523_v0 = vmul.f32 %v6719_v59, %v2507_v28 }
0x1605   :  { %v2532_v2 = vmul.f32 %v5378_v62, %v2524_v63 }
0x1606   :  { %v2531_v4 = vmul.f32 %v5378_v62, %v2523_v0 }
0x1607   :  { %v2540_v6 = vadd.f32 %v5379_v1, %v2532_v2 }
0x1608   :  { %v2539_v5 = vadd.f32 %v5379_v1, %v2531_v4 }
0x160a   :  { %5931 = vmatprep.mubr.msk.f32.mxu0 %vm285_vm0, %v2539_v5 }
0x160b   :  { %5932 = vmatmul.mubr.msk.f32.vlgmr.msra.gmra.mrb[32].mxu0 %vm285_vm0, %v2540_v6 }
0x160c   :  { %6340 = vmatpush3.bf16.msra.mxu0 %v7727_v44  ;;  %5953 = vmatprep.mubr.msk.f32.mxu0 %vm7074_vm6, %v7075_v51 }
0x160d   :  { %6341 = vmatprep.subr.bf16.mxu0 %v7073_v45 }
0x1610   :  { %6343 = vmatpush3.bf16.msra.mxu0 %v7734_v50 }
0x1611   :  { %6350 = vmatprep.subr.bf16.mxu0 %v7073_v45 }
0x16de   :  { %v5933_v11 = vpop.f32.mrb[32].mxu0 }
0x16df   :  { %v2638_v12 = vadd.f32 %v5933_v11, %v5380_v10  ;;  %v2632_v13 = vpop.f32.mrb[33].mxu0 }
0x16e0   :  { %v2633_v23 = vadd.f32 %v5380_v10, %v2632_v13 }
0x16e1   :  { %v2642_v15 = vrot.slane %v2638_v12, 6  ;;  %v2644_v26 = vrot.slane %v2638_v12, 2 }
0x16e2   :  { %v2647_v16 = vrot.slane %v2633_v23, 6  ;;  %v2649_v17 = vrot.slane %v2633_v23, 2 }
0x16e3   :  { %v2652_v18 = vsel %vm2651_vm7, %v2642_v15, %v2644_v26 }
0x16e4   :  { %v2657_v20 = vsel %vm2651_vm7, %v2647_v16, %v2649_v17  ;;  %v2654_v21 = vsel %vm2653_vm8, %v2652_v18, %v2642_v15 }
0x16e5   :  { %v2656_v34 = vsel %vm2655_vm9, %v2654_v21, %v2644_v26  ;;  %v2658_v41 = vsel %vm2653_vm8, %v2657_v20, %v2647_v16 }
0x16e6   :  { %v7771_v46 = vsel %vm7761_vm10, %v2633_v23, %v2656_v34  ;;  %v2659_v37 = vsel %vm2655_vm9, %v2658_v41, %v2649_v17 }
0x16e7   :  { %v2737_v22 = vadd.f32 %v2733_v7, %v7771_v46  ;;  %v7777_v36 = vsel %vm7761_vm10, %v2638_v12, %v2659_v37 }
0x16e9   :  { %6720 = vtanh.f32 %v2737_v22  ;;  %v5383_v25 = vmul.f32 -1.442695, %v2737_v22 }
0x16eb   :  { %6722 = vpow2.f32 %v5383_v25 }
0x16f3   :  { %v6721_v24 = vpop.eup %6720 }
0x16f4   :  { %2747 = vrot.lane.b32.xlu0 %v6721_v24, %s7076_s3 }
0x16f5   :  { %v6723_v43 = vpop.eup %6722 }
0x16f6   :  { %v2741_v27 = vadd.f32 1.0, %v6723_v43 }
0x16f8   :  { %6724 = vrcp.f32 %v2741_v27 }
0x1702   :  { %v6725_v48 = vpop.eup %6724 }
0x1703   :  { %v2745_v30 = vmul.f32 0.0, %v6725_v48 }
0x1766   :  { %v2748_v28 = vpop.permute.xlu0 %2747 }
0x1767   :  { %v2750_v29 = vmul.f32 %v6725_v48, %v2748_v28 }
0x1769   :  { %2752 = vrot.lane.b32.xlu1 %v2750_v29, %s7076_s3 }
0x17db   :  { %v2753_v53 = vpop.permute.xlu1 %2752 }
0x17dc   :  { %v2755_v31 = vadd.f32 %v2753_v53, %v2745_v30 }
0x17de   :  { %6726 = vtanh.f32 %v2755_v31  ;;  %v2849_v60 = vrot.slane %v2755_v31, 6 }
0x17e8   :  { %v6727_v32 = vpop.eup %6726 }
0x17e9   :  { %2758 = vrot.lane.b32.xlu1 %v6727_v32, %s7076_s3 }
0x185b   :  { %v2759_v33 = vpop.permute.xlu1 %2758 }
0x185c   :  { %v7782_v58 = vmul.f32 %v6725_v48, %v2759_v33 }
0x185e   :  { %2763 = vrot.lane.b32.xlu1 %v7782_v58, %s7077_s8 }
0x18d0   :  { %v2764_v35 = vpop.permute.xlu1 %2763 }
0x18d1   :  { %5954 = vmatmul.mubr.msk.f32.vlgmr.msra.gmra.mrb[34].mxu0 %vm285_vm0, %v2764_v35 }
0x18d2   :  { %6352 = vmatpush3.bf16.msra.mxu0 %v7727_v44  ;;  %5975 = vmatprep.mubr.msk.f32.mxu0 %vm7074_vm6, %v7075_v51 }
0x18d3   :  { %6353 = vmatprep.subr.bf16.mxu0 %v7073_v45 }
0x18d6   :  { %6355 = vmatpush3.bf16.msra.mxu0 %v7734_v50 }
0x18d7   :  { %6362 = vmatprep.subr.bf16.mxu0 %v7073_v45 }
0x19a4   :  { %v2833_v38 = vpop.f32.mrb[34].mxu0 }
0x19a5   :  { %v2838_v39 = vrot.slane %v2833_v38, 6  ;;  %v5955_v40 = vpop.f32.mrb[35].mxu0 }
0x19a7   :  { %v2840_v42 = vadd.f32 %v2838_v39, %v7771_v46 }
0x19a9   :  { %6728 = vtanh.f32 %v2840_v42  ;;  %v5385_v49 = vmul.f32 -1.442695, %v2840_v42 }
0x19ab   :  { %6730 = vpow2.f32 %v5385_v49 }
0x19b3   :  { %v6729_v47 = vpop.eup %6728 }
0x19b4   :  { %2853 = vrot.lane.b32.xlu0 %v6729_v47, %s7076_s3 }
0x19b5   :  { %v6731_v52 = vpop.eup %6730 }
0x19b6   :  { %v2844_v54 = vadd.f32 1.0, %v6731_v52 }
0x19b8   :  { %6732 = vrcp.f32 %v2844_v54 }
0x19c2   :  { %v6733_v55 = vpop.eup %6732 }
0x19c3   :  { %v2851_v61 = vmul.f32 %v6733_v55, %v2849_v60 }
0x1a26   :  { %v2854_v56 = vpop.permute.xlu0 %2853 }
0x1a27   :  { %v2856_v57 = vmul.f32 %v6733_v55, %v2854_v56 }
0x1a29   :  { %2858 = vrot.lane.b32.xlu1 %v2856_v57, %s7076_s3 }
0x1a9b   :  { %v2859_v62 = vpop.permute.xlu1 %2858 }
0x1a9c   :  { %v2861_v59 = vadd.f32 %v2859_v62, %v2851_v61 }
0x1a9e   :  { %6734 = vtanh.f32 %v2861_v59  ;;  %v2956_v26 = vrot.slane %v2861_v59, 6 }
0x1aa8   :  { %v6735_v63 = vpop.eup %6734 }
0x1aa9   :  { %2864 = vrot.lane.b32.xlu0 %v6735_v63, %s7076_s3 }
0x1b1b   :  { %v2865_v0 = vpop.permute.xlu0 %2864 }
0x1b1c   :  { %v7797_v1 = vmul.f32 %v6733_v55, %v2865_v0 }
0x1b1e   :  { %v2869_v2 = vrot.slane %v7797_v1, 2  ;;  %v3506_v41 = vsel %vm2651_vm7, %v7782_v58, %v7797_v1  ;;  %v3524_v55 = vrot.slane %v7797_v1, 6 }
0x1b20   :  { %2870 = vrot.lane.b32.xlu1 %v2869_v2, %s7077_s8 }
0x1b92   :  { %v2871_v4 = vpop.permute.xlu1 %2870 }
0x1b93   :  { %5965 = vmatmul.mubr.msk.f32.vlgmr.msra.gmra.mrb[26].mxu1 %vm285_vm0, %v2871_v4 }
0x1b94   :  { %6358 = vmatpush3.bf16.msra.mxu1 %v7727_v44  ;;  %5986 = vmatprep.mubr.msk.f32.mxu1 %vm7074_vm6, %v7075_v51 }
0x1b95   :  { %6359 = vmatprep.subr.bf16.mxu1 %v7073_v45 }
0x1b98   :  { %6361 = vmatpush3.bf16.msra.mxu1 %v7734_v50 }
0x1b99   :  { %6368 = vmatprep.subr.bf16.mxu1 %v7073_v45 }
0x1c66   :  { %v2940_v5 = vpop.f32.mrb[26].mxu1 }
0x1c67   :  { %v2945_v6 = vrot.slane %v2940_v5, 4  ;;  %v5966_v7 = vpop.f32.mrb[27].mxu1 }
0x1c69   :  { %v2947_v3 = vadd.f32 %v2945_v6, %v7771_v46 }
0x1c6b   :  { %6736 = vtanh.f32 %v2947_v3  ;;  %v5387_v11 = vmul.f32 -1.442695, %v2947_v3 }
0x1c6d   :  { %6738 = vpow2.f32 %v5387_v11 }
0x1c75   :  { %v6737_v10 = vpop.eup %6736 }
0x1c76   :  { %2960 = vrot.lane.b32.xlu0 %v6737_v10, %s7076_s3 }
0x1c77   :  { %v6739_v12 = vpop.eup %6738 }
0x1c78   :  { %v2951_v13 = vadd.f32 1.0, %v6739_v12 }
0x1c7a   :  { %6740 = vrcp.f32 %v2951_v13 }
0x1c84   :  { %v6741_v14 = vpop.eup %6740 }
0x1c85   :  { %v2958_v16 = vmul.f32 %v6741_v14, %v2956_v26 }
0x1ce8   :  { %v2961_v23 = vpop.permute.xlu0 %2960 }
0x1ce9   :  { %v2963_v15 = vmul.f32 %v6741_v14, %v2961_v23 }
0x1ceb   :  { %2965 = vrot.lane.b32.xlu1 %v2963_v15, %s7076_s3 }
0x1d5d   :  { %v2966_v17 = vpop.permute.xlu1 %2965 }
0x1d5e   :  { %v2968_v18 = vadd.f32 %v2966_v17, %v2958_v16 }
0x1d60   :  { %6742 = vtanh.f32 %v2968_v18  ;;  %v3063_v35 = vrot.slane %v2968_v18, 6 }
0x1d6a   :  { %v6743_v20 = vpop.eup %6742 }
0x1d6b   :  { %2971 = vrot.lane.b32.xlu0 %v6743_v20, %s7076_s3 }
0x1ddd   :  { %v2972_v21 = vpop.permute.xlu0 %2971 }
0x1dde   :  { %v2974_v34 = vmul.f32 %v6741_v14, %v2972_v21 }
0x1de0   :  { %v2976_v37 = vrot.slane %v2974_v34, 4  ;;  %v3507_v22 = vsel %vm2653_vm8, %v3506_v41, %v2974_v34  ;;  %v3522_v49 = vrot.slane %v2974_v34, 2 }
0x1de2   :  { %2977 = vrot.lane.b32.xlu1 %v2976_v37, %s7077_s8 }
0x1e54   :  { %v2978_v24 = vpop.permute.xlu1 %2977 }
0x1e55   :  { %5976 = vmatmul.mubr.msk.f32.vlgmr.msra.gmra.mrb[36].mxu0 %vm285_vm0, %v2978_v24 }
0x1e56   :  { %6364 = vmatpush3.bf16.msra.mxu0 %v7727_v44  ;;  %5997 = vmatprep.mubr.msk.f32.mxu0 %vm7074_vm6, %v7075_v51 }
0x1e57   :  { %6365 = vmatprep.subr.bf16.mxu0 %v7073_v45 }
0x1e5a   :  { %6367 = vmatpush3.bf16.msra.mxu0 %v7734_v50 }
0x1e5b   :  { %6374 = vmatprep.subr.bf16.mxu0 %v7073_v45 }
0x1f28   :  { %v3047_v25 = vpop.f32.mrb[36].mxu0 }
0x1f29   :  { %v3052_v43 = vrot.slane %v3047_v25, 2  ;;  %v5977_v27 = vpop.f32.mrb[37].mxu0 }
0x1f2b   :  { %v3054_v48 = vadd.f32 %v3052_v43, %v7771_v46 }
0x1f2d   :  { %6744 = vtanh.f32 %v3054_v48  ;;  %v5389_v29 = vmul.f32 -1.442695, %v3054_v48 }
0x1f2f   :  { %6746 = vpow2.f32 %v5389_v29 }
0x1f37   :  { %v6745_v28 = vpop.eup %6744 }
0x1f38   :  { %3067 = vrot.lane.b32.xlu0 %v6745_v28, %s7076_s3 }
0x1f39   :  { %v6747_v30 = vpop.eup %6746 }
0x1f3a   :  { %v3058_v53 = vadd.f32 1.0, %v6747_v30 }
0x1f3c   :  { %6748 = vrcp.f32 %v3058_v53 }
0x1f46   :  { %v6749_v31 = vpop.eup %6748 }
0x1f47   :  { %v3065_v38 = vmul.f32 %v6749_v31, %v3063_v35 }
0x1faa   :  { %v3068_v32 = vpop.permute.xlu0 %3067 }
0x1fab   :  { %v3070_v33 = vmul.f32 %v6749_v31, %v3068_v32 }
0x1fad   :  { %3072 = vrot.lane.b32.xlu1 %v3070_v33, %s7076_s3 }
0x201f   :  { %v3073_v39 = vpop.permute.xlu1 %3072 }
0x2020   :  { %v3075_v40 = vadd.f32 %v3073_v39, %v3065_v38 }
0x2022   :  { %6750 = vtanh.f32 %v3075_v40  ;;  %v3167_v7 = vrot.slane %v3075_v40, 6 }
0x202c   :  { %v6751_v46 = vpop.eup %6750 }
0x202d   :  { %3078 = vrot.lane.b32.xlu0 %v6751_v46, %s7076_s3 }
0x209f   :  { %v3079_v42 = vpop.permute.xlu0 %3078 }
0x20a0   :  { %v3081_v47 = vmul.f32 %v6749_v31, %v3079_v42 }
0x20a2   :  { %v3083_v52 = vrot.slane %v3081_v47, 6  ;;  %v7829_v54 = vsel %vm2655_vm9, %v3507_v22, %v3081_v47 }
0x20a4   :  { %3084 = vrot.lane.b32.xlu1 %v3083_v52, %s7077_s8  ;;  %v3531_v56 = vsel %vm2651_vm7, %v3083_v52, %v3522_v49 }
0x20a5   :  { %v7835_v57 = vsel %vm2653_vm8, %v3531_v56, %v3524_v55 }
0x2116   :  { %v3085_v60 = vpop.permute.xlu1 %3084 }
0x2117   :  { %5987 = vmatmul.mubr.msk.f32.vlgmr.msra.gmra.mrb[28].mxu1 %vm285_vm0, %v3085_v60 }
0x2118   :  { %6370 = vmatpush3.bf16.msra.mxu1 %v7727_v44  ;;  %6008 = vmatprep.mubr.msk.f32.mxu1 %vm7074_vm6, %v7075_v51 }
0x2119   :  { %6371 = vmatprep.subr.bf16.mxu1 %v7073_v45 }
0x211c   :  { %6373 = vmatpush3.bf16.msra.mxu1 %v7734_v50 }
0x21ea   :  { %v3154_v61 = vpop.f32.mrb[28].mxu1 }
0x21eb   :  { %v3158_v62 = vadd.f32 %v3154_v61, %v7777_v36  ;;  %v5988_v59 = vpop.f32.mrb[29].mxu1 }
0x21ed   :  { %6752 = vtanh.f32 %v3158_v62  ;;  %v5391_v0 = vmul.f32 -1.442695, %v3158_v62 }
0x21ef   :  { %6754 = vpow2.f32 %v5391_v0 }
0x21f7   :  { %v6753_v63 = vpop.eup %6752 }
0x21f8   :  { %3171 = vrot.lane.b32.xlu0 %v6753_v63, %s7076_s3 }
0x21f9   :  { %v6755_v1 = vpop.eup %6754 }
0x21fa   :  { %v3162_v2 = vadd.f32 1.0, %v6755_v1 }
0x21fc   :  { %6756 = vrcp.f32 %v3162_v2 }
0x2206   :  { %v6757_v4 = vpop.eup %6756 }
0x2207   :  { %v3169_v3 = vmul.f32 %v6757_v4, %v3167_v7 }
0x226a   :  { %v3172_v5 = vpop.permute.xlu0 %3171 }
0x226b   :  { %v3174_v6 = vmul.f32 %v6757_v4, %v3172_v5 }
0x226d   :  { %3176 = vrot.lane.b32.xlu1 %v3174_v6, %s7076_s3 }
0x22df   :  { %v3177_v10 = vpop.permute.xlu1 %3176 }
0x22e0   :  { %v3179_v11 = vadd.f32 %v3177_v10, %v3169_v3 }
0x22e2   :  { %6758 = vtanh.f32 %v3179_v11 }
0x22ec   :  { %v6759_v12 = vpop.eup %6758 }
0x22ed   :  { %3182 = vrot.lane.b32.xlu0 %v6759_v12, %s7076_s3 }
0x235f   :  { %v3183_v13 = vpop.permute.xlu0 %3182 }
0x2360   :  { %v7847_v14 = vmul.f32 %v6757_v4, %v3183_v13 }
0x2362   :  { %3187 = vrot.lane.b32.xlu1 %v7847_v14, %s7077_s8 }
0x23d4   :  { %v3188_v23 = vpop.permute.xlu1 %3187 }
0x23d5   :  { %5998 = vmatmul.mubr.msk.f32.vlgmr.msra.gmra.mrb[38].mxu0 %vm285_vm0, %v3188_v23 }
0x23d6   :  { %6376 = vmatpush3.bf16.msra.mxu0 %v7727_v44  ;;  %6019 = vmatprep.mubr.msk.f32.mxu0 %vm7074_vm6, %v7075_v51 }
0x23d7   :  { %6377 = vmatprep.subr.bf16.mxu0 %v7073_v45 }
0x23da   :  { %6379 = vmatpush3.bf16.msra.mxu0 %v7734_v50  ;;  %v3273_v50 = vrot.slane %v3179_v11, 6 }
0x23db   :  { %6388 = vmatprep.subr.bf16.mxu0 %v7073_v45 }
0x24a8   :  { %v3257_v15 = vpop.f32.mrb[38].mxu0 }
0x24a9   :  { %v3262_v26 = vrot.slane %v3257_v15, 6  ;;  %v5999_v16 = vpop.f32.mrb[39].mxu0 }
0x24ab   :  { %v3264_v17 = vadd.f32 %v3262_v26, %v7777_v36 }
0x24ad   :  { %6760 = vtanh.f32 %v3264_v17  ;;  %v5393_v20 = vmul.f32 -1.442695, %v3264_v17  ;;  %v3556_v17 = vld [vmem:[%s8450_s14] sm:$0xff] }
0x24af   :  { %6762 = vpow2.f32 %v5393_v20 }
0x24b7   :  { %v6761_v18 = vpop.eup %6760 }
0x24b8   :  { %3277 = vrot.lane.b32.xlu0 %v6761_v18, %s7076_s3  ;;  %v3557_v18 = vld [vmem:[%s8450_s14 + $0x8] sm:$0xff] }
0x24b9   :  { %v6763_v44 = vpop.eup %6762  ;;  %v6380_v20 = vpack.c.bf16 %v3557_v18, %v3556_v17 }
0x24ba   :  { %v3268_v21 = vadd.f32 1.0, %v6763_v44  ;;  %v3558_v44 = vld [vmem:[%s8450_s14 + $0x10] sm:$0xff] }
0x24bb   :  { %6381 = vmatprep.subr.bf16.mxu1 %v6380_v20 }
0x24bc   :  { %6764 = vrcp.f32 %v3268_v21  ;;  %v3559_v21 = vld [vmem:[%s8450_s14 + $0x18] sm:$0xff] }
0x24c6   :  { %v6765_v34 = vpop.eup %6764 }
0x24c7   :  { %v3275_v22 = vmul.f32 %v6765_v34, %v3273_v50 }
0x252a   :  { %v3278_v41 = vpop.permute.xlu0 %3277 }
0x252b   :  { %v3280_v37 = vmul.f32 %v6765_v34, %v3278_v41  ;;  %v3553_v41 = vld [vmem:[%s8451_s19 + $0x8] sm:$0xff] }
0x252d   :  { %3282 = vrot.lane.b32.xlu1 %v3280_v37, %s7076_s3 }
0x259f   :  { %v3283_v24 = vpop.permute.xlu1 %3282 }
0x25a0   :  { %v3285_v25 = vadd.f32 %v3283_v24, %v3275_v22  ;;  %v3554_v22 = vld [vmem:[%s8451_s19 + $0x10] sm:$0xff]  ;;  %v3555_v24 = vld [vmem:[%s8451_s19 + $0x18] sm:$0xff] }
0x25a2   :  { %6766 = vtanh.f32 %v3285_v25  ;;  %v3380_v47 = vrot.slane %v3285_v25, 6 }
0x25ac   :  { %v6767_v43 = vpop.eup %6766 }
0x25ad   :  { %3288 = vrot.lane.b32.xlu0 %v6767_v43, %s7076_s3  ;;  %v7897_v43 = vpack.c.bf16 %v3555_v24, %v3554_v22 }
0x261f   :  { %v3289_v27 = vpop.permute.xlu0 %3288 }
0x2620   :  { %v7862_v48 = vmul.f32 %v6765_v34, %v3289_v27  ;;  %v3552_v34 = vld [vmem:[%s8451_s19] sm:$0xff] }
0x2621   :  { %v7891_v37 = vpack.c.bf16 %v3553_v41, %v3552_v34 }
0x2622   :  { %v3293_v28 = vrot.slane %v7862_v48, 2  ;;  %v3509_v62 = vsel %vm2651_vm7, %v7847_v14, %v7862_v48 }
0x2624   :  { %3294 = vrot.lane.b32.xlu1 %v3293_v28, %s7077_s8 }
0x2696   :  { %v3295_v29 = vpop.permute.xlu1 %3294 }
0x2697   :  { %6009 = vmatmul.mubr.msk.f32.vlgmr.msra.gmra.mrb[30].mxu1 %vm285_vm0, %v3295_v29 }
0x2698   :  { %6383 = vmatpush3.bf16.msra.mxu1 %v6380_v20 }
0x276a   :  { %v3364_v30 = vpop.f32.mrb[30].mxu1 }
0x276b   :  { %v3369_v53 = vrot.slane %v3364_v30, 4  ;;  %v6010_v31 = vpop.f32.mrb[31].mxu1  ;;  %v3517_v30 = vrot.slane %v7862_v48, 6  ;;  %v3526_v48 = vrot.slane %v7782_v58, 2 }
0x276d   :  { %v3371_v32 = vadd.f32 %v3369_v53, %v7777_v36  ;;  %v3519_v53 = vrot.slane %v7847_v14, 2  ;;  %v3533_v14 = vsel %vm2655_vm9, %v7835_v57, %v3526_v48 }
0x276f   :  { %6768 = vtanh.f32 %v3371_v32  ;;  %v5395_v35 = vmul.f32 -1.442695, %v3371_v32 }
0x2771   :  { %6770 = vpow2.f32 %v5395_v35 }
0x2779   :  { %v6769_v33 = vpop.eup %6768 }
0x277a   :  { %3384 = vrot.lane.b32.xlu0 %v6769_v33, %s7076_s3 }
0x277b   :  { %v6771_v38 = vpop.eup %6770 }
0x277c   :  { %v3375_v39 = vadd.f32 1.0, %v6771_v38 }
0x277e   :  { %6772 = vrcp.f32 %v3375_v39 }
0x2788   :  { %v6773_v40 = vpop.eup %6772 }
0x2789   :  { %v3382_v49 = vmul.f32 %v6773_v40, %v3380_v47  ;;  %v5398_v47 = vld [vmem:[#allocation8] ss:$0 sm:$0xff] }
0x27ec   :  { %v3385_v46 = vpop.permute.xlu0 %3384 }
0x27ed   :  { %v3387_v42 = vmul.f32 %v6773_v40, %v3385_v46 }
0x27ef   :  { %3389 = vrot.lane.b32.xlu1 %v3387_v42, %s7076_s3 }
0x2861   :  { %v3390_v52 = vpop.permute.xlu1 %3389 }
0x2862   :  { %v3392_v55 = vadd.f32 %v3390_v52, %v3382_v49 }
0x2864   :  { %6774 = vtanh.f32 %v3392_v55 }
0x286e   :  { %v6775_v56 = vpop.eup %6774 }
0x286f   :  { %3395 = vrot.lane.b32.xlu0 %v6775_v56, %s7076_s3 }
0x28e1   :  { %v3396_v60 = vpop.permute.xlu0 %3395 }
0x28e2   :  { %v3398_v61 = vmul.f32 %v6773_v40, %v3396_v60 }
0x28e4   :  { %v3400_v59 = vrot.slane %v3398_v61, 4  ;;  %v3510_v63 = vsel %vm2653_vm8, %v3509_v62, %v3398_v61  ;;  %v3515_v27 = vrot.slane %v3398_v61, 2 }
0x28e6   :  { %3401 = vrot.lane.b32.xlu1 %v3400_v59, %s7077_s8 }
0x2958   :  { %v3402_v0 = vpop.permute.xlu1 %3401 }
0x2959   :  { %6020 = vmatmul.mubr.msk.f32.vlgmr.msra.gmra.mrb[40].mxu0 %vm285_vm0, %v3402_v0 }
0x295a   :  { %6041 = vmatprep.mubr.msk.f32.mxu0 %vm7074_vm6, %v7075_v51  ;;  %6390 = vmatpush3.bf16.msra.mxu0 %v7891_v37 }
0x295b   :  { %6391 = vmatprep.subr.bf16.mxu0 %v7073_v45 }
0x295e   :  { %6393 = vmatpush3.bf16.msra.mxu0 %v7897_v43 }
0x295f   :  { %6400 = vmatprep.subr.bf16.mxu0 %v7073_v45 }
0x2961   :  { %6042 = vmatmul.mubr.f32.vlgmr.msra.gmra.mrb[42].mxu0 %v7075_v51 }
0x2962   :  { %6402 = vmatpush3.bf16.msra.mxu0 %v7891_v37  ;;  %6063 = vmatprep.mubr.msk.f32.mxu0 %vm7074_vm6, %v7075_v51 }
0x2963   :  { %6403 = vmatprep.subr.bf16.mxu0 %v7073_v45 }
0x2966   :  { %6405 = vmatpush3.bf16.msra.mxu0 %v7897_v43 }
0x2967   :  { %6412 = vmatprep.subr.bf16.mxu0 %v7073_v45 }
0x2a2c   :  { %v3471_v1 = vpop.f32.mrb[40].mxu0 }
0x2a2d   :  { %v3476_v2 = vrot.slane %v3471_v1, 2  ;;  %v6021_v4 = vpop.f32.mrb[41].mxu0 }
0x2a2f   :  { %v3478_v5 = vadd.f32 %v3476_v2, %v7777_v36  ;;  %v3487_v36 = vrot.slane %v3392_v55, 6 }
0x2a31   :  { %6776 = vtanh.f32 %v3478_v5  ;;  %v5397_v7 = vmul.f32 -1.442695, %v3478_v5 }
0x2a33   :  { %6778 = vpow2.f32 %v5397_v7 }
0x2a34   :  { %v3732_v57 = vpop.f32.mrb[42].mxu0 }
0x2a35   :  { %v6043_v42 = vpop.f32.mrb[43].mxu0 }
0x2a3b   :  { %v6777_v6 = vpop.eup %6776 }
0x2a3c   :  { %3491 = vrot.lane.b32.xlu0 %v6777_v6, %s7076_s3 }
0x2a3d   :  { %v6779_v3 = vpop.eup %6778 }
0x2a3e   :  { %v3482_v10 = vadd.f32 1.0, %v6779_v3 }
0x2a40   :  { %6780 = vrcp.f32 %v3482_v10 }
0x2a4a   :  { %v6781_v11 = vpop.eup %6780 }
0x2a4b   :  { %v3489_v23 = vmul.f32 %v6781_v11, %v3487_v36 }
0x2aae   :  { %v3492_v12 = vpop.permute.xlu0 %3491 }
0x2aaf   :  { %v3494_v13 = vmul.f32 %v6781_v11, %v3492_v12 }
0x2ab1   :  { %3496 = vrot.lane.b32.xlu1 %v3494_v13, %s7076_s3 }
0x2ab5   :  { %3536 = vrot.lane.b32.xlu1 %v7829_v54, %s7077_s8  ;;  %v6384_v54 = vpack.c.bf16 %v3559_v21, %v3558_v44 }
0x2ab7   :  { %6385 = vmatprep.subr.bf16.mxu1 %v6384_v54 }
0x2ab8   :  { %6387 = vmatpush3.bf16.msra.mxu1 %v6384_v54 }
0x2ab9   :  { %6394 = vmatprep.subr.bf16.mxu1 %v7073_v45 }
0x2b23   :  { %v3497_v15 = vpop.permute.xlu1 %3496 }
0x2b24   :  { %v3499_v26 = vadd.f32 %v3497_v15, %v3489_v23 }
0x2b26   :  { %6782 = vtanh.f32 %v3499_v26 }
0x2b27   :  { %v3537_v35 = vpop.permute.xlu1 %3536 }
0x2b30   :  { %v6783_v16 = vpop.eup %6782 }
0x2b31   :  { %3502 = vrot.lane.b32.xlu0 %v6783_v16, %s7076_s3 }
0x2ba3   :  { %v3503_v50 = vpop.permute.xlu0 %3502 }
0x2ba4   :  { %v3505_v25 = vmul.f32 %v6781_v11, %v3503_v50 }
0x2ba6   :  { %v3513_v28 = vrot.slane %v3505_v25, 6  ;;  %v3511_v29 = vsel %vm2655_vm9, %v3510_v63, %v3505_v25 }
0x2ba7   :  { %3538 = vrot.lane.b32.xlu1 %v3511_v29, %s7077_s8 }
0x2ba8   :  { %v3528_v31 = vsel %vm2651_vm7, %v3513_v28, %v3515_v27 }
0x2ba9   :  { %v3529_v32 = vsel %vm2653_vm8, %v3528_v31, %v3517_v30 }
0x2baa   :  { %v3530_v33 = vsel %vm2655_vm9, %v3529_v32, %v3519_v53 }
0x2bab   :  { %3544 = vrot.lane.b32.xlu0 %v3530_v33, %s7077_s8 }
0x2baf   :  { %3546 = vrot.lane.b32.xlu0 %v3533_v14, %s7077_s8 }
0x2c19   :  { %v3539_v39 = vpop.permute.xlu1 %3538 }
0x2c1d   :  { %v3545_v38 = vpop.permute.xlu0 %3544 }
0x2c1e   :  { %v3550_v58 = vsel %vm1062_vm4, %v3537_v35, %v3545_v38 }
0x2c1f   :  { %6030 = vmatprep.mubr.msk.f32.mxu1 %vm285_vm0, %v3550_v58 }
0x2c21   :  { %v3547_v40 = vpop.permute.xlu0 %3546 }
0x2c22   :  { %v3551_v46 = vsel %vm1062_vm4, %v3539_v39, %v3547_v40 }
0x2c23   :  { %6031 = vmatmul.mubr.msk.f32.vlgmr.msra.gmra.mrb[32].mxu1 %vm285_vm0, %v3551_v46 }
0x2c24   :  { %6396 = vmatpush3.bf16.msra.mxu1 %v7891_v37  ;;  %6052 = vmatprep.mubr.msk.f32.mxu1 %vm7074_vm6, %v7075_v51 }
0x2c25   :  { %6397 = vmatprep.subr.bf16.mxu1 %v7073_v45 }
0x2c28   :  { %6399 = vmatpush3.bf16.msra.mxu1 %v7897_v43 }
0x2c29   :  { %6406 = vmatprep.subr.bf16.mxu1 %v7073_v45 }
0x2cf6   :  { %v6032_v49 = vpop.f32.mrb[32].mxu1 }
0x2cf7   :  { %v3645_v52 = vadd.f32 %v6032_v49, %v5398_v47  ;;  %v3639_v55 = vpop.f32.mrb[33].mxu1 }
0x2cf8   :  { %v3640_v56 = vadd.f32 %v5398_v47, %v3639_v55 }
0x2cf9   :  { %v3649_v60 = vrot.slane %v3645_v52, 6  ;;  %v3651_v61 = vrot.slane %v3645_v52, 2 }
0x2cfa   :  { %v3654_v62 = vrot.slane %v3640_v56, 6  ;;  %v3656_v59 = vrot.slane %v3640_v56, 2 }
0x2cfb   :  { %v3658_v63 = vsel %vm2651_vm7, %v3649_v60, %v3651_v61 }
0x2cfc   :  { %v3661_v0 = vsel %vm2651_vm7, %v3654_v62, %v3656_v59  ;;  %v3659_v1 = vsel %vm2653_vm8, %v3658_v63, %v3649_v60 }
0x2cfd   :  { %v3660_v2 = vsel %vm2655_vm9, %v3659_v1, %v3651_v61  ;;  %v3662_v4 = vsel %vm2653_vm8, %v3661_v0, %v3654_v62 }
0x2cfe   :  { %v7938_v5 = vsel %vm7761_vm10, %v3640_v56, %v3660_v2  ;;  %v3663_v6 = vsel %vm2655_vm9, %v3662_v4, %v3656_v59 }
0x2cff   :  { %v3736_v7 = vadd.f32 %v3732_v57, %v7938_v5  ;;  %v7944_v3 = vsel %vm7761_vm10, %v3645_v52, %v3663_v6 }
0x2d01   :  { %6784 = vtanh.f32 %v3736_v7  ;;  %v5401_v11 = vmul.f32 -1.442695, %v3736_v7 }
0x2d03   :  { %6786 = vpow2.f32 %v5401_v11 }
0x2d0b   :  { %v6785_v10 = vpop.eup %6784 }
0x2d0c   :  { %3746 = vrot.lane.b32.xlu1 %v6785_v10, %s7076_s3 }
0x2d0d   :  { %v6787_v12 = vpop.eup %6786 }
0x2d0e   :  { %v3740_v13 = vadd.f32 1.0, %v6787_v12 }
0x2d10   :  { %6788 = vrcp.f32 %v3740_v13 }
0x2d1a   :  { %v6789_v36 = vpop.eup %6788 }
0x2d1b   :  { %v3744_v26 = vmul.f32 0.0, %v6789_v36 }
0x2d7e   :  { %v3747_v23 = vpop.permute.xlu1 %3746 }
0x2d7f   :  { %v3749_v15 = vmul.f32 %v6789_v36, %v3747_v23 }
0x2d81   :  { %3751 = vrot.lane.b32.xlu0 %v3749_v15, %s7076_s3 }
0x2df3   :  { %v3752_v16 = vpop.permute.xlu0 %3751 }
0x2df4   :  { %v3754_v17 = vadd.f32 %v3752_v16, %v3744_v26 }
0x2df6   :  { %6790 = vtanh.f32 %v3754_v17  ;;  %v3848_v30 = vrot.slane %v3754_v17, 6 }
0x2e00   :  { %v6791_v19 = vpop.eup %6790 }
0x2e01   :  { %3757 = vrot.lane.b32.xlu1 %v6791_v19, %s7076_s3 }
0x2e73   :  { %v3758_v18 = vpop.permute.xlu1 %3757 }
0x2e74   :  { %v7949_v20 = vmul.f32 %v6789_v36, %v3758_v18 }
0x2e76   :  { %3762 = vrot.lane.b32.xlu0 %v7949_v20, %s7077_s8 }
0x2ee8   :  { %v3763_v44 = vpop.permute.xlu0 %3762 }
0x2ee9   :  { %6053 = vmatmul.mubr.msk.f32.vlgmr.msra.gmra.mrb[34].mxu1 %vm285_vm0, %v3763_v44 }
0x2eea   :  { %6408 = vmatpush3.bf16.msra.mxu1 %v7891_v37  ;;  %6074 = vmatprep.mubr.msk.f32.mxu1 %vm7074_vm6, %v7075_v51 }
0x2eeb   :  { %6409 = vmatprep.subr.bf16.mxu1 %v7073_v45 }
0x2eee   :  { %6411 = vmatpush3.bf16.msra.mxu1 %v7897_v43 }
0x2eef   :  { %6418 = vmatprep.subr.bf16.mxu1 %v7073_v45 }
0x2fbc   :  { %v3832_v21 = vpop.f32.mrb[34].mxu1 }
0x2fbd   :  { %v3837_v54 = vrot.slane %v3832_v21, 6  ;;  %v6054_v34 = vpop.f32.mrb[35].mxu1 }
0x2fbf   :  { %v3839_v41 = vadd.f32 %v3837_v54, %v7938_v5 }
0x2fc1   :  { %6792 = vtanh.f32 %v3839_v41  ;;  %v5403_v22 = vmul.f32 -1.442695, %v3839_v41 }
0x2fc3   :  { %6794 = vpow2.f32 %v5403_v22 }
0x2fcb   :  { %v6793_v50 = vpop.eup %6792 }
0x2fcc   :  { %3852 = vrot.lane.b32.xlu1 %v6793_v50, %s7076_s3 }
0x2fcd   :  { %v6795_v24 = vpop.eup %6794 }
0x2fce   :  { %v3843_v25 = vadd.f32 1.0, %v6795_v24 }
0x2fd0   :  { %6796 = vrcp.f32 %v3843_v25 }
0x2fda   :  { %v6797_v27 = vpop.eup %6796 }
0x2fdb   :  { %v3850_v53 = vmul.f32 %v6797_v27, %v3848_v30 }
0x303e   :  { %v3853_v28 = vpop.permute.xlu1 %3852 }
0x303f   :  { %v3855_v29 = vmul.f32 %v6797_v27, %v3853_v28 }
0x3041   :  { %3857 = vrot.lane.b32.xlu0 %v3855_v29, %s7076_s3 }
0x30b3   :  { %v3858_v31 = vpop.permute.xlu0 %3857 }
0x30b4   :  { %v3860_v32 = vadd.f32 %v3858_v31, %v3850_v53 }
0x30b6   :  { %6798 = vtanh.f32 %v3860_v32  ;;  %v3955_v60 = vrot.slane %v3860_v32, 6 }
0x30c0   :  { %v6799_v33 = vpop.eup %6798 }
0x30c1   :  { %3863 = vrot.lane.b32.xlu1 %v6799_v33, %s7076_s3 }
0x3133   :  { %v3864_v48 = vpop.permute.xlu1 %3863 }
0x3134   :  { %v7964_v14 = vmul.f32 %v6797_v27, %v3864_v48 }
0x3136   :  { %v3868_v35 = vrot.slane %v7964_v14, 2  ;;  %v4505_v2 = vsel %vm2651_vm7, %v7949_v20, %v7964_v14  ;;  %v4523_v25 = vrot.slane %v7964_v14, 6 }
0x3138   :  { %3869 = vrot.lane.b32.xlu0 %v3868_v35, %s7077_s8 }
0x31aa   :  { %v3870_v38 = vpop.permute.xlu0 %3869 }
0x31ab   :  { %6064 = vmatmul.mubr.msk.f32.vlgmr.msra.gmra.mrb[44].mxu0 %vm285_vm0, %v3870_v38 }
0x31ac   :  { %6414 = vmatpush3.bf16.msra.mxu0 %v7891_v37  ;;  %6085 = vmatprep.mubr.msk.f32.mxu0 %vm7074_vm6, %v7075_v51 }
0x31ad   :  { %6415 = vmatprep.subr.bf16.mxu0 %v7073_v45 }
0x31b0   :  { %6417 = vmatpush3.bf16.msra.mxu0 %v7897_v43 }
0x31b1   :  { %6424 = vmatprep.subr.bf16.mxu0 %v7073_v45 }
0x327e   :  { %v3939_v58 = vpop.f32.mrb[44].mxu0 }
0x327f   :  { %v3944_v39 = vrot.slane %v3939_v58, 4  ;;  %v6065_v40 = vpop.f32.mrb[45].mxu0 }
0x3281   :  { %v3946_v46 = vadd.f32 %v3944_v39, %v7938_v5 }
0x3283   :  { %6800 = vtanh.f32 %v3946_v46  ;;  %v5405_v42 = vmul.f32 -1.442695, %v3946_v46 }
0x3285   :  { %6802 = vpow2.f32 %v5405_v42 }
0x328d   :  { %v6801_v57 = vpop.eup %6800 }
0x328e   :  { %3959 = vrot.lane.b32.xlu1 %v6801_v57, %s7076_s3 }
0x328f   :  { %v6803_v47 = vpop.eup %6802 }
0x3290   :  { %v3950_v49 = vadd.f32 1.0, %v6803_v47 }
0x3292   :  { %6804 = vrcp.f32 %v3950_v49 }
0x329c   :  { %v6805_v52 = vpop.eup %6804 }
0x329d   :  { %v3957_v61 = vmul.f32 %v6805_v52, %v3955_v60 }
0x3300   :  { %v3960_v55 = vpop.permute.xlu1 %3959 }
0x3301   :  { %v3962_v56 = vmul.f32 %v6805_v52, %v3960_v55 }
0x3303   :  { %3964 = vrot.lane.b32.xlu0 %v3962_v56, %s7076_s3 }
0x3375   :  { %v3965_v62 = vpop.permute.xlu0 %3964 }
0x3376   :  { %v3967_v59 = vadd.f32 %v3965_v62, %v3957_v61 }
0x3378   :  { %6806 = vtanh.f32 %v3967_v59  ;;  %v4062_v18 = vrot.slane %v3967_v59, 6 }
0x3382   :  { %v6807_v63 = vpop.eup %6806 }
0x3383   :  { %3970 = vrot.lane.b32.xlu1 %v6807_v63, %s7076_s3 }
0x33f5   :  { %v3971_v0 = vpop.permute.xlu1 %3970 }
0x33f6   :  { %v3973_v1 = vmul.f32 %v6805_v52, %v3971_v0 }
0x33f8   :  { %v3975_v4 = vrot.slane %v3973_v1, 4  ;;  %v4506_v6 = vsel %vm2653_vm8, %v4505_v2, %v3973_v1  ;;  %v4521_v50 = vrot.slane %v3973_v1, 2 }
0x33fa   :  { %3976 = vrot.lane.b32.xlu0 %v3975_v4, %s7077_s8 }
0x346c   :  { %v3977_v7 = vpop.permute.xlu0 %3976 }
0x346d   :  { %6075 = vmatmul.mubr.msk.f32.vlgmr.msra.gmra.mrb[36].mxu1 %vm285_vm0, %v3977_v7 }
0x346e   :  { %6420 = vmatpush3.bf16.msra.mxu1 %v7891_v37  ;;  %6096 = vmatprep.mubr.msk.f32.mxu1 %vm7074_vm6, %v7075_v51 }
0x346f   :  { %6421 = vmatprep.subr.bf16.mxu1 %v7073_v45 }
0x3472   :  { %6423 = vmatpush3.bf16.msra.mxu1 %v7897_v43 }
0x3473   :  { %6430 = vmatprep.subr.bf16.mxu1 %v7073_v45 }
0x3540   :  { %v4046_v10 = vpop.f32.mrb[36].mxu1 }
0x3541   :  { %v4051_v11 = vrot.slane %v4046_v10, 2  ;;  %v6076_v12 = vpop.f32.mrb[37].mxu1 }
0x3543   :  { %v4053_v13 = vadd.f32 %v4051_v11, %v7938_v5 }
0x3545   :  { %6808 = vtanh.f32 %v4053_v13  ;;  %v5407_v23 = vmul.f32 -1.442695, %v4053_v13 }
0x3547   :  { %6810 = vpow2.f32 %v5407_v23 }
0x354f   :  { %v6809_v36 = vpop.eup %6808 }
0x3550   :  { %4066 = vrot.lane.b32.xlu1 %v6809_v36, %s7076_s3 }
0x3551   :  { %v6811_v15 = vpop.eup %6810 }
0x3552   :  { %v4057_v26 = vadd.f32 1.0, %v6811_v15 }
0x3554   :  { %6812 = vrcp.f32 %v4057_v26 }
0x355e   :  { %v6813_v16 = vpop.eup %6812 }
0x355f   :  { %v4064_v44 = vmul.f32 %v6813_v16, %v4062_v18 }
0x35c2   :  { %v4067_v17 = vpop.permute.xlu1 %4066 }
0x35c3   :  { %v4069_v19 = vmul.f32 %v6813_v16, %v4067_v17 }
0x35c5   :  { %4071 = vrot.lane.b32.xlu0 %v4069_v19, %s7076_s3 }
0x3637   :  { %v4072_v21 = vpop.permute.xlu0 %4071 }
0x3638   :  { %v4074_v54 = vadd.f32 %v4072_v21, %v4064_v44 }
0x363a   :  { %6814 = vtanh.f32 %v4074_v54  ;;  %v4166_v39 = vrot.slane %v4074_v54, 6 }
0x3644   :  { %v6815_v5 = vpop.eup %6814 }
0x3645   :  { %4077 = vrot.lane.b32.xlu1 %v6815_v5, %s7076_s3 }
0x36b7   :  { %v4078_v34 = vpop.permute.xlu1 %4077 }
0x36b8   :  { %v4080_v41 = vmul.f32 %v6813_v16, %v4078_v34 }
0x36ba   :  { %v4082_v22 = vrot.slane %v4080_v41, 6  ;;  %v7996_v24 = vsel %vm2655_vm9, %v4506_v6, %v4080_v41 }
0x36bc   :  { %4083 = vrot.lane.b32.xlu0 %v4082_v22, %s7077_s8  ;;  %v4530_v27 = vsel %vm2651_vm7, %v4082_v22, %v4521_v50 }
0x36bd   :  { %v8002_v28 = vsel %vm2653_vm8, %v4530_v27, %v4523_v25 }
0x372e   :  { %v4084_v29 = vpop.permute.xlu0 %4083 }
0x372f   :  { %6086 = vmatmul.mubr.msk.f32.vlgmr.msra.gmra.mrb[46].mxu0 %vm285_vm0, %v4084_v29 }
0x3730   :  { %6426 = vmatpush3.bf16.msra.mxu0 %v7891_v37  ;;  %6107 = vmatprep.mubr.msk.f32.mxu0 %vm7074_vm6, %v7075_v51 }
0x3731   :  { %6427 = vmatprep.subr.bf16.mxu0 %v7073_v45 }
0x3734   :  { %6429 = vmatpush3.bf16.msra.mxu0 %v7897_v43 }
0x3802   :  { %v4153_v30 = vpop.f32.mrb[46].mxu0 }
0x3803   :  { %v4157_v53 = vadd.f32 %v4153_v30, %v7944_v3  ;;  %v6087_v31 = vpop.f32.mrb[47].mxu0 }
0x3805   :  { %6816 = vtanh.f32 %v4157_v53  ;;  %v5409_v33 = vmul.f32 -1.442695, %v4157_v53 }
0x3807   :  { %6818 = vpow2.f32 %v5409_v33 }
0x380f   :  { %v6817_v32 = vpop.eup %6816 }
0x3810   :  { %4170 = vrot.lane.b32.xlu1 %v6817_v32, %s7076_s3 }
0x3811   :  { %v6819_v48 = vpop.eup %6818 }
0x3812   :  { %v4161_v14 = vadd.f32 1.0, %v6819_v48 }
0x3814   :  { %6820 = vrcp.f32 %v4161_v14 }
0x381e   :  { %v6821_v35 = vpop.eup %6820 }
0x381f   :  { %v4168_v40 = vmul.f32 %v6821_v35, %v4166_v39 }
0x3882   :  { %v4171_v38 = vpop.permute.xlu1 %4170 }
0x3883   :  { %v4173_v58 = vmul.f32 %v6821_v35, %v4171_v38 }
0x3885   :  { %4175 = vrot.lane.b32.xlu0 %v4173_v58, %s7076_s3 }
0x38f7   :  { %v4176_v46 = vpop.permute.xlu0 %4175 }
0x38f8   :  { %v4178_v57 = vadd.f32 %v4176_v46, %v4168_v40 }
0x38fa   :  { %6822 = vtanh.f32 %v4178_v57 }
0x3904   :  { %v6823_v42 = vpop.eup %6822 }
0x3905   :  { %4181 = vrot.lane.b32.xlu1 %v6823_v42, %s7076_s3 }
0x3977   :  { %v4182_v47 = vpop.permute.xlu1 %4181 }
0x3978   :  { %v8014_v49 = vmul.f32 %v6821_v35, %v4182_v47 }
0x397a   :  { %4186 = vrot.lane.b32.xlu0 %v8014_v49, %s7077_s8 }
0x39ec   :  { %v4187_v52 = vpop.permute.xlu0 %4186 }
0x39ed   :  { %6097 = vmatmul.mubr.msk.f32.vlgmr.msra.gmra.mrb[38].mxu1 %vm285_vm0, %v4187_v52 }
0x39ee   :  { %6432 = vmatpush3.bf16.msra.mxu1 %v7891_v37  ;;  %6118 = vmatprep.mubr.msk.f32.mxu1 %vm7074_vm6, %v7075_v51 }
0x39ef   :  { %6433 = vmatprep.subr.bf16.mxu1 %v7073_v45  ;;  %v4272_v45 = vrot.slane %v4178_v57, 6 }
0x39f2   :  { %6435 = vmatpush3.bf16.msra.mxu1 %v7897_v43 }
0x3ac0   :  { %v4256_v55 = vpop.f32.mrb[38].mxu1 }
0x3ac1   :  { %v4261_v56 = vrot.slane %v4256_v55, 6  ;;  %v6098_v60 = vpop.f32.mrb[39].mxu1  ;;  %v4551_v55 = vld [vmem:[%s8452_s30] sm:$0xff] }
0x3ac3   :  { %v4263_v61 = vadd.f32 %v4261_v56, %v7944_v3  ;;  %v4552_v56 = vld [vmem:[%s8452_s30 + $0x8] sm:$0xff] }
0x3ac4   :  { %v6436_v60 = vpack.c.bf16 %v4552_v56, %v4551_v55 }
0x3ac5   :  { %6824 = vtanh.f32 %v4263_v61  ;;  %v5411_v59 = vmul.f32 -1.442695, %v4263_v61  ;;  %v4553_v61 = vld [vmem:[%s8452_s30 + $0x10] sm:$0xff] }
0x3ac6   :  { %6437 = vmatprep.subr.bf16.mxu0 %v6436_v60 }
0x3ac7   :  { %6826 = vpow2.f32 %v5411_v59 }
0x3acf   :  { %v6825_v62 = vpop.eup %6824 }
0x3ad0   :  { %4276 = vrot.lane.b32.xlu1 %v6825_v62, %s7076_s3  ;;  %v4554_v62 = vld [vmem:[%s8452_s30 + $0x18] sm:$0xff] }
0x3ad1   :  { %v6827_v63 = vpop.eup %6826  ;;  %v6440_v59 = vpack.c.bf16 %v4554_v62, %v4553_v61 }
0x3ad2   :  { %v4267_v37 = vadd.f32 1.0, %v6827_v63 }
0x3ad4   :  { %6828 = vrcp.f32 %v4267_v37 }
0x3ade   :  { %v6829_v0 = vpop.eup %6828 }
0x3adf   :  { %v4274_v43 = vmul.f32 %v6829_v0, %v4272_v45  ;;  %v4518_v45 = vrot.slane %v8014_v49, 2 }
0x3b42   :  { %v4277_v51 = vpop.permute.xlu1 %4276 }
0x3b43   :  { %v4279_v1 = vmul.f32 %v6829_v0, %v4277_v51 }
0x3b45   :  { %4281 = vrot.lane.b32.xlu0 %v4279_v1, %s7076_s3 }
0x3bb7   :  { %v4282_v2 = vpop.permute.xlu0 %4281 }
0x3bb8   :  { %v4284_v4 = vadd.f32 %v4282_v2, %v4274_v43 }
0x3bba   :  { %6830 = vtanh.f32 %v4284_v4  ;;  %v4379_v54 = vrot.slane %v4284_v4, 6 }
0x3bc4   :  { %v6831_v6 = vpop.eup %6830 }
0x3bc5   :  { %4287 = vrot.lane.b32.xlu1 %v6831_v6, %s7076_s3  ;;  %v4525_v6 = vrot.slane %v7949_v20, 2  ;;  %v7078_v20 = vmov 1  }
0x3bc6   :  { %6581 = vset.pattern.permute.xlu1 %v7078_v20 }
0x3c37   :  { %v4288_v7 = vpop.permute.xlu1 %4287 }
0x3c38   :  { %v8028_v10 = vmul.f32 %v6829_v0, %v4288_v7  ;;  %v4532_v7 = vsel %vm2655_vm9, %v8002_v28, %v4525_v6  ;;  %v7079_v28 = vmov 0  }
0x3c39   :  { %6580 = vset.pattern.permute.xlu0 %v7079_v28 }
0x3c3a   :  { %v4292_v11 = vrot.slane %v8028_v10, 2  ;;  %v4508_v27 = vsel %vm2651_vm7, %v8014_v49, %v8028_v10  ;;  %v4516_v1 = vrot.slane %v8028_v10, 6 }
0x3c3c   :  { %4293 = vrot.lane.b32.xlu0 %v4292_v11, %s7077_s8 }
0x3cae   :  { %v4294_v12 = vpop.permute.xlu0 %4293 }
0x3caf   :  { %6108 = vmatmul.mubr.msk.f32.vlgmr.msra.gmra.mrb[48].mxu0 %vm285_vm0, %v4294_v12 }
0x3cb0   :  { %6439 = vmatpush3.bf16.msra.mxu0 %v6436_v60 }
0x3cb1   :  { %6441 = vmatprep.subr.bf16.mxu0 %v6440_v59 }
0x3cb4   :  { %6443 = vmatpush3.bf16.msra.mxu0 %v6440_v59 }
0x3d82   :  { %v4363_v13 = vpop.f32.mrb[48].mxu0 }
0x3d83   :  { %v4368_v36 = vrot.slane %v4363_v13, 4  ;;  %v6109_v23 = vpop.f32.mrb[49].mxu0 }
0x3d84   :  { %v5416_v23 = vld [vmem:[%s8453_s4] ss:$0 sm:$0xff] }
0x3d85   :  { %v4370_v15 = vadd.f32 %v4368_v36, %v7944_v3 }
0x3d87   :  { %6832 = vtanh.f32 %v4370_v15  ;;  %v5413_v16 = vmul.f32 -1.442695, %v4370_v15 }
0x3d89   :  { %6834 = vpow2.f32 %v5413_v16 }
0x3d91   :  { %v6833_v26 = vpop.eup %6832 }
0x3d92   :  { %4383 = vrot.lane.b32.xlu1 %v6833_v26, %s7076_s3 }
0x3d93   :  { %v6835_v17 = vpop.eup %6834 }
0x3d94   :  { %v4374_v19 = vadd.f32 1.0, %v6835_v17  ;;  %v5419_v17 = vld [vmem:[#allocation10] ss:$0 sm:$0xff] }
0x3d96   :  { %6836 = vrcp.f32 %v4374_v19 }
0x3da0   :  { %v6837_v18 = vpop.eup %6836 }
0x3da1   :  { %v4381_v5 = vmul.f32 %v6837_v18, %v4379_v54  ;;  %v8084_v54 = vld [vmem:[%s8454_s2] sm:$0x3] }
0x3da2   :  { %vm4713_vm11 = vcmp.gt.s32.totalorder %v8084_v54, 0 }
0x3e04   :  { %v4384_v44 = vpop.permute.xlu1 %4383 }
0x3e05   :  { %v4386_v21 = vmul.f32 %v6837_v18, %v4384_v44  ;;  %v7080_v44 = vmov 2  }
0x3e07   :  { %4388 = vrot.lane.b32.xlu0 %v4386_v21, %s7076_s3  ;;  %v7081_v21 = vmov 3  }
0x3e79   :  { %v4389_v34 = vpop.permute.xlu0 %4388 }
0x3e7a   :  { %v4391_v41 = vadd.f32 %v4389_v34, %v4381_v5  ;;  %v7082_v5 = vmov 4   ;;  %v8092_v34 = vsel %vm4713_vm11, 1, %v7079_v28 }
0x3e7c   :  { %6838 = vtanh.f32 %v4391_v41 }
0x3e86   :  { %v6839_v50 = vpop.eup %6838 }
0x3e87   :  { %4394 = vrot.lane.b32.xlu1 %v6839_v50, %s7076_s3 }
0x3ef9   :  { %v4395_v22 = vpop.permute.xlu1 %4394 }
0x3efa   :  { %v4397_v25 = vmul.f32 %v6837_v18, %v4395_v22 }
0x3efc   :  { %v4399_v29 = vrot.slane %v4397_v25, 4  ;;  %v4509_v30 = vsel %vm2653_vm8, %v4508_v27, %v4397_v25  ;;  %v4514_v37 = vrot.slane %v4397_v25, 2  ;;  %v4646_v25 = vld [vmem:[%s7326_s24] sm:$0x1f]  ;;  %s7087_s24 = smov [#allocation13]  }
0x3efd   :  { %s5221_s7 = sshll.u32 %s7087_s24, 4  ;;  %s5222_s7 = int_to_ptr.vmem [resolvable:$true] %s5221_s7 }
0x3efe   :  { %4400 = vrot.lane.b32.xlu0 %v4399_v29, %s7077_s8  ;;  %s6980_s10 = scalar_lea.vmem %s5222_s7, 32  ;;  %p6985_p7 = scmp.lt.s32.totalorder %s5222_s7, %s5222_s7 }
0x3eff   :  { %p6981_p6 = scmp.ne.s32.totalorder %s5222_s7, %s6980_s10  ;;  %p6986_p8 = scmp.lt.s32.totalorder %s6980_s10, %s6980_s10 }
0x3f01   :  { %p6987_p9 = por %p6986_p8, %p6985_p7 }
0x3f03   :  { %p6988_p10 = pnand %p6987_p9, %p6981_p6 }
0x3f70   :  { %v4401_v53 = vpop.permute.xlu0 %4400 }
0x3f71   :  { %6119 = vmatmul.mubr.msk.f32.vlgmr.msra.gmra.mrb[40].mxu1 %vm285_vm0, %v4401_v53 }
0x4044   :  { %v4470_v31 = vpop.f32.mrb[40].mxu1 }
0x4045   :  { %v4475_v32 = vrot.slane %v4470_v31, 2  ;;  %v6120_v33 = vpop.f32.mrb[41].mxu1 }
0x4047   :  { %v4477_v48 = vadd.f32 %v4475_v32, %v7944_v3  ;;  %v4486_v3 = vrot.slane %v4391_v41, 6  ;;  %v4661_v41 = vshrl.u32 %v2541_v8, 7 }
0x4049   :  { %6840 = vtanh.f32 %v4477_v48  ;;  %v5415_v35 = vmul.f32 -1.442695, %v4477_v48  ;;  %v4671_v50 = vsub.s32 1, %v4661_v41  ;;  %v4662_v22 = vsub.s32 0, %v4661_v41 }
0x404a   :  { %v4689_v32 = vsub.s32 3, %v4661_v41 }
0x404b   :  { %6842 = vpow2.f32 %v5415_v35  ;;  %v8098_v27 = vrot.slane %v4646_v25, %v4671_v50  ;;  %v8100_v29 = vrot.slane %v4646_v25, %v4662_v22  ;;  %v4698_v35 = vsub.s32 4, %v4661_v41 }
0x4053   :  { %v6841_v14 = vpop.eup %6840 }
0x4054   :  { %4490 = vrot.lane.b32.xlu1 %v6841_v14, %s7076_s3 }
0x4055   :  { %v6843_v38 = vpop.eup %6842 }
0x4056   :  { %v4481_v58 = vadd.f32 1.0, %v6843_v38  ;;  %v8106_v38 = vrot.slane %v4646_v25, %v4689_v32 }
0x4058   :  { %6844 = vrcp.f32 %v4481_v58 }
0x4062   :  { %v6845_v39 = vpop.eup %6844 }
0x4063   :  { %v4488_v57 = vmul.f32 %v6845_v39, %v4486_v3 }
0x40c6   :  { %v4491_v40 = vpop.permute.xlu1 %4490 }
0x40c7   :  { %v4493_v46 = vmul.f32 %v6845_v39, %v4491_v40 }
0x40c9   :  { %4495 = vrot.lane.b32.xlu0 %v4493_v46, %s7076_s3  ;;  %v8109_v46 = vrot.slane %v4646_v25, %v4698_v35 }
0x40cd   :  { %4535 = vrot.lane.b32.xlu0 %v7996_v24, %s7077_s8 }
0x413b   :  { %v4496_v42 = vpop.permute.xlu0 %4495 }
0x413c   :  { %v4498_v47 = vadd.f32 %v4496_v42, %v4488_v57 }
0x413e   :  { %6846 = vtanh.f32 %v4498_v47 }
0x413f   :  { %v4536_v10 = vpop.permute.xlu0 %4535 }
0x4148   :  { %v6847_v52 = vpop.eup %6846 }
0x4149   :  { %4501 = vrot.lane.b32.xlu1 %v6847_v52, %s7076_s3 }
0x41bb   :  { %v4502_v63 = vpop.permute.xlu1 %4501 }
0x41bc   :  { %v4504_v24 = vmul.f32 %v6845_v39, %v4502_v63 }
0x41be   :  { %v4512_v0 = vrot.slane %v4504_v24, 6  ;;  %v4510_v51 = vsel %vm2655_vm9, %v4509_v30, %v4504_v24  ;;  %v4680_v30 = vsub.s32 2, %v4661_v41 }
0x41bf   :  { %4537 = vrot.lane.b32.xlu0 %v4510_v51, %s7077_s8 }
0x41c0   :  { %v4527_v43 = vsel %vm2651_vm7, %v4512_v0, %v4514_v37  ;;  %v8104_v14 = vrot.slane %v4646_v25, %v4680_v30 }
0x41c1   :  { %v4528_v2 = vsel %vm2653_vm8, %v4527_v43, %v4516_v1 }
0x41c2   :  { %v4529_v4 = vsel %vm2655_vm9, %v4528_v2, %v4518_v45 }
0x41c3   :  { %4543 = vrot.lane.b32.xlu1 %v4529_v4, %s7077_s8 }
0x41c7   :  { %4545 = vrot.lane.b32.xlu1 %v4532_v7, %s7077_s8 }
0x4231   :  { %v4538_v12 = vpop.permute.xlu0 %4537 }
0x4235   :  { %v4544_v11 = vpop.permute.xlu1 %4543 }
0x4236   :  { %v4549_v49 = vsel %vm1062_vm4, %v4536_v10, %v4544_v11 }
0x4237   :  { %6129 = vmatprep.mubr.msk.f32.mxu0 %vm285_vm0, %v4549_v49 }
0x4239   :  { %v4546_v13 = vpop.permute.xlu1 %4545 }
0x423a   :  { %v4550_v36 = vsel %vm1062_vm4, %v4538_v12, %v4546_v13 }
0x423b   :  { %6130 = vmatmul.mubr.msk.f32.vlgmr.msra.gmra.mrb[50].mxu0 %vm285_vm0, %v4550_v36 }
0x430e   :  { %v6131_v15 = vpop.f32.mrb[50].mxu0 }
0x430f   :  { %v8072_v26 = vadd.f32 %v6131_v15, %v5416_v23  ;;  %v4634_v16 = vpop.f32.mrb[51].mxu0 }
0x4310   :  { %v8074_v19 = vadd.f32 %v5416_v23, %v4634_v16 }
0x4311   :  { %4644 = vst [vmem:[%s7341_s9 + $0x8] sm:$0xff] %v8072_v26 }
0x4312   :  { %4643 = vst [vmem:[%s7341_s9] sm:$0xff] %v8074_v19  ;;  %v4654_v18 = vadd.f32 %v5419_v17, %v8074_v19  ;;  %v4715_v56 = vrot.slane %v8074_v19, 2  ;;  %v4762_v36 = vrot.slane %v8074_v19, 4  ;;  %s7086_s9 = smov 127  }
0x4314   :  { %4666 = vperm.xlu1 %6581, %v4654_v18   ;;  %4657 = vperm.xlu0 %6580, %v4654_v18  }
0x4318   :  { %6582 = vset.pattern.permute.xlu1 %v7080_v44  ;;  %6583 = vset.pattern.permute.xlu0 %v7081_v21 }
0x4319   :  { %4675 = vperm.xlu1 %6582, %v4654_v18   ;;  %4684 = vperm.xlu0 %6583, %v4654_v18  }
0x431d   :  { %6584 = vset.pattern.permute.xlu1 %v7082_v5  ;;  %6586 = vset.pattern.permute.xlu0 %v7079_v28 }
0x431e   :  { %4693 = vperm.xlu1 %6584, %v4654_v18  }
0x4322   :  { %6585 = vset.pattern.permute.xlu1 %v7078_v20 }
0x4323   :  { %4720 = vperm.xlu1 %6585, %v8092_v34  }
0x4393   :  { %v4667_v53 = vpop.permute.xlu1 %4666  ;;  %v4658_v31 = vpop.permute.xlu0 %4657 }
0x4394   :  { %v4673_v33 = vadd.f32 %v8098_v27, %v4667_v53  ;;  %v4664_v48 = vadd.f32 %v8100_v29, %v4658_v31 }
0x4396   :  { %v4701_v39 = vmax.f32 %v4664_v48, %v4673_v33 }
0x4398   :  { %v4676_v8 = vpop.permute.xlu1 %4675  ;;  %v4685_v58 = vpop.permute.xlu0 %4684 }
0x4399   :  { %v4682_v40 = vadd.f32 %v8104_v14, %v4676_v8  ;;  %v4691_v57 = vadd.f32 %v8106_v38, %v4685_v58 }
0x439b   :  { %v4702_v3 = vmax.f32 %v4701_v39, %v4682_v40 }
0x439d   :  { %v4703_v42 = vmax.f32 %v4702_v3, %v4691_v57  ;;  %v4694_v47 = vpop.permute.xlu1 %4693 }
0x439e   :  { %v4700_v52 = vadd.f32 %v8109_v46, %v4694_v47 }
0x43a0   :  { %v4704_v55 = vmax.f32 %v4703_v42, %v4700_v52 }
0x43a2   :  { %v4717_v60 = vadd.f32 %v4715_v56, %v4704_v55  ;;  %v8114_v61 = vpop.permute.xlu1 %4720  ;;  %vm4705_vm12 = vcmp.ge.f32.partialorder %v4691_v57, %v4704_v55  ;;  %vm4707_vm13 = vcmp.ge.f32.partialorder %v4682_v40, %v4704_v55  ;;  %vm4709_vm14 = vcmp.ge.f32.partialorder %v4673_v33, %v4704_v55 }
0x43a3   :  { %vm4722_vm15 = vcmp.eq.s32.totalorder %v8114_v61, 1  ;;  %v4706_v62 = vsel %vm4705_vm12, 3, %v7082_v5  ;;  %vm4711_vm0 = vcmp.ge.f32.partialorder %v4664_v48, %v4704_v55  ;;  %v4808_v57 = vrot.slane %v8074_v19, 6 }
0x43a4   :  { %v4723_v59 = vsel %vm4722_vm15, %v4717_v60, %v4654_v18  ;;  %v4708_v63 = vsel %vm4707_vm13, 2, %v4706_v62 }
0x43a5   :  { %4731 = vperm.xlu1 %6585, %v4723_v59   ;;  %4726 = vperm.xlu0 %6586, %v4723_v59   ;;  %v4710_v24 = vsel %vm4709_vm14, 1, %v4708_v63 }
0x43a6   :  { %v8120_v37 = vsel %vm4711_vm0, 0, %v4710_v24 }
0x43a9   :  { %6587 = vset.pattern.permute.xlu1 %v7080_v44  ;;  %6588 = vset.pattern.permute.xlu0 %v7081_v21 }
0x43aa   :  { %4736 = vperm.xlu1 %6587, %v4723_v59   ;;  %4741 = vperm.xlu0 %6588, %v4723_v59  }
0x43ae   :  { %6589 = vset.pattern.permute.xlu1 %v7082_v5  ;;  %6591 = vset.pattern.permute.xlu0 %v7079_v28 }
0x43af   :  { %4746 = vperm.xlu1 %6589, %v4723_v59  }
0x43b3   :  { %6590 = vset.pattern.permute.xlu1 %v7080_v44 }
0x43b4   :  { %4766 = vperm.xlu1 %6590, %v8092_v34  }
0x43b8   :  { %6592 = vset.pattern.permute.xlu1 %v7078_v20 }
0x4424   :  { %v4732_v0 = vpop.permute.xlu1 %4731  ;;  %v4727_v51 = vpop.permute.xlu0 %4726 }
0x4425   :  { %v4734_v1 = vadd.f32 %v4732_v0, %v8098_v27  ;;  %v4729_v45 = vadd.f32 %v4727_v51, %v8100_v29 }
0x4427   :  { %v4750_v4 = vmax.f32 %v4729_v45, %v4734_v1 }
0x4429   :  { %v4737_v43 = vpop.permute.xlu1 %4736  ;;  %v4742_v2 = vpop.permute.xlu0 %4741 }
0x442a   :  { %v4739_v6 = vadd.f32 %v4737_v43, %v8104_v14  ;;  %v4744_v10 = vadd.f32 %v4742_v2, %v8106_v38 }
0x442c   :  { %v4751_v7 = vmax.f32 %v4750_v4, %v4739_v6 }
0x442e   :  { %v4752_v11 = vmax.f32 %v4751_v7, %v4744_v10  ;;  %v4747_v49 = vpop.permute.xlu1 %4746 }
0x442f   :  { %v4749_v12 = vadd.f32 %v4747_v49, %v8109_v46 }
0x4431   :  { %v4753_v13 = vmax.f32 %v4752_v11, %v4749_v12 }
0x4433   :  { %v8135_v23 = vpop.permute.xlu1 %4766  ;;  %v4764_v15 = vadd.f32 %v4762_v36, %v4753_v13  ;;  %vm4754_vm1 = vcmp.ge.f32.partialorder %v4744_v10, %v4753_v13  ;;  %vm4756_vm2 = vcmp.ge.f32.partialorder %v4739_v6, %v4753_v13  ;;  %vm4758_vm3 = vcmp.ge.f32.partialorder %v4734_v1, %v4753_v13 }
0x4434   :  { %vm4768_vm4 = vcmp.eq.s32.totalorder %v8135_v23, 1  ;;  %v4755_v16 = vsel %vm4754_vm1, 3, %v7082_v5  ;;  %vm4760_vm5 = vcmp.ge.f32.partialorder %v4729_v45, %v4753_v13 }
0x4435   :  { %v4769_v17 = vsel %vm4768_vm4, %v4764_v15, %v4723_v59  ;;  %v4757_v18 = vsel %vm4756_vm2, 2, %v4755_v16 }
0x4436   :  { %4777 = vperm.xlu1 %6592, %v4769_v17   ;;  %4772 = vperm.xlu0 %6591, %v4769_v17   ;;  %v4759_v41 = vsel %vm4758_vm3, 1, %v4757_v18 }
0x4437   :  { %v8141_v50 = vsel %vm4760_vm5, 0, %v4759_v41 }
0x443a   :  { %6593 = vset.pattern.permute.xlu1 %v7080_v44  ;;  %6594 = vset.pattern.permute.xlu0 %v7081_v21 }
0x443b   :  { %4782 = vperm.xlu1 %6593, %v4769_v17   ;;  %4787 = vperm.xlu0 %6594, %v4769_v17  }
0x443f   :  { %6595 = vset.pattern.permute.xlu1 %v7082_v5  ;;  %6597 = vset.pattern.permute.xlu0 %v7079_v28 }
0x4440   :  { %4792 = vperm.xlu1 %6595, %v4769_v17  }
0x4444   :  { %6596 = vset.pattern.permute.xlu1 %v7081_v21 }
0x4445   :  { %4812 = vperm.xlu1 %6596, %v8092_v34  }
0x4449   :  { %6598 = vset.pattern.permute.xlu1 %v7078_v20 }
0x44b5   :  { %v4778_v22 = vpop.permute.xlu1 %4777  ;;  %v4773_v25 = vpop.permute.xlu0 %4772 }
0x44b6   :  { %v4780_v30 = vadd.f32 %v4778_v22, %v8098_v27  ;;  %v4775_v53 = vadd.f32 %v4773_v25, %v8100_v29 }
0x44b8   :  { %v4796_v33 = vmax.f32 %v4775_v53, %v4780_v30 }
0x44ba   :  { %v4783_v31 = vpop.permute.xlu1 %4782  ;;  %v4788_v32 = vpop.permute.xlu0 %4787 }
0x44bb   :  { %v4785_v48 = vadd.f32 %v4783_v31, %v8104_v14  ;;  %v4790_v8 = vadd.f32 %v4788_v32, %v8106_v38 }
0x44bd   :  { %v4797_v35 = vmax.f32 %v4796_v33, %v4785_v48 }
0x44bf   :  { %v4798_v58 = vmax.f32 %v4797_v35, %v4790_v8  ;;  %v4793_v39 = vpop.permute.xlu1 %4792 }
0x44c0   :  { %v4795_v40 = vadd.f32 %v4793_v39, %v8109_v46 }
0x44c2   :  { %v4799_v3 = vmax.f32 %v4798_v58, %v4795_v40  ;;  %v4899_v40 = vrot.slane %v8072_v26, 2 }
0x44c4   :  { %v8156_v42 = vpop.permute.xlu1 %4812  ;;  %v4810_v47 = vadd.f32 %v4808_v57, %v4799_v3  ;;  %vm4800_vm6 = vcmp.ge.f32.partialorder %v4790_v8, %v4799_v3  ;;  %vm4802_vm7 = vcmp.ge.f32.partialorder %v4785_v48, %v4799_v3  ;;  %vm4804_vm8 = vcmp.ge.f32.partialorder %v4780_v30, %v4799_v3 }
0x44c5   :  { %vm4814_vm9 = vcmp.eq.s32.totalorder %v8156_v42, 1  ;;  %v4801_v52 = vsel %vm4800_vm6, 3, %v7082_v5  ;;  %vm4806_vm10 = vcmp.ge.f32.partialorder %v4775_v53, %v4799_v3 }
0x44c6   :  { %v4815_v55 = vsel %vm4814_vm9, %v4810_v47, %v4769_v17  ;;  %v4803_v56 = vsel %vm4802_vm7, 2, %v4801_v52  ;;  %v7083_v17 = vmov 5  }
0x44c7   :  { %4823 = vperm.xlu1 %6598, %v4815_v55   ;;  %4818 = vperm.xlu0 %6597, %v4815_v55   ;;  %v4805_v60 = vsel %vm4804_vm8, 1, %v4803_v56 }
0x44c8   :  { %v8162_v62 = vsel %vm4806_vm10, 0, %v4805_v60 }
0x44cb   :  { %6599 = vset.pattern.permute.xlu1 %v7080_v44  ;;  %6600 = vset.pattern.permute.xlu0 %v7081_v21 }
0x44cc   :  { %4828 = vperm.xlu1 %6599, %v4815_v55   ;;  %4833 = vperm.xlu0 %6600, %v4815_v55  }
0x44d0   :  { %6601 = vset.pattern.permute.xlu1 %v7082_v5  ;;  %6602 = vset.pattern.permute.xlu0 %v7079_v28 }
0x44d1   :  { %4838 = vperm.xlu1 %6601, %v4815_v55  }
0x44d5   :  { %4856 = vperm.xlu1 %6601, %v8092_v34  }
0x44d9   :  { %6603 = vset.pattern.permute.xlu1 %v7078_v20 }
0x4546   :  { %v4824_v19 = vpop.permute.xlu1 %4823  ;;  %v4819_v59 = vpop.permute.xlu0 %4818 }
0x4547   :  { %v4826_v63 = vadd.f32 %v4824_v19, %v8098_v27  ;;  %v4821_v24 = vadd.f32 %v4819_v59, %v8100_v29  ;;  %v7084_v19 = vmov 6  }
0x4549   :  { %v4842_v1 = vmax.f32 %v4821_v24, %v4826_v63 }
0x454b   :  { %v4829_v0 = vpop.permute.xlu1 %4828  ;;  %v4834_v51 = vpop.permute.xlu0 %4833 }
0x454c   :  { %v4831_v45 = vadd.f32 %v4829_v0, %v8104_v14  ;;  %v4836_v2 = vadd.f32 %v4834_v51, %v8106_v38 }
0x454e   :  { %v4843_v43 = vmax.f32 %v4842_v1, %v4831_v45 }
0x4550   :  { %v4844_v4 = vmax.f32 %v4843_v43, %v4836_v2  ;;  %v4839_v6 = vpop.permute.xlu1 %4838 }
0x4551   :  { %v4841_v7 = vadd.f32 %v4839_v6, %v8109_v46 }
0x4553   :  { %v4845_v10 = vmax.f32 %v4844_v4, %v4841_v7 }
0x4554   :  { %v8175_v11 = vpop.permute.xlu1 %4856 }
0x4555   :  { %v4854_v49 = vadd.f32 %v4845_v10, %v8072_v26  ;;  %vm4858_vm12 = vcmp.eq.s32.totalorder %v8175_v11, 1  ;;  %vm4846_vm13 = vcmp.ge.f32.partialorder %v4836_v2, %v4845_v10  ;;  %vm4848_vm14 = vcmp.ge.f32.partialorder %v4831_v45, %v4845_v10 }
0x4556   :  { %v4847_v12 = vsel %vm4846_vm13, 3, %v7082_v5  ;;  %vm4850_vm0 = vcmp.ge.f32.partialorder %v4826_v63, %v4845_v10  ;;  %vm4852_vm1 = vcmp.ge.f32.partialorder %v4821_v24, %v4845_v10 }
0x4557   :  { %v4859_v13 = vsel %vm4858_vm12, %v4854_v49, %v4815_v55  ;;  %v4849_v36 = vsel %vm4848_vm14, 2, %v4847_v12  ;;  %v4945_v12 = vrot.slane %v8072_v26, 4 }
0x4558   :  { %4867 = vperm.xlu1 %6603, %v4859_v13   ;;  %4862 = vperm.xlu0 %6602, %v4859_v13   ;;  %v4851_v15 = vsel %vm4850_vm0, 1, %v4849_v36 }
0x4559   :  { %v8182_v16 = vsel %vm4852_vm1, 0, %v4851_v15 }
0x455c   :  { %6604 = vset.pattern.permute.xlu1 %v7080_v44  ;;  %6605 = vset.pattern.permute.xlu0 %v7081_v21 }
0x455d   :  { %4872 = vperm.xlu1 %6604, %v4859_v13   ;;  %4877 = vperm.xlu0 %6605, %v4859_v13  }
0x4561   :  { %6606 = vset.pattern.permute.xlu1 %v7082_v5  ;;  %6608 = vset.pattern.permute.xlu0 %v7079_v28 }
0x4562   :  { %4882 = vperm.xlu1 %6606, %v4859_v13  }
0x4566   :  { %6607 = vset.pattern.permute.xlu1 %v7083_v17 }
0x4567   :  { %4903 = vperm.xlu1 %6607, %v8092_v34  }
0x456b   :  { %6609 = vset.pattern.permute.xlu1 %v7078_v20 }
0x45d7   :  { %v4868_v18 = vpop.permute.xlu1 %4867  ;;  %v4863_v41 = vpop.permute.xlu0 %4862 }
0x45d8   :  { %v4870_v22 = vadd.f32 %v4868_v18, %v8098_v27  ;;  %v4865_v25 = vadd.f32 %v4863_v41, %v8100_v29 }
0x45da   :  { %v4886_v31 = vmax.f32 %v4865_v25, %v4870_v22 }
0x45dc   :  { %v4873_v30 = vpop.permute.xlu1 %4872  ;;  %v4878_v53 = vpop.permute.xlu0 %4877 }
0x45dd   :  { %v4875_v32 = vadd.f32 %v4873_v30, %v8104_v14  ;;  %v4880_v48 = vadd.f32 %v4878_v53, %v8106_v38  ;;  %v7085_v30 = vmov 7  }
0x45df   :  { %v4887_v33 = vmax.f32 %v4886_v31, %v4875_v32 }
0x45e1   :  { %v4888_v35 = vmax.f32 %v4887_v33, %v4880_v48  ;;  %v4883_v8 = vpop.permute.xlu1 %4882 }
0x45e2   :  { %v4885_v58 = vadd.f32 %v4883_v8, %v8109_v46 }
0x45e4   :  { %v4889_v39 = vmax.f32 %v4888_v35, %v4885_v58 }
0x45e6   :  { %v8197_v3 = vpop.permute.xlu1 %4903  ;;  %v4901_v57 = vadd.f32 %v4899_v40, %v4889_v39  ;;  %vm4890_vm2 = vcmp.ge.f32.partialorder %v4880_v48, %v4889_v39  ;;  %vm4892_vm3 = vcmp.ge.f32.partialorder %v4875_v32, %v4889_v39  ;;  %vm4894_vm5 = vcmp.ge.f32.partialorder %v4870_v22, %v4889_v39 }
0x45e7   :  { %vm4905_vm6 = vcmp.eq.s32.totalorder %v8197_v3, 1  ;;  %v4891_v47 = vsel %vm4890_vm2, 3, %v7082_v5  ;;  %vm4896_vm7 = vcmp.ge.f32.partialorder %v4865_v25, %v4889_v39 }
0x45e8   :  { %v4906_v52 = vsel %vm4905_vm6, %v4901_v57, %v4859_v13  ;;  %v4893_v55 = vsel %vm4892_vm3, 2, %v4891_v47 }
0x45e9   :  { %4914 = vperm.xlu1 %6609, %v4906_v52   ;;  %4909 = vperm.xlu0 %6608, %v4906_v52   ;;  %v4895_v56 = vsel %vm4894_vm5, 1, %v4893_v55 }
0x45ea   :  { %v8203_v60 = vsel %vm4896_vm7, 0, %v4895_v56 }
0x45ed   :  { %6610 = vset.pattern.permute.xlu1 %v7080_v44  ;;  %6611 = vset.pattern.permute.xlu0 %v7081_v21 }
0x45ee   :  { %4919 = vperm.xlu1 %6610, %v4906_v52   ;;  %4924 = vperm.xlu0 %6611, %v4906_v52  }
0x45f2   :  { %6612 = vset.pattern.permute.xlu1 %v7082_v5  ;;  %6614 = vset.pattern.permute.xlu0 %v7079_v28 }
0x45f3   :  { %4929 = vperm.xlu1 %6612, %v4906_v52  }
0x45f7   :  { %6613 = vset.pattern.permute.xlu1 %v7084_v19 }
0x45f8   :  { %4949 = vperm.xlu1 %6613, %v8092_v34  }
0x45fc   :  { %6615 = vset.pattern.permute.xlu1 %v7078_v20 }
0x4668   :  { %v4915_v59 = vpop.permute.xlu1 %4914  ;;  %v4910_v63 = vpop.permute.xlu0 %4909 }
0x4669   :  { %v4917_v24 = vadd.f32 %v4915_v59, %v8098_v27  ;;  %v4912_v0 = vadd.f32 %v4910_v63, %v8100_v29 }
0x466b   :  { %v4933_v45 = vmax.f32 %v4912_v0, %v4917_v24 }
0x466d   :  { %v4920_v51 = vpop.permute.xlu1 %4919  ;;  %v4925_v1 = vpop.permute.xlu0 %4924 }
0x466e   :  { %v4922_v43 = vadd.f32 %v4920_v51, %v8104_v14  ;;  %v4927_v4 = vadd.f32 %v4925_v1, %v8106_v38 }
0x4670   :  { %v4934_v2 = vmax.f32 %v4933_v45, %v4922_v43 }
0x4672   :  { %v4935_v6 = vmax.f32 %v4934_v2, %v4927_v4  ;;  %v4930_v7 = vpop.permute.xlu1 %4929 }
0x4673   :  { %v4932_v10 = vadd.f32 %v4930_v7, %v8109_v46 }
0x4675   :  { %v4936_v49 = vmax.f32 %v4935_v6, %v4932_v10 }
0x4677   :  { %v8217_v13 = vpop.permute.xlu1 %4949  ;;  %v4947_v36 = vadd.f32 %v4945_v12, %v4936_v49  ;;  %vm4937_vm8 = vcmp.ge.f32.partialorder %v4927_v4, %v4936_v49  ;;  %vm4939_vm10 = vcmp.ge.f32.partialorder %v4922_v43, %v4936_v49  ;;  %vm4941_vm13 = vcmp.ge.f32.partialorder %v4917_v24, %v4936_v49 }
0x4678   :  { %vm4951_vm14 = vcmp.eq.s32.totalorder %v8217_v13, 1  ;;  %v4938_v15 = vsel %vm4937_vm8, 3, %v7082_v5  ;;  %vm4943_vm0 = vcmp.ge.f32.partialorder %v4912_v0, %v4936_v49  ;;  %vm5006_vm8 = vcmask 33792  }
0x4679   :  { %v4952_v18 = vsel %vm4951_vm14, %v4947_v36, %v4906_v52  ;;  %v4940_v41 = vsel %vm4939_vm10, 2, %v4938_v15 }
0x467a   :  { %4960 = vperm.xlu1 %6615, %v4952_v18   ;;  %4955 = vperm.xlu0 %6614, %v4952_v18   ;;  %v4942_v22 = vsel %vm4941_vm13, 1, %v4940_v41 }
0x467b   :  { %v8223_v25 = vsel %vm4943_vm0, 0, %v4942_v22  ;;  %vm5030_vm0 = vcmp.eq.s32.totalorder %v8084_v54, 0 }
0x467c   :  { %v5031_v7 = vsel %vm5030_vm0, 1, %v7079_v28 }
0x467e   :  { %6616 = vset.pattern.permute.xlu1 %v7080_v44  ;;  %6617 = vset.pattern.permute.xlu0 %v7081_v21 }
0x467f   :  { %4965 = vperm.xlu1 %6616, %v4952_v18   ;;  %4970 = vperm.xlu0 %6617, %v4952_v18  }
0x4683   :  { %6618 = vset.pattern.permute.xlu1 %v7082_v5  ;;  %6620 = vset.pattern.permute.xlu0 %v7084_v19  ;;  %v5420_v19 = vld [vmem:[#allocation11] ss:$0 sm:$0xff] }
0x4684   :  { %4975 = vperm.xlu1 %6618, %v4952_v18  }
0x4688   :  { %6619 = vset.pattern.permute.xlu1 %v7085_v30 }
0x4689   :  { %4995 = vperm.xlu1 %6619, %v8092_v34  }
0x468d   :  { %6621 = vset.pattern.permute.xlu1 %v7083_v17  ;;  %v4991_v17 = vrot.slane %v8072_v26, 6 }
0x46f9   :  { %v4961_v53 = vpop.permute.xlu1 %4960  ;;  %v4956_v31 = vpop.permute.xlu0 %4955 }
0x46fa   :  { %v4963_v32 = vadd.f32 %v4961_v53, %v8098_v27  ;;  %v4958_v33 = vadd.f32 %v4956_v31, %v8100_v29 }
0x46fc   :  { %v4979_v8 = vmax.f32 %v4958_v33, %v4963_v32 }
0x46fe   :  { %v4966_v48 = vpop.permute.xlu1 %4965  ;;  %v4971_v35 = vpop.permute.xlu0 %4970 }
0x46ff   :  { %v4968_v58 = vadd.f32 %v4966_v48, %v8104_v14  ;;  %v4973_v40 = vadd.f32 %v4971_v35, %v8106_v38 }
0x4701   :  { %v4980_v39 = vmax.f32 %v4979_v8, %v4968_v58 }
0x4703   :  { %v4981_v57 = vmax.f32 %v4980_v39, %v4973_v40  ;;  %v4976_v47 = vpop.permute.xlu1 %4975 }
0x4704   :  { %v4978_v52 = vadd.f32 %v4976_v47, %v8109_v46 }
0x4706   :  { %v4982_v55 = vmax.f32 %v4981_v57, %v4978_v52 }
0x4708   :  { %v8236_v56 = vpop.permute.xlu1 %4995  ;;  %v4993_v27 = vadd.f32 %v4991_v17, %v4982_v55  ;;  %vm4983_vm1 = vcmp.ge.f32.partialorder %v4973_v40, %v4982_v55  ;;  %vm4985_vm2 = vcmp.ge.f32.partialorder %v4968_v58, %v4982_v55  ;;  %vm4987_vm3 = vcmp.ge.f32.partialorder %v4963_v32, %v4982_v55 }
0x4709   :  { %vm4997_vm5 = vcmp.eq.s32.totalorder %v8236_v56, 1  ;;  %v4984_v29 = vsel %vm4983_vm1, 3, %v7082_v5  ;;  %vm4989_vm7 = vcmp.ge.f32.partialorder %v4958_v33, %v4982_v55 }
0x470a   :  { %v4998_v14 = vsel %vm4997_vm5, %v4993_v27, %v4952_v18  ;;  %v4986_v38 = vsel %vm4985_vm2, 2, %v4984_v29 }
0x470b   :  { %v5005_v46 = vadd.f32 %v5420_v19, %v4998_v14  ;;  %v4988_v59 = vsel %vm4987_vm3, 1, %v4986_v38 }
0x470c   :  { %v4990_v26 = vsel %vm4989_vm7, 0, %v4988_v59  ;;  %vm5027_vm7 = vcmp.eq.s32.totalorder %v7757_v9, 7 }
0x470d   :  { %v5007_v63 = vsel %vm5006_vm8, %v5005_v46, -inf }
0x470e   :  { %5008 = vmax.xlane.f32.xlu0 %v5007_v63 }
0x479b   :  { %v5009_v24 = vpop.xlane.xlu0 %5008 }
0x479c   :  { %vm5010_vm10 = vcmp.ge.f32.partialorder %v5005_v46, %v5009_v24 }
0x479d   :  { %v5011_v0 = vsel %vm5010_vm10, %v7757_v9, 5  ;;  %vm5053_vm10 = vcmp.eq.s32.totalorder %v7757_v9, 6 }
0x479e   :  { %v5012_v51 = vsel %vm5006_vm8, %v5011_v0, 2147483647  ;;  %vm5054_vm0 = vmand %vm5053_vm10, %vm4951_vm14  ;;  %vm5078_vm14 = vcmp.eq.s32.totalorder %v7757_v9, 5 }
0x479f   :  { %v5014_v1 = vshra.s32 %v5012_v51, 16  ;;  %v5013_v43 = vand.u32 65535, %v5012_v51 }
0x47a1   :  { %v5016_v45 = vcvt.s32.f32 %v5014_v1  ;;  %v5015_v4 = vcvt.s32.f32 %v5013_v43 }
0x47a3   :  { %5017 = vmin.xlane.f32.xlu1 %v5016_v45 }
0x47b4   :  { %5032 = vrot.lane.b32.xlu1 %v5031_v7, %s7086_s9 }
0x4830   :  { %v5018_v2 = vpop.xlane.xlu1 %5017 }
0x4831   :  { %vm5019_vm13 = vcmp.eq.f32.partialorder %v5016_v45, %v5018_v2  ;;  %v5024_v10 = vcvt.f32.s32 %v5018_v2 }
0x4832   :  { %v5020_v6 = vsel %vm5019_vm13, %v5015_v4, inf  ;;  %vm5028_vm13 = vmand %vm5027_vm7, %vm4997_vm5 }
0x4833   :  { %5021 = vmin.xlane.f32.xlu0 %v5020_v6  ;;  %v5025_v12 = vshll.u32 %v5024_v10, 16  ;;  %vm8286_vm5 = vmand %vm5078_vm14, %vm4905_vm6  ;;  %vm5103_vm6 = vcmp.eq.s32.totalorder %v7757_v9, 4 }
0x4834   :  { %v5033_v33 = vpop.permute.xlu1 %5032  ;;  %vm5104_vm7 = vmand %vm5103_vm6, %vm4858_vm12  ;;  %vm5128_vm12 = vcmp.eq.s32.totalorder %v7757_v9, 3 }
0x4835   :  { %vm5034_vm2 = vcmp.ne.s32.totalorder %v5033_v33, 0 }
0x4836   :  { %vm8255_vm3 = vmand %vm4713_vm11, %vm5034_vm2 }
0x48c0   :  { %v5022_v49 = vpop.xlane.xlu0 %5021 }
0x48c1   :  { %v5023_v36 = vcvt.f32.s32 %v5022_v49 }
0x48c3   :  { %v8248_v15 = vadd.s32 %v5025_v12, %v5023_v36 }
0x48c5   :  { %vm5036_vm1 = vcmp.eq.s32.totalorder %v7757_v9, %v8248_v15  ;;  %v5029_v52 = vsel %vm5028_vm13, %v8248_v15, 0  ;;  %vm8318_vm13 = vmand %vm5128_vm12, %vm4814_vm9  ;;  %vm5153_vm9 = vcmp.eq.s32.totalorder %v7757_v9, 2 }
0x48c6   :  { %v5037_v18 = vsel %vm5036_vm1, %v4990_v26, 0 }
0x48c7   :  { %v5038_v41 = vsel %vm5006_vm8, %v5037_v18, 0 }
0x48c8   :  { %v5040_v22 = vshrl.u32 %v5038_v41, 16  ;;  %v5039_v53 = vand.u32 65535, %v5038_v41 }
0x48ca   :  { %v5042_v30 = vcvt.s32.f32 %v5040_v22  ;;  %v5041_v31 = vcvt.s32.f32 %v5039_v53 }
0x48cc   :  { %5045 = vadd.xlane.f32.xlu0 %v5042_v30 }
0x48d0   :  { %5043 = vadd.xlane.f32.xlu0 %v5041_v31 }
0x4959   :  { %v5046_v32 = vpop.xlane.xlu0 %5045 }
0x495a   :  { %v5048_v48 = vcvt.f32.s32 %v5046_v32 }
0x495c   :  { %v5049_v8 = vshll.u32 %v5048_v48, 16 }
0x495d   :  { %v5044_v35 = vpop.xlane.xlu0 %5043 }
0x495e   :  { %v5047_v58 = vcvt.f32.s32 %v5044_v35 }
0x4960   :  { %v5050_v40 = vadd.s32 %v5049_v8, %v5047_v58 }
0x4962   :  { %v5051_v57 = vsel %vm8255_vm3, %v8248_v15, %v5050_v40 }
0x4963   :  { %v5052_v47 = vsel %vm4713_vm11, %v5051_v57, %v8248_v15 }
0x4964   :  { %5056 = vperm.xlu0 %6620, %v5052_v47  }
0x4968   :  { %6622 = vset.pattern.permute.xlu0 %v7082_v5 }
0x49e3   :  { %v5057_v55 = vpop.permute.xlu0 %5056 }
0x49e4   :  { %v5058_v17 = vsel %vm5054_vm0, %v5057_v55, %v5029_v52  ;;  %vm5059_vm1 = vcmp.eq.s32.totalorder %v7757_v9, %v5057_v55 }
0x49e5   :  { %v5060_v27 = vsel %vm5059_vm1, %v8223_v25, 0  ;;  %vm5154_vm1 = vmand %vm5153_vm9, %vm4768_vm4  ;;  %vm5178_vm4 = vcmp.eq.s32.totalorder %v7757_v9, 1 }
0x49e6   :  { %v5061_v5 = vsel %vm5006_vm8, %v5060_v27, 0 }
0x49e7   :  { %v5063_v19 = vshrl.u32 %v5061_v5, 16  ;;  %v5062_v29 = vand.u32 65535, %v5061_v5 }
0x49e9   :  { %v5065_v14 = vcvt.s32.f32 %v5063_v19  ;;  %v5064_v38 = vcvt.s32.f32 %v5062_v29 }
0x49eb   :  { %5068 = vadd.xlane.f32.xlu1 %v5065_v14  ;;  %5066 = vadd.xlane.f32.xlu0 %v5064_v38 }
0x49fc   :  { %5075 = vrot.lane.b32.xlu1 %v5052_v47, %s7086_s9 }
0x4a78   :  { %v5069_v13 = vpop.xlane.xlu1 %5068  ;;  %v5067_v56 = vpop.xlane.xlu0 %5066 }
0x4a79   :  { %v5071_v46 = vcvt.f32.s32 %v5069_v13  ;;  %v5070_v26 = vcvt.f32.s32 %v5067_v56 }
0x4a7b   :  { %v5072_v59 = vshll.u32 %v5071_v46, 16 }
0x4a7c   :  { %v5076_v24 = vpop.permute.xlu1 %5075 }
0x4a7d   :  { %v5073_v63 = vadd.s32 %v5072_v59, %v5070_v26 }
0x4a7f   :  { %v5074_v25 = vsel %vm8255_vm3, %v8248_v15, %v5073_v63 }
0x4a80   :  { %v5077_v0 = vsel %vm4713_vm11, %v5074_v25, %v5076_v24 }
0x4a81   :  { %5081 = vperm.xlu1 %6621, %v5077_v0  }
0x4a85   :  { %6623 = vset.pattern.permute.xlu1 %v7081_v21 }
0x4b00   :  { %v5082_v1 = vpop.permute.xlu1 %5081 }
0x4b01   :  { %v5083_v45 = vsel %vm8286_vm5, %v5082_v1, %v5058_v17  ;;  %vm5084_vm2 = vcmp.eq.s32.totalorder %v7757_v9, %v5082_v1  ;;  %vm8350_vm5 = vmand %vm5178_vm4, %vm4722_vm15  ;;  %vm5203_vm15 = vcmp.eq.s32.totalorder %v7757_v9, 0 }
0x4b02   :  { %v5085_v43 = vsel %vm5084_vm2, %v8203_v60, 0 }
0x4b03   :  { %v5086_v2 = vsel %vm5006_vm8, %v5085_v43, 0 }
0x4b04   :  { %v5088_v4 = vshrl.u32 %v5086_v2, 16  ;;  %v5087_v21 = vand.u32 65535, %v5086_v2 }
0x4b06   :  { %v5090_v6 = vcvt.s32.f32 %v5088_v4  ;;  %v5089_v7 = vcvt.s32.f32 %v5087_v21 }
0x4b08   :  { %5093 = vadd.xlane.f32.xlu1 %v5090_v6  ;;  %5091 = vadd.xlane.f32.xlu0 %v5089_v7 }
0x4b1e   :  { %5100 = vrot.lane.b32.xlu0 %v5077_v0, %s7086_s9 }
0x4b95   :  { %v5094_v3 = vpop.xlane.xlu1 %5093  ;;  %v5092_v10 = vpop.xlane.xlu0 %5091 }
0x4b96   :  { %v5096_v49 = vcvt.f32.s32 %v5094_v3  ;;  %v5095_v36 = vcvt.f32.s32 %v5092_v10 }
0x4b98   :  { %v5097_v12 = vshll.u32 %v5096_v49, 16 }
0x4b99   :  { %v5101_v41 = vpop.permute.xlu0 %5100 }
0x4b9a   :  { %v5098_v18 = vadd.s32 %v5097_v12, %v5095_v36 }
0x4b9c   :  { %v5099_v60 = vsel %vm8255_vm3, %v8248_v15, %v5098_v18 }
0x4b9d   :  { %v5102_v22 = vsel %vm4713_vm11, %v5099_v60, %v5101_v41 }
0x4b9e   :  { %5106 = vperm.xlu0 %6622, %v5102_v22  }
0x4ba2   :  { %6624 = vset.pattern.permute.xlu0 %v7080_v44 }
0x4c1d   :  { %v5107_v30 = vpop.permute.xlu0 %5106 }
0x4c1e   :  { %v5108_v53 = vsel %vm5104_vm7, %v5107_v30, %v5083_v45  ;;  %vm5109_vm10 = vcmp.eq.s32.totalorder %v7757_v9, %v5107_v30  ;;  %vm5213_vm7 = vcmask 58368  }
0x4c1f   :  { %v5110_v31 = vsel %vm5109_vm10, %v8182_v16, 0 }
0x4c20   :  { %v5111_v32 = vsel %vm5006_vm8, %v5110_v31, 0 }
0x4c21   :  { %v5113_v33 = vshrl.u32 %v5111_v32, 16  ;;  %v5112_v48 = vand.u32 65535, %v5111_v32 }
0x4c23   :  { %v5115_v35 = vcvt.s32.f32 %v5113_v33  ;;  %v5114_v8 = vcvt.s32.f32 %v5112_v48 }
0x4c25   :  { %5118 = vadd.xlane.f32.xlu1 %v5115_v35  ;;  %5116 = vadd.xlane.f32.xlu0 %v5114_v8 }
0x4c36   :  { %5125 = vrot.lane.b32.xlu1 %v5102_v22, %s7086_s9 }
0x4cb2   :  { %v5119_v44 = vpop.xlane.xlu1 %5118  ;;  %v5117_v58 = vpop.xlane.xlu0 %5116 }
0x4cb3   :  { %v5121_v11 = vcvt.f32.s32 %v5119_v44  ;;  %v5120_v57 = vcvt.f32.s32 %v5117_v58 }
0x4cb5   :  { %v5122_v40 = vshll.u32 %v5121_v11, 16 }
0x4cb6   :  { %v5126_v52 = vpop.permute.xlu1 %5125 }
0x4cb7   :  { %v5123_v47 = vadd.s32 %v5122_v40, %v5120_v57 }
0x4cb9   :  { %v5124_v16 = vsel %vm8255_vm3, %v8248_v15, %v5123_v47 }
0x4cba   :  { %v5127_v55 = vsel %vm4713_vm11, %v5124_v16, %v5126_v52 }
0x4cbb   :  { %5131 = vperm.xlu1 %6623, %v5127_v55  }
0x4cbf   :  { %6625 = vset.pattern.permute.xlu1 %v7078_v20 }
0x4d3a   :  { %v5132_v27 = vpop.permute.xlu1 %5131 }
0x4d3b   :  { %v5133_v5 = vsel %vm8318_vm13, %v5132_v27, %v5108_v53  ;;  %vm5134_vm0 = vcmp.eq.s32.totalorder %v7757_v9, %v5132_v27 }
0x4d3c   :  { %v5135_v19 = vsel %vm5134_vm0, %v8162_v62, 0 }
0x4d3d   :  { %v5136_v29 = vsel %vm5006_vm8, %v5135_v19, 0 }
0x4d3e   :  { %v5138_v14 = vshrl.u32 %v5136_v29, 16  ;;  %v5137_v20 = vand.u32 65535, %v5136_v29 }
0x4d40   :  { %v5140_v38 = vcvt.s32.f32 %v5138_v14  ;;  %v5139_v13 = vcvt.s32.f32 %v5137_v20 }
0x4d42   :  { %5143 = vadd.xlane.f32.xlu1 %v5140_v38  ;;  %5141 = vadd.xlane.f32.xlu0 %v5139_v13 }
0x4d58   :  { %5150 = vrot.lane.b32.xlu0 %v5127_v55, %s7086_s9 }
0x4dcf   :  { %v5144_v42 = vpop.xlane.xlu1 %5143  ;;  %v5142_v56 = vpop.xlane.xlu0 %5141 }
0x4dd0   :  { %v5146_v46 = vcvt.f32.s32 %v5144_v42  ;;  %v5145_v26 = vcvt.f32.s32 %v5142_v56 }
0x4dd2   :  { %v5147_v59 = vshll.u32 %v5146_v46, 16 }
0x4dd3   :  { %v5151_v24 = vpop.permute.xlu0 %5150 }
0x4dd4   :  { %v5148_v63 = vadd.s32 %v5147_v59, %v5145_v26 }
0x4dd6   :  { %v5149_v62 = vsel %vm8255_vm3, %v8248_v15, %v5148_v63 }
0x4dd7   :  { %v5152_v25 = vsel %vm4713_vm11, %v5149_v62, %v5151_v24 }
0x4dd8   :  { %5156 = vperm.xlu0 %6624, %v5152_v25  }
0x4ddc   :  { %5175 = vrot.lane.b32.xlu0 %v5152_v25, %s7086_s9 }
0x4ddd   :  { %6627 = vset.pattern.permute.xlu0 %v7079_v28 }
0x4e57   :  { %v5157_v0 = vpop.permute.xlu0 %5156 }
0x4e58   :  { %v5158_v51 = vsel %vm5154_vm1, %v5157_v0, %v5133_v5  ;;  %vm5159_vm14 = vcmp.eq.s32.totalorder %v7757_v9, %v5157_v0 }
0x4e59   :  { %v5160_v1 = vsel %vm5159_vm14, %v8141_v50, 0 }
0x4e5a   :  { %v5161_v45 = vsel %vm5006_vm8, %v5160_v1, 0 }
0x4e5b   :  { %v5163_v43 = vshrl.u32 %v5161_v45, 16  ;;  %v5162_v4 = vand.u32 65535, %v5161_v45  ;;  %v5176_v12 = vpop.permute.xlu0 %5175 }
0x4e5d   :  { %v5165_v2 = vcvt.s32.f32 %v5163_v43  ;;  %v5164_v21 = vcvt.s32.f32 %v5162_v4 }
0x4e5f   :  { %5168 = vadd.xlane.f32.xlu1 %v5165_v2 }
0x4e63   :  { %5166 = vadd.xlane.f32.xlu1 %v5164_v21 }
0x4eec   :  { %v5169_v6 = vpop.xlane.xlu1 %5168 }
0x4eed   :  { %v5171_v7 = vcvt.f32.s32 %v5169_v6 }
0x4eef   :  { %v5172_v10 = vshll.u32 %v5171_v7, 16 }
0x4ef0   :  { %v5167_v3 = vpop.xlane.xlu1 %5166 }
0x4ef1   :  { %v5170_v23 = vcvt.f32.s32 %v5167_v3 }
0x4ef3   :  { %v5173_v49 = vadd.s32 %v5172_v10, %v5170_v23 }
0x4ef5   :  { %v5174_v36 = vsel %vm8255_vm3, %v8248_v15, %v5173_v49 }
0x4ef6   :  { %v5177_v50 = vsel %vm4713_vm11, %v5174_v36, %v5176_v12 }
0x4ef7   :  { %5181 = vperm.xlu1 %6625, %v5177_v50  }
0x4efb   :  { %6626 = vset.pattern.permute.xlu1 %v7079_v28 }
0x4f76   :  { %v5182_v60 = vpop.permute.xlu1 %5181 }
0x4f77   :  { %v5183_v41 = vsel %vm8350_vm5, %v5182_v60, %v5158_v51  ;;  %vm5184_vm2 = vcmp.eq.s32.totalorder %v7757_v9, %v5182_v60 }
0x4f78   :  { %v5185_v22 = vsel %vm5184_vm2, %v8120_v37, 0 }
0x4f79   :  { %v5186_v30 = vsel %vm5006_vm8, %v5185_v22, 0 }
0x4f7a   :  { %v5188_v53 = vshrl.u32 %v5186_v30, 16  ;;  %v5187_v28 = vand.u32 65535, %v5186_v30 }
0x4f7c   :  { %v5190_v31 = vcvt.s32.f32 %v5188_v53  ;;  %v5189_v32 = vcvt.s32.f32 %v5187_v28 }
0x4f7e   :  { %5193 = vadd.xlane.f32.xlu0 %v5190_v31  ;;  %5191 = vadd.xlane.f32.xlu1 %v5189_v32 }
0x4f8f   :  { %5205 = vperm.xlu1 %6626, %v8092_v34  }
0x4f94   :  { %5200 = vrot.lane.b32.xlu0 %v5177_v50, %s7086_s9 }
0x500b   :  { %v5194_v61 = vpop.xlane.xlu0 %5193  ;;  %v5192_v33 = vpop.xlane.xlu1 %5191 }
0x500c   :  { %v5196_v48 = vcvt.f32.s32 %v5194_v61  ;;  %v5195_v8 = vcvt.f32.s32 %v5192_v33 }
0x500e   :  { %v5197_v35 = vshll.u32 %v5196_v48, 16 }
0x500f   :  { %v5201_v58 = vpop.permute.xlu0 %5200  ;;  %v5206_v40 = vpop.permute.xlu1 %5205 }
0x5010   :  { %v5198_v44 = vadd.s32 %v5197_v35, %v5195_v8  ;;  %vm5207_vm8 = vcmp.eq.s32.totalorder %v5206_v40, 1 }
0x5011   :  { %vm5208_vm6 = vmand %vm5203_vm15, %vm5207_vm8 }
0x5012   :  { %v5199_v37 = vsel %vm8255_vm3, %v8248_v15, %v5198_v44 }
0x5013   :  { %v5202_v11 = vsel %vm4713_vm11, %v5199_v37, %v5201_v58 }
0x5014   :  { %5210 = vperm.xlu0 %6627, %v5202_v11  }
0x5093   :  { %v5211_v34 = vpop.permute.xlu0 %5210 }
0x5094   :  { %v5212_v57 = vsel %vm5208_vm6, %v5211_v34, %v5183_v41 }
0x5095   :  { %5214 = vst.msk [vmem:[#allocation13] sm:$0x3] %vm5213_vm7, %v5212_v57 }
0x5096   :  { %6991 = shalt.err (!%p6988_p10)
}
0x5097   :  { %s6992_s11 = scalar_lea.hbm %s7336_s20, 32 }
0x5098   :  { %p6993_p11 = scmp.ne.s32.totalorder %s7336_s20, %s6992_s11  ;;  %p6996_p12 = scmp.lt.u32.totalorder %s6992_s11, %s7336_s20 }
0x509a   :  { %p6998_p13 = pnand %p6996_p12, %p6993_p11 }
0x509c   :  { %7001 = shalt.err (!%p6998_p13)
}
0x509d   :  { %5224 = dma.vmem_to_hbm [thread:$0]  %s5222_s7, 32, %s7336_s20, [#allocation4]  }
0x509e   :  { %7010 = dma.done.wait [#allocation4], 32  }
0x509f   :  { %7011 = vsyncadd [#allocation4], 4294967264 }
0x50a0   :  { %5232 = vsyncpa [#allocation3], 1 }
0x50a1   :  { %5233 = vsyncpa [#allocation6], 1 }
0x50a2   :  { %5234 = vsyncpa [#allocation9], 1 }
0x50a3   :  { %5235 = vsyncpa [#allocation12], 1 }
0x50a4   :  { %5236 = vsyncpa [#allocation4], 1 }

</bundles_post_ra>
